<compile_context>
chip_gen: v7x
topology: tpu7x:2x2x1
jax: 0.10.0
libtpu: 0.0.40
codegen_flags: <defaults>
</compile_context>

<pallas_src>
import numpy as np
import jax
import jax.numpy as jnp
from jax.experimental import pallas as pl
from jax.experimental.pallas import tpu as pltpu

# ----------------------------------------------------------------------------------
# db4 analysis filters (pywt.Wavelet('db4').dec_lo / dec_hi), hard-coded (no pywt dep)
# ----------------------------------------------------------------------------------
DB4_DEC_LO = np.array(
    [-0.010597401784997278, 0.032883011666982945, 0.030841381835986965,
     -0.18703481171888114, -0.02798376941698385, 0.6308807679295904,
      0.7148465705525415, 0.23037781330885523], dtype=np.float64)
DB4_DEC_HI = np.array(
    [-0.23037781330885523, 0.7148465705525415, -0.6308807679295904,
     -0.02798376941698385, 0.18703481171888114, 0.030841381835986965,
     -0.032883011666982945, -0.010597401784997278], dtype=np.float64)
_L = DB4_DEC_LO.shape[0]


def _round_up(v, m):
    return ((v + m - 1) // m) * m


def _dwt_level_sizes(N, L=_L):
    """pywt zero-mode output length and total pad, as in pytorch_wavelets.afb1d."""
    outsize = (N + L - 1) // 2          # pywt.dwt_coeff_len(N, L, mode='zero')
    p = 2 * (outsize - 1) - N + L
    return outsize, p


def _build_fused_level_matrix(n_in, n_in_pad):
    """Fused (n_in_pad, 2*out_pad) matrix W so that y = x @ W gives
    [lo coeffs (cols 0..out-1) | zeros | hi coeffs (cols out_pad..out_pad+out-1) | zeros].
    Rows n_in..n_in_pad-1 are zero, so padded input columns cannot contribute."""
    h0 = DB4_DEC_LO[::-1]               # prep_filt_afb1d reverses the filters
    h1 = DB4_DEC_HI[::-1]
    out, p = _dwt_level_sizes(n_in)
    pad_left = p // 2
    out_pad = _round_up(out, 128)       # lane-dense outputs (multiple of 128)
    n = np.arange(n_in)[:, None]
    m = np.arange(out)[None, :]
    k = n + pad_left - 2 * m            # tap index hitting sample n for output m
    valid = (k >= 0) & (k < _L)
    kc = np.clip(k, 0, _L - 1)
    m_lo = np.where(valid, h0[kc], 0.0)
    m_hi = np.where(valid, h1[kc], 0.0)
    W = np.zeros((n_in_pad, 2 * out_pad), dtype=np.float32)
    W[:n_in, :out] = m_lo
    W[:n_in, out_pad:out_pad + out] = m_hi
    return jnp.asarray(W), out, out_pad


# ----------------------------------------------------------------------------------
# Fused multi-level kernel: J matmuls on the MXU, intermediates never leave VMEM,
# all hi/lo coefficients written into one packed lane-dense output.
# ----------------------------------------------------------------------------------
def _make_fused_kernel(level, out_pads):
    def kernel(x_ref, *refs):
        w_refs = refs[:level]
        out_ref = refs[level]
        cur = x_ref[...]
        off = 0
        for j in range(level):                          # statically unrolled (J=3)
            y = jnp.dot(cur, w_refs[j][...],
                        preferred_element_type=jnp.float32,
                        precision=jax.lax.Precision.HIGHEST)   # (tm, 2*out_pad)
            op = out_pads[j]
            out_ref[:, off:off + op] = y[:, op:]        # hi-pass slab, 128-aligned
            cur = y[:, :op]                             # running low-pass stays on-chip
            off += op
        out_ref[:, off:off + out_pads[-1]] = cur        # final low-pass slab
    return kernel


def _vmem_capacity_bytes():
    try:
        return int(pltpu.get_tpu_info().vmem_capacity_bytes)
    except Exception:
        return 64 << 20      # conservative fallback (v7x per-TC VMEM)


def _choose_row_tiling(R, per_row_bytes, tile_budget_bytes):
    """Row tile: a single tile when everything fits (no forced >=2-step split — that
    only helped v7x megacore and hurt single-TC chips); otherwise the biggest
    8-multiple tile that fits the VMEM tile budget, capped at 512 rows."""
    Rp = _round_up(max(R, 8), 8)
    max_tile = max(8, min(512, (tile_budget_bytes // max(per_row_bytes, 1)) // 8 * 8))
    if Rp <= max_tile:
        return Rp, Rp                     # one tile, one grid step
    return max_tile, _round_up(Rp, max_tile)


def gpu_wavelet_transform(x, level=3):
    """Forward pass of GPUWaveletTransform.
    x: (B, T, F) float32
    returns:
        low_freq: (B, L_low, F)
        multi_hf: [ (B, L_hf_j, F) for j in 1..level ]
    """
    B, T, F_ = x.shape
    R = B * F_
    rows = jnp.transpose(x, (0, 2, 1)).reshape(R, T).astype(jnp.float32)  # (B*F, T)

    N0p = _round_up(max(T, 128), 128)

    # build fused [lo|hi] matrices for all levels (static, tiny host work)
    Ws, outs, out_pads = [], [], []
    n_in, n_in_pad = T, N0p
    for _ in range(level):
        W, out, out_pad = _build_fused_level_matrix(n_in, n_in_pad)
        Ws.append(W)
        outs.append(out)
        out_pads.append(out_pad)
        n_in, n_in_pad = out, out_pad
    total_cols = sum(out_pads) + out_pads[-1]           # [hi_1 | ... | hi_J | lo_J]

    # VMEM budget: single-buffered weights + double-buffered I/O tiles + y temporaries
    vmem_cap = _vmem_capacity_bytes()
    vmem_cap_use = int(vmem_cap * 3 // 4)                # headroom for Mosaic scratch
    w_bytes = sum(int(np.prod(W.shape)) * 4 for W in Ws)
    per_row_bytes = 4 * (2 * N0p                         # double-buffered input tile
                         + 2 * total_cols                # double-buffered packed output
                         + 2 * max(out_pads)             # (tm, 2*out_pad) y temporary
                         + max(out_pads))                # running low-pass `cur`
    tile_budget = max(vmem_cap_use - w_bytes - (8 << 20), 8 * per_row_bytes)
    tile_m, Rp = _choose_row_tiling(R, per_row_bytes, tile_budget)
    rows_p = jnp.pad(rows, ((0, Rp - R), (0, N0p - T)))
    vmem_limit = int(min(max(w_bytes + tile_m * per_row_bytes + (8 << 20), 16 << 20),
                         vmem_cap_use))

    def run(single_buffer_weights):
        in_specs = [pl.BlockSpec((tile_m, N0p), lambda i: (i, 0))]
        for W in Ws:
            if single_buffer_weights:
                in_specs.append(pl.BlockSpec(tuple(W.shape), lambda i: (0, 0),
                                             pipeline_mode=pl.Buffered(1)))
            else:
                in_specs.append(pl.BlockSpec(tuple(W.shape), lambda i: (0, 0)))
        out_specs = pl.BlockSpec((tile_m, total_cols), lambda i: (i, 0))
        return pl.pallas_call(
            _make_fused_kernel(level, tuple(out_pads)),
            out_shape=jax.ShapeDtypeStruct((Rp, total_cols), jnp.float32),
            grid=(Rp // tile_m,),
            in_specs=in_specs,
            out_specs=out_specs,
            compiler_params=pltpu.CompilerParams(
                dimension_semantics=("parallel",),
                vmem_limit_bytes=vmem_limit),
        )(rows_p, *Ws)

    try:
        packed = run(True)
    except Exception:
        # pipeline_mode support can vary across jax versions; fall back to defaults
        packed = run(False)

    col_off = np.concatenate(([0], np.cumsum(out_pads))).astype(int)
    details = []
    for j in range(level):
        hj = packed[:R, col_off[j]:col_off[j] + outs[j]].reshape(B, F_, outs[j])
        details.append(jnp.transpose(hj, (0, 2, 1)))
    lo = packed[:R, col_off[level]:col_off[level] + outs[-1]].reshape(B, F_, outs[-1])
    low_freq = jnp.transpose(lo, (0, 2, 1))
    return low_freq, details


# ----------------------------------------------------------------------------------
# Pure-numpy reference (direct zero-pad + stride-2 correlation) for a sanity check
# ----------------------------------------------------------------------------------
def _ref_afb1d(x):
    h0 = DB4_DEC_LO[::-1]
    h1 = DB4_DEC_HI[::-1]
    R, N = x.shape
    outsize, p = _dwt_level_sizes(N)
    xp = np.pad(x, ((0, 0), (p // 2, p // 2 + (p % 2))))
    lo = np.zeros((R, outsize))
    hi = np.zeros((R, outsize))
    for m in range(outsize):
        seg = xp[:, 2 * m:2 * m + _L]
        lo[:, m] = seg @ h0
        hi[:, m] = seg @ h1
    return lo, hi


def _ref_forward(x_np, level=3):
    B, T, F_ = x_np.shape
    cur = np.transpose(x_np, (0, 2, 1)).reshape(B * F_, T).astype(np.float64)
    details = []
    for _ in range(level):
        lo, hi = _ref_afb1d(cur)
        details.append(np.transpose(hi.reshape(B, F_, -1), (0, 2, 1)))
        cur = lo
    low = np.transpose(cur.reshape(B, F_, -1), (0, 2, 1))
    return low, details


if __name__ == "__main__":
    key = jax.random.PRNGKey(0)
    B, T, F_ = 2, 32, 8                 # x: (B, T, F)
    x = jax.random.normal(key, (B, T, F_), dtype=jnp.float32)

    low_freq, multi_hf = jax.block_until_ready(gpu_wavelet_transform(x, level=3))

    # sanity check against the direct reference implementation
    ref_low, ref_hf = _ref_forward(np.asarray(x), level=3)
    np.testing.assert_allclose(np.asarray(low_freq), ref_low, rtol=1e-4, atol=1e-5)
    for got, want in zip(multi_hf, ref_hf):
        np.testing.assert_allclose(np.asarray(got), want, rtol=1e-4, atol=1e-5)

    print("KERNEL_OK")
</pallas_src>

<mosaic_0001>
module attributes {stable_mosaic.version = 11 : i64} {
  func.func @kernel(%arg0: i32, %arg1: memref<16x128xf32, #tpu.memory_space<vmem>>, %arg2: memref<128x256xf32, #tpu.memory_space<vmem>>, %arg3: memref<128x256xf32, #tpu.memory_space<vmem>>, %arg4: memref<128x256xf32, #tpu.memory_space<vmem>>, %arg5: memref<16x512xf32, #tpu.memory_space<vmem>>) attributes {dimension_semantics = [#tpu.dimension_semantics<parallel>], iteration_bounds = array<i64: 1>, scalar_prefetch = 0 : i64, scratch_operands = 0 : i64, tpu.core_type = #tpu.core_type<tc>, window_params = [{transform_indices = @transform_0, window_bounds = array<i64: 16, 128>}, {pipeline_mode = #tpu.pipeline_mode<synchronous>, transform_indices = @transform_1, window_bounds = array<i64: 128, 256>}, {pipeline_mode = #tpu.pipeline_mode<synchronous>, transform_indices = @transform_2, window_bounds = array<i64: 128, 256>}, {pipeline_mode = #tpu.pipeline_mode<synchronous>, transform_indices = @transform_3, window_bounds = array<i64: 128, 256>}, {transform_indices = @transform_4, window_bounds = array<i64: 16, 512>}]} {
    %c0 = arith.constant 0 : index
    %c0_0 = arith.constant 0 : index
    %0 = vector.load %arg1[%c0, %c0_0] : memref<16x128xf32, #tpu.memory_space<vmem>>, vector<16x128xf32>
    %c0_1 = arith.constant 0 : index
    %c0_2 = arith.constant 0 : index
    %1 = vector.load %arg2[%c0_1, %c0_2] : memref<128x256xf32, #tpu.memory_space<vmem>>, vector<128x256xf32>
    %cst = arith.constant dense<0.000000e+00> : vector<16x256xf32>
    %2 = tpu.matmul %0, %1, %cst {dimension_numbers = #tpu.dot_dimension_numbers<[1], [0], [0], [1], [0, 0, 1, 1], [], []>, precision = #tpu.contract_precision<fp32>} : vector<16x128xf32>, vector<128x256xf32>, vector<16x256xf32> -> vector<16x256xf32>
    %3 = vector.extract_strided_slice %2 {offsets = [0, 128], sizes = [16, 128], strides = [1, 1]} : vector<16x256xf32> to vector<16x128xf32>
    %c0_3 = arith.constant 0 : index
    %c0_4 = arith.constant 0 : index
    %4 = vector.load %arg5[%c0_3, %c0_4] : memref<16x512xf32, #tpu.memory_space<vmem>>, vector<16x128xf32>
    tpu.vector_store %arg5[%c0_3, %c0_4], %3 {strides = array<i32>} : memref<16x512xf32, #tpu.memory_space<vmem>>, vector<16x128xf32>,
    %5 = vector.extract_strided_slice %2 {offsets = [0, 0], sizes = [16, 128], strides = [1, 1]} : vector<16x256xf32> to vector<16x128xf32>
    %c0_5 = arith.constant 0 : index
    %c0_6 = arith.constant 0 : index
    %6 = vector.load %arg3[%c0_5, %c0_6] : memref<128x256xf32, #tpu.memory_space<vmem>>, vector<128x256xf32>
    %cst_7 = arith.constant dense<0.000000e+00> : vector<16x256xf32>
    %7 = tpu.matmul %5, %6, %cst_7 {dimension_numbers = #tpu.dot_dimension_numbers<[1], [0], [0], [1], [0, 0, 1, 1], [], []>, precision = #tpu.contract_precision<fp32>} : vector<16x128xf32>, vector<128x256xf32>, vector<16x256xf32> -> vector<16x256xf32>
    %8 = vector.extract_strided_slice %7 {offsets = [0, 128], sizes = [16, 128], strides = [1, 1]} : vector<16x256xf32> to vector<16x128xf32>
    %c0_8 = arith.constant 0 : index
    %c128 = arith.constant 128 : index
    %9 = vector.load %arg5[%c0_8, %c128] : memref<16x512xf32, #tpu.memory_space<vmem>>, vector<16x128xf32>
    tpu.vector_store %arg5[%c0_8, %c128], %8 {strides = array<i32>} : memref<16x512xf32, #tpu.memory_space<vmem>>, vector<16x128xf32>,
    %10 = vector.extract_strided_slice %7 {offsets = [0, 0], sizes = [16, 128], strides = [1, 1]} : vector<16x256xf32> to vector<16x128xf32>
    %c0_9 = arith.constant 0 : index
    %c0_10 = arith.constant 0 : index
    %11 = vector.load %arg4[%c0_9, %c0_10] : memref<128x256xf32, #tpu.memory_space<vmem>>, vector<128x256xf32>
    %cst_11 = arith.constant dense<0.000000e+00> : vector<16x256xf32>
    %12 = tpu.matmul %10, %11, %cst_11 {dimension_numbers = #tpu.dot_dimension_numbers<[1], [0], [0], [1], [0, 0, 1, 1], [], []>, precision = #tpu.contract_precision<fp32>} : vector<16x128xf32>, vector<128x256xf32>, vector<16x256xf32> -> vector<16x256xf32>
    %13 = vector.extract_strided_slice %12 {offsets = [0, 128], sizes = [16, 128], strides = [1, 1]} : vector<16x256xf32> to vector<16x128xf32>
    %c0_12 = arith.constant 0 : index
    %c256 = arith.constant 256 : index
    %14 = vector.load %arg5[%c0_12, %c256] : memref<16x512xf32, #tpu.memory_space<vmem>>, vector<16x128xf32>
    tpu.vector_store %arg5[%c0_12, %c256], %13 {strides = array<i32>} : memref<16x512xf32, #tpu.memory_space<vmem>>, vector<16x128xf32>,
    %15 = vector.extract_strided_slice %12 {offsets = [0, 0], sizes = [16, 128], strides = [1, 1]} : vector<16x256xf32> to vector<16x128xf32>
    %c0_13 = arith.constant 0 : index
    %c384 = arith.constant 384 : index
    %16 = vector.load %arg5[%c0_13, %c384] : memref<16x512xf32, #tpu.memory_space<vmem>>, vector<16x128xf32>
    tpu.vector_store %arg5[%c0_13, %c384], %15 {strides = array<i32>} : memref<16x512xf32, #tpu.memory_space<vmem>>, vector<16x128xf32>,
    return
  }
  func.func @transform_0(%arg0: i32) -> (i32, i32) {
    %c0_i32 = arith.constant 0 : i32
    %c0_i32_0 = arith.constant 0 : i32
    return %arg0, %c0_i32 : i32, i32
  }
  func.func @transform_1(%arg0: i32) -> (i32, i32) {
    %c0_i32 = arith.constant 0 : i32
    %c0_i32_0 = arith.constant 0 : i32
    %c0_i32_1 = arith.constant 0 : i32
    return %c0_i32, %c0_i32_0 : i32, i32
  }
  func.func @transform_2(%arg0: i32) -> (i32, i32) {
    %c0_i32 = arith.constant 0 : i32
    %c0_i32_0 = arith.constant 0 : i32
    %c0_i32_1 = arith.constant 0 : i32
    return %c0_i32, %c0_i32_0 : i32, i32
  }
  func.func @transform_3(%arg0: i32) -> (i32, i32) {
    %c0_i32 = arith.constant 0 : i32
    %c0_i32_0 = arith.constant 0 : i32
    %c0_i32_1 = arith.constant 0 : i32
    return %c0_i32, %c0_i32_0 : i32, i32
  }
  func.func @transform_4(%arg0: i32) -> (i32, i32) {
    %c0_i32 = arith.constant 0 : i32
    %c0_i32_0 = arith.constant 0 : i32
    return %arg0, %c0_i32 : i32, i32
  }
}

module attributes {stable_mosaic.version = 11 : i64} {
  func.func @kernel(%arg0: i32, %arg1: memref<16x128xf32, #tpu.memory_space<vmem>>, %arg2: memref<128x256xf32, #tpu.memory_space<vmem>>, %arg3: memref<128x256xf32, #tpu.memory_space<vmem>>, %arg4: memref<128x256xf32, #tpu.memory_space<vmem>>, %arg5: memref<16x512xf32, #tpu.memory_space<vmem>>) attributes {dimension_semantics = [#tpu.dimension_semantics<parallel>], iteration_bounds = array<i64: 1>, scalar_prefetch = 0 : i64, scratch_operands = 0 : i64, tpu.core_type = #tpu.core_type<tc>, window_params = [{transform_indices = @transform_0, window_bounds = array<i64: 16, 128>}, {pipeline_mode = #tpu.pipeline_mode<synchronous>, transform_indices = @transform_1, window_bounds = array<i64: 128, 256>}, {pipeline_mode = #tpu.pipeline_mode<synchronous>, transform_indices = @transform_2, window_bounds = array<i64: 128, 256>}, {pipeline_mode = #tpu.pipeline_mode<synchronous>, transform_indices = @transform_3, window_bounds = array<i64: 128, 256>}, {transform_indices = @transform_4, window_bounds = array<i64: 16, 512>}]} {
    %c0 = arith.constant 0 : index
    %c0_0 = arith.constant 0 : index
    %0 = vector.load %arg1[%c0, %c0_0] : memref<16x128xf32, #tpu.memory_space<vmem>>, vector<16x128xf32>
    %c0_1 = arith.constant 0 : index
    %c0_2 = arith.constant 0 : index
    %1 = vector.load %arg2[%c0_1, %c0_2] : memref<128x256xf32, #tpu.memory_space<vmem>>, vector<128x256xf32>
    %cst = arith.constant dense<0.000000e+00> : vector<16x256xf32>
    %2 = tpu.matmul %0, %1, %cst {dimension_numbers = #tpu.dot_dimension_numbers<[1], [0], [0], [1], [0, 0, 1, 1], [], []>, precision = #tpu.contract_precision<fp32>} : vector<16x128xf32>, vector<128x256xf32>, vector<16x256xf32> -> vector<16x256xf32>
    %3 = vector.extract_strided_slice %2 {offsets = [0, 128], sizes = [16, 128], strides = [1, 1]} : vector<16x256xf32> to vector<16x128xf32>
    %c0_3 = arith.constant 0 : index
    %c0_4 = arith.constant 0 : index
    %4 = vector.load %arg5[%c0_3, %c0_4] : memref<16x512xf32, #tpu.memory_space<vmem>>, vector<16x128xf32>
    tpu.vector_store %arg5[%c0_3, %c0_4], %3 {strides = array<i32>} : memref<16x512xf32, #tpu.memory_space<vmem>>, vector<16x128xf32>,
    %5 = vector.extract_strided_slice %2 {offsets = [0, 0], sizes = [16, 128], strides = [1, 1]} : vector<16x256xf32> to vector<16x128xf32>
    %c0_5 = arith.constant 0 : index
    %c0_6 = arith.constant 0 : index
    %6 = vector.load %arg3[%c0_5, %c0_6] : memref<128x256xf32, #tpu.memory_space<vmem>>, vector<128x256xf32>
    %cst_7 = arith.constant dense<0.000000e+00> : vector<16x256xf32>
    %7 = tpu.matmul %5, %6, %cst_7 {dimension_numbers = #tpu.dot_dimension_numbers<[1], [0], [0], [1], [0, 0, 1, 1], [], []>, precision = #tpu.contract_precision<fp32>} : vector<16x128xf32>, vector<128x256xf32>, vector<16x256xf32> -> vector<16x256xf32>
    %8 = vector.extract_strided_slice %7 {offsets = [0, 128], sizes = [16, 128], strides = [1, 1]} : vector<16x256xf32> to vector<16x128xf32>
    %c0_8 = arith.constant 0 : index
    %c128 = arith.constant 128 : index
    %9 = vector.load %arg5[%c0_8, %c128] : memref<16x512xf32, #tpu.memory_space<vmem>>, vector<16x128xf32>
    tpu.vector_store %arg5[%c0_8, %c128], %8 {strides = array<i32>} : memref<16x512xf32, #tpu.memory_space<vmem>>, vector<16x128xf32>,
    %10 = vector.extract_strided_slice %7 {offsets = [0, 0], sizes = [16, 128], strides = [1, 1]} : vector<16x256xf32> to vector<16x128xf32>
    %c0_9 = arith.constant 0 : index
    %c0_10 = arith.constant 0 : index
    %11 = vector.load %arg4[%c0_9, %c0_10] : memref<128x256xf32, #tpu.memory_space<vmem>>, vector<128x256xf32>
    %cst_11 = arith.constant dense<0.000000e+00> : vector<16x256xf32>
    %12 = tpu.matmul %10, %11, %cst_11 {dimension_numbers = #tpu.dot_dimension_numbers<[1], [0], [0], [1], [0, 0, 1, 1], [], []>, precision = #tpu.contract_precision<fp32>} : vector<16x128xf32>, vector<128x256xf32>, vector<16x256xf32> -> vector<16x256xf32>
    %13 = vector.extract_strided_slice %12 {offsets = [0, 128], sizes = [16, 128], strides = [1, 1]} : vector<16x256xf32> to vector<16x128xf32>
    %c0_12 = arith.constant 0 : index
    %c256 = arith.constant 256 : index
    %14 = vector.load %arg5[%c0_12, %c256] : memref<16x512xf32, #tpu.memory_space<vmem>>, vector<16x128xf32>
    tpu.vector_store %arg5[%c0_12, %c256], %13 {strides = array<i32>} : memref<16x512xf32, #tpu.memory_space<vmem>>, vector<16x128xf32>,
    %15 = vector.extract_strided_slice %12 {offsets = [0, 0], sizes = [16, 128], strides = [1, 1]} : vector<16x256xf32> to vector<16x128xf32>
    %c0_13 = arith.constant 0 : index
    %c384 = arith.constant 384 : index
    %16 = vector.load %arg5[%c0_13, %c384] : memref<16x512xf32, #tpu.memory_space<vmem>>, vector<16x128xf32>
    tpu.vector_store %arg5[%c0_13, %c384], %15 {strides = array<i32>} : memref<16x512xf32, #tpu.memory_space<vmem>>, vector<16x128xf32>,
    return
  }
  func.func @transform_0(%arg0: i32) -> (i32, i32) {
    %c0_i32 = arith.constant 0 : i32
    %c0_i32_0 = arith.constant 0 : i32
    return %arg0, %c0_i32 : i32, i32
  }
  func.func @transform_1(%arg0: i32) -> (i32, i32) {
    %c0_i32 = arith.constant 0 : i32
    %c0_i32_0 = arith.constant 0 : i32
    %c0_i32_1 = arith.constant 0 : i32
    return %c0_i32, %c0_i32_0 : i32, i32
  }
  func.func @transform_2(%arg0: i32) -> (i32, i32) {
    %c0_i32 = arith.constant 0 : i32
    %c0_i32_0 = arith.constant 0 : i32
    %c0_i32_1 = arith.constant 0 : i32
    return %c0_i32, %c0_i32_0 : i32, i32
  }
  func.func @transform_3(%arg0: i32) -> (i32, i32) {
    %c0_i32 = arith.constant 0 : i32
    %c0_i32_0 = arith.constant 0 : i32
    %c0_i32_1 = arith.constant 0 : i32
    return %c0_i32, %c0_i32_0 : i32, i32
  }
  func.func @transform_4(%arg0: i32) -> (i32, i32) {
    %c0_i32 = arith.constant 0 : i32
    %c0_i32_0 = arith.constant 0 : i32
    return %arg0, %c0_i32 : i32, i32
  }
}

</mosaic_0001>

<bundles_post_ra>
// kernel: tpu_custom_call.1
= control target key start
LH: loop header
LB: loop body
LE: loop exit
PB: predicated region body
PF: predicated region fallthrough
CT: control target
= control target key end

     0   :  { %9 = vsyncpa [#allocation3], 0  ;;  %s5151_s0 = inlined_call_operand.hbm [shape: f32[16,128], index: 0, kind: input, shape index: {}]   ;;  %s5152_s1 = inlined_call_operand.hbm [shape: f32[128,256], index: 1, kind: input, shape index: {}]   ;;  %s5153_s2 = inlined_call_operand.hbm [shape: f32[128,256], index: 2, kind: input, shape index: {}]   ;;  %s5154_s3 = inlined_call_operand.hbm [shape: f32[128,256], index: 3, kind: input, shape index: {}]   ;;  %s5155_s4 = inlined_call_operand.hbm [shape: f32[16,512], index: 4, kind: output, shape index: {}]  }
   0x1   :  { %10 = vsyncpa [#allocation6], 0 }
   0x2   :  { %11 = vsyncpa [#allocation9], 0 }
   0x3   :  { %12 = vsyncpa [#allocation4], 0  ;;  %s3676_s15 = smov [#allocation5]   ;;  %s3558_s19 = scalar_lea.hbm %s5152_s1, 4096 }
   0x4   :  { %s30_s16 = sshll.u32 %s3676_s15, 4  ;;  %p3559_p0 = scmp.ne.s32.totalorder %s5152_s1, %s3558_s19  ;;  %s31_s16 = int_to_ptr.vmem [resolvable:$true] %s30_s16 }
   0x5   :  { %p3562_p1 = scmp.lt.u32.totalorder %s3558_s19, %s5152_s1 }
   0x7   :  { %p3564_p2 = pnand %p3562_p1, %p3559_p0 }
   0x9   :  { %3567 = shalt.err (!%p3564_p2)
}
   0xa   :  { %s3568_s24 = scalar_lea.vmem %s31_s16, 4096  ;;  %p3573_p4 = scmp.lt.s32.totalorder %s31_s16, %s31_s16 }
   0xb   :  { %p3569_p3 = scmp.ne.s32.totalorder %s31_s16, %s3568_s24  ;;  %p3574_p5 = scmp.lt.s32.totalorder %s3568_s24, %s3568_s24 }
   0xd   :  { %p3575_p6 = por %p3574_p5, %p3573_p4 }
   0xf   :  { %p3576_p7 = pnand %p3575_p6, %p3569_p3 }
  0x11   :  { %3579 = shalt.err (!%p3576_p7)
}
  0x12   :  { %s3677_s25 = smov 256   ;;  %s3678_s26 = smov 16  }
  0x13   :  { %36 = dma.hbm_to_vmem [thread:$0]  %s5152_s1, 4096, %s31_s16, [#allocation6], %s3677_s25, %s3677_s25, %s3678_s26  }
  0x14   :  { %s3679_s29 = smov [#allocation2]   ;;  %s3580_s7 = scalar_lea.hbm %s5151_s0, 256 }
  0x15   :  { %s18_s30 = sshll.u32 %s3679_s29, 4  ;;  %p3581_p8 = scmp.ne.s32.totalorder %s5151_s0, %s3580_s7  ;;  %s19_s30 = int_to_ptr.vmem [resolvable:$true] %s18_s30 }
  0x16   :  { %p3584_p9 = scmp.lt.u32.totalorder %s3580_s7, %s5151_s0 }
  0x18   :  { %p3586_p10 = pnand %p3584_p9, %p3581_p8 }
  0x1a   :  { %3589 = shalt.err (!%p3586_p10)
}
  0x1b   :  { %s3590_s12 = scalar_lea.vmem %s19_s30, 256  ;;  %p3595_p12 = scmp.lt.s32.totalorder %s19_s30, %s19_s30 }
  0x1c   :  { %p3591_p11 = scmp.ne.s32.totalorder %s19_s30, %s3590_s12  ;;  %p3596_p13 = scmp.lt.s32.totalorder %s3590_s12, %s3590_s12 }
  0x1e   :  { %p3597_p0 = por %p3596_p13, %p3595_p12 }
  0x20   :  { %p3598_p1 = pnand %p3597_p0, %p3591_p11 }
  0x22   :  { %3601 = shalt.err (!%p3598_p1)
}
  0x23   :  { %s3680_s1 = smov 128   ;;  %s3681_s13 = smov 8  }
  0x24   :  { %24 = dma.hbm_to_vmem [thread:$0]  %s5151_s0, 256, %s19_s30, [#allocation3], %s3680_s1, %s3680_s1, %s3681_s13  }
  0x25   :  { %s3682_s16 = smov [#allocation7]   ;;  %s3683_s18 = smov [#allocation8]  }
  0x26   :  { %s42_s17 = sshll.u32 %s3682_s16, 4  ;;  %s54_s19 = sshll.u32 %s3683_s18, 4  ;;  %s43_s17 = int_to_ptr.vmem [resolvable:$true] %s42_s17  ;;  %s3740_s19 = int_to_ptr.vmem [resolvable:$true] %s54_s19 }
  0x27   :  { %s3602_s22 = scalar_lea.hbm %s5153_s2, 4096 }
  0x28   :  { %p3603_p2 = scmp.ne.s32.totalorder %s5153_s2, %s3602_s22  ;;  %p3606_p3 = scmp.lt.u32.totalorder %s3602_s22, %s5153_s2 }
  0x2a   :  { %p3608_p4 = pnand %p3606_p3, %p3603_p2 }
  0x2c   :  { %3611 = shalt.err (!%p3608_p4)
}
  0x2d   :  { %s3612_s0 = scalar_lea.vmem %s43_s17, 4096  ;;  %p3617_p6 = scmp.lt.s32.totalorder %s43_s17, %s43_s17 }
  0x2e   :  { %p3613_p5 = scmp.ne.s32.totalorder %s43_s17, %s3612_s0  ;;  %p3618_p7 = scmp.lt.s32.totalorder %s3612_s0, %s3612_s0 }
  0x30   :  { %p3619_p8 = por %p3618_p7, %p3617_p6 }
  0x32   :  { %p3620_p9 = pnand %p3619_p8, %p3613_p5 }
  0x34   :  { %3623 = shalt.err (!%p3620_p9)
}
  0x35   :  { %48 = dma.hbm_to_vmem [thread:$0]  %s5153_s2, 4096, %s43_s17, [#allocation6], %s3677_s25, %s3677_s25, %s3678_s26  }
  0x36   :  { %s3624_s7 = scalar_lea.hbm %s5154_s3, 4096 }
  0x37   :  { %p3625_p10 = scmp.ne.s32.totalorder %s5154_s3, %s3624_s7  ;;  %p3628_p11 = scmp.lt.u32.totalorder %s3624_s7, %s5154_s3 }
  0x39   :  { %p3630_p12 = pnand %p3628_p11, %p3625_p10 }
  0x3b   :  { %3633 = shalt.err (!%p3630_p12)
}
  0x3c   :  { %s3634_s12 = scalar_lea.vmem %s3740_s19, 4096  ;;  %p3639_p0 = scmp.lt.s32.totalorder %s3740_s19, %s3740_s19 }
  0x3d   :  { %p3635_p13 = scmp.ne.s32.totalorder %s3740_s19, %s3634_s12  ;;  %p3640_p1 = scmp.lt.s32.totalorder %s3634_s12, %s3634_s12 }
  0x3f   :  { %p3641_p2 = por %p3640_p1, %p3639_p0 }
  0x41   :  { %p3642_p3 = pnand %p3641_p2, %p3635_p13 }
  0x43   :  { %3645 = shalt.err (!%p3642_p3)
}
  0x44   :  { %60 = dma.hbm_to_vmem [thread:$0]  %s5154_s3, 4096, %s3740_s19, [#allocation9], %s3677_s25, %s3677_s25, %s3678_s26  }
  0x45   :  { %3668 = dma.done.wait [#allocation3], 256  }
  0x46   :  { %3669 = vsyncadd [#allocation3], 4294967040 }
  0x47   :  { %3670 = dma.done.wait [#allocation6], 8192  }
  0x48   :  { %3671 = vsyncadd [#allocation6], 4294959104 }
  0x49   :  { %3672 = dma.done.wait [#allocation9], 4096  }
  0x4a   :  { %3673 = vsyncadd [#allocation9], 4294963200  ;;  %v5156_v0 = vmov 0.0   ;;  %v76_v1 = vld [vmem:[#allocation5 + $0x8] sm:$0xff]  ;;  %v78_v2 = vld [vmem:[#allocation5 + $0x18] sm:$0xff]  ;;  %s3685_s3 = smov [#allocation10]  }
  0x4b   :  { %203 = vmatprep.mubr.f32.mxu1 %v5156_v0  ;;  %706 = vmatprep.mubr.f32.mxu0 %v5156_v0  ;;  %v75_v3 = vld [vmem:[#allocation5] sm:$0xff]  ;;  %v107_v4 = vand.u32 4294901760, %v76_v1  ;;  %v111_v5 = vand.u32 4294901760, %v78_v2  ;;  %v77_v6 = vld [vmem:[#allocation5 + $0x10] sm:$0xff]  ;;  %v80_v8 = vld [vmem:[#allocation5 + $0x28] sm:$0xff]  ;;  %s2896_s25 = sshll.u32 %s3685_s3, 4  ;;  %s2897_s25 = int_to_ptr.vmem [resolvable:$true] %s2896_s25 }
  0x4c   :  { %v109_v7 = vand.u32 4294901760, %v75_v3  ;;  %v82_v9 = vld [vmem:[#allocation5 + $0x38] sm:$0xff]  ;;  %v113_v10 = vand.u32 4294901760, %v77_v6  ;;  %v115_v11 = vand.u32 4294901760, %v80_v8  ;;  %v79_v13 = vld [vmem:[#allocation5 + $0x20] sm:$0xff]  ;;  %v81_v14 = vld [vmem:[#allocation5 + $0x30] sm:$0xff]  ;;  %p3651_p5 = scmp.lt.s32.totalorder %s2897_s25, %s2897_s25 }
  0x4d   :  { %v119_v12 = vand.u32 4294901760, %v82_v9  ;;  %v84_v15 = vld [vmem:[#allocation5 + $0x48] sm:$0xff]  ;;  %v3779_v16 = vpack.c.bf16 %v111_v5, %v107_v4  ;;  %v86_v17 = vld [vmem:[#allocation5 + $0x58] sm:$0xff]  ;;  %v83_v18 = vld [vmem:[#allocation5 + $0x40] sm:$0xff]  ;;  %v3781_v20 = vsub.f32 %v76_v1, %v107_v4  ;;  %v3788_v25 = vsub.f32 %v78_v2, %v111_v5  ;;  %s3646_s26 = scalar_lea.vmem %s2897_s25, 1024 }
  0x4e   :  { %v85_v19 = vld [vmem:[#allocation5 + $0x50] sm:$0xff]  ;;  %v3783_v21 = vpack.c.bf16 %v113_v10, %v109_v7  ;;  %v88_v23 = vld [vmem:[#allocation5 + $0x68] sm:$0xff]  ;;  %v90_v24 = vld [vmem:[#allocation5 + $0x78] sm:$0xff]  ;;  %v117_v26 = vand.u32 4294901760, %v79_v13  ;;  %v121_v27 = vand.u32 4294901760, %v81_v14  ;;  %v123_v28 = vand.u32 4294901760, %v84_v15  ;;  %p3647_p4 = scmp.ne.s32.totalorder %s2897_s25, %s3646_s26  ;;  %p3652_p6 = scmp.lt.s32.totalorder %s3646_s26, %s3646_s26 }
  0x4f   :  { %v3785_v22 = vpack.c.bf16 %v119_v12, %v115_v11  ;;  %2911 = vmatprep.subr.bf16.mxu1 %v3779_v16  ;;  %3007 = vmatprep.subr.bf16.mxu0 %v3779_v16  ;;  %v3792_v29 = vsub.f32 %v75_v3, %v109_v7  ;;  %v127_v30 = vand.u32 4294901760, %v86_v17  ;;  %v125_v31 = vand.u32 4294901760, %v83_v18  ;;  %v87_v37 = vld [vmem:[#allocation5 + $0x60] sm:$0xff]  ;;  %v89_v38 = vld [vmem:[#allocation5 + $0x70] sm:$0xff]  ;;  %v92_v39 = vld [vmem:[#allocation5 + $0x88] sm:$0xff] }
  0x50   :  { %5371 = vst [vmem:[#allocation15_spill] sm:$0xff] %v3783_v21  ;;  %2913 = vmatpush1.bf16.msra.mxu1 %v3783_v21  ;;  %3009 = vmatpush1.bf16.msra.mxu0 %v3783_v21  ;;  %v129_v32 = vand.u32 4294901760, %v85_v19  ;;  %v3795_v33 = vsub.f32 %v77_v6, %v113_v10  ;;  %v3799_v34 = vpack.c.bf16 %v121_v27, %v117_v26  ;;  %v131_v35 = vand.u32 4294901760, %v88_v23  ;;  %v94_v44 = vld [vmem:[#allocation5 + $0x98] sm:$0xff]  ;;  %v91_v45 = vld [vmem:[#allocation5 + $0x80] sm:$0xff]  ;;  %v93_v46 = vld [vmem:[#allocation5 + $0x90] sm:$0xff]  ;;  %p3653_p7 = por %p3652_p6, %p3651_p5 }
  0x51   :  { %5372 = vst [vmem:[#allocation16_spill] sm:$0xff] %v3785_v22  ;;  %2915 = vmatprep.subr.bf16.mxu1 %v3785_v22  ;;  %3011 = vmatprep.subr.bf16.mxu0 %v3785_v22  ;;  %v135_v36 = vand.u32 4294901760, %v90_v24  ;;  %v3801_v40 = vsub.f32 %v80_v8, %v115_v11  ;;  %v3803_v41 = vsub.f32 %v82_v9, %v119_v12  ;;  %v96_v51 = vld [vmem:[#allocation5 + $0xa8] sm:$0xff]  ;;  %v133_v53 = vand.u32 4294901760, %v87_v37  ;;  %v98_v60 = vld [vmem:[#allocation5 + $0xb8] sm:$0xff]  ;;  %v95_v61 = vld [vmem:[#allocation5 + $0xa0] sm:$0xff] }
  0x52   :  { %5373 = vst [vmem:[#allocation17_spill] sm:$0xff] %v3799_v34  ;;  %v3805_v42 = vsub.f32 %v79_v13, %v117_v26  ;;  %v3807_v43 = vpack.c.bf16 %v127_v30, %v123_v28  ;;  %v3809_v47 = vsub.f32 %v81_v14, %v121_v27  ;;  %v3811_v48 = vsub.f32 %v84_v15, %v123_v28  ;;  %v97_v3 = vld [vmem:[#allocation5 + $0xb0] sm:$0xff]  ;;  %v100_v4 = vld [vmem:[#allocation5 + $0xc8] sm:$0xff]  ;;  %v102_v5 = vld [vmem:[#allocation5 + $0xd8] sm:$0xff]  ;;  %p3654_p8 = pnand %p3653_p7, %p3647_p4 }
  0x53   :  { %v3813_v49 = vsub.f32 %v86_v17, %v127_v30  ;;  %v3815_v50 = vpack.c.bf16 %v129_v32, %v125_v31  ;;  %v3819_v52 = vsub.f32 %v83_v18, %v125_v31  ;;  %v137_v54 = vand.u32 4294901760, %v89_v38  ;;  %v99_v10 = vld [vmem:[#allocation5 + $0xc0] sm:$0xff]  ;;  %v101_v15 = vld [vmem:[#allocation5 + $0xd0] sm:$0xff]  ;;  %v106_v31 = vld [vmem:[#allocation5 + $0xf8] sm:$0xff] }
  0x54   :  { %5374 = vst [vmem:[#allocation18_spill] sm:$0xff] %v3805_v42  ;;  %5375 = vst [vmem:[#allocation19_spill] sm:$0xff] %v3807_v43  ;;  %2917 = vmatpush1.bf16.msra.mxu1 %v3799_v34  ;;  %3013 = vmatpush1.bf16.msra.mxu0 %v3799_v34  ;;  %v139_v55 = vand.u32 4294901760, %v92_v39  ;;  %v3823_v56 = vpack.c.bf16 %v135_v36, %v131_v35  ;;  %v143_v57 = vand.u32 4294901760, %v94_v44  ;;  %v141_v58 = vand.u32 4294901760, %v91_v45 }
  0x55   :  { %5376 = vst [vmem:[#allocation20_spill] sm:$0xff] %v3809_v47  ;;  %5377 = vst [vmem:[#allocation21_spill] sm:$0xff] %v3811_v48  ;;  %2919 = vmatprep.subr.bf16.mxu1 %v3807_v43  ;;  %3015 = vmatprep.subr.bf16.mxu0 %v3807_v43  ;;  %v145_v59 = vand.u32 4294901760, %v93_v46  ;;  %v3825_v62 = vsub.f32 %v85_v19, %v129_v32  ;;  %v3827_v63 = vsub.f32 %v88_v23, %v131_v35  ;;  %v103_v32 = vld [vmem:[#allocation5 + $0xe0] sm:$0xff] }
  0x56   :  { %5378 = vst [vmem:[#allocation22_spill] sm:$0xff] %v3813_v49  ;;  %5379 = vst [vmem:[#allocation23_spill] sm:$0xff] %v3815_v50  ;;  %v3829_v1 = vsub.f32 %v90_v24, %v135_v36  ;;  %v147_v2 = vand.u32 4294901760, %v96_v51  ;;  %v3831_v6 = vpack.c.bf16 %v137_v54, %v133_v53  ;;  %v3833_v7 = vsub.f32 %v87_v37, %v133_v53  ;;  %v104_v24 = vld [vmem:[#allocation5 + $0xe8] sm:$0xff] }
  0x57   :  { %5380 = vst [vmem:[#allocation24_spill] sm:$0xff] %v3819_v52  ;;  %5381 = vst [vmem:[#allocation25_spill] sm:$0xff] %v3823_v56  ;;  %v3835_v8 = vsub.f32 %v89_v38, %v137_v54  ;;  %v3837_v9 = vsub.f32 %v92_v39, %v139_v55  ;;  %v3841_v11 = vpack.c.bf16 %v143_v57, %v139_v55  ;;  %v151_v13 = vand.u32 4294901760, %v98_v60  ;;  %v105_v39 = vld [vmem:[#allocation5 + $0xf0] sm:$0xff] }
  0x58   :  { %5382 = vst [vmem:[#allocation26_spill] sm:$0xff] %v3825_v62  ;;  %5383 = vst [vmem:[#allocation27_spill] sm:$0xff] %v3831_v6  ;;  %2921 = vmatpush1.bf16.msra.mxu1 %v3815_v50  ;;  %3017 = vmatpush1.bf16.msra.mxu0 %v3815_v50  ;;  %v3843_v12 = vsub.f32 %v94_v44, %v143_v57  ;;  %v149_v14 = vand.u32 4294901760, %v95_v61  ;;  %v3847_v17 = vpack.c.bf16 %v145_v59, %v141_v58  ;;  %v73_v44 = vld [vmem:[#allocation2] sm:$0xff] }
  0x59   :  { %5384 = vst [vmem:[#allocation28_spill] sm:$0xff] %v3841_v11  ;;  %2923 = vmatprep.subr.bf16.mxu1 %v3823_v56  ;;  %3019 = vmatprep.subr.bf16.mxu0 %v3823_v56  ;;  %v153_v18 = vand.u32 4294901760, %v97_v3  ;;  %v155_v19 = vand.u32 4294901760, %v100_v4  ;;  %v159_v23 = vand.u32 4294901760, %v102_v5  ;;  %v3849_v26 = vsub.f32 %v91_v45, %v141_v58 }
  0x5a   :  { %5385 = vst [vmem:[#allocation29_spill] sm:$0xff] %v3847_v17  ;;  %v3851_v27 = vsub.f32 %v93_v46, %v145_v59  ;;  %v3853_v28 = vsub.f32 %v96_v51, %v147_v2  ;;  %v157_v30 = vand.u32 4294901760, %v99_v10  ;;  %v3855_v35 = vpack.c.bf16 %v151_v13, %v147_v2 }
  0x5b   :  { %v3857_v36 = vsub.f32 %v98_v60, %v151_v13  ;;  %v3859_v37 = vsub.f32 %v95_v61, %v149_v14  ;;  %v161_v38 = vand.u32 4294901760, %v101_v15  ;;  %v3863_v45 = vpack.c.bf16 %v153_v18, %v149_v14 }
  0x5c   :  { %5386 = vst [vmem:[#allocation30_spill] sm:$0xff] %v3855_v35  ;;  %2925 = vmatpush1.bf16.msra.mxu1 %v3831_v6  ;;  %3021 = vmatpush1.bf16.msra.mxu0 %v3831_v6  ;;  %v3865_v46 = vsub.f32 %v97_v3, %v153_v18  ;;  %v3867_v51 = vpack.c.bf16 %v159_v23, %v155_v19  ;;  %v163_v53 = vand.u32 4294901760, %v104_v24  ;;  %v167_v57 = vand.u32 4294901760, %v106_v31 }
  0x5d   :  { %5387 = vst [vmem:[#allocation31_spill] sm:$0xff] %v3863_v45  ;;  %2927 = vmatprep.subr.bf16.mxu1 %v3841_v11  ;;  %3023 = vmatprep.subr.bf16.mxu0 %v3841_v11  ;;  %v3871_v54 = vsub.f32 %v100_v4, %v155_v19  ;;  %v3873_v55 = vsub.f32 %v102_v5, %v159_v23  ;;  %v165_v58 = vand.u32 4294901760, %v103_v32  ;;  %v169_v59 = vand.u32 4294901760, %v105_v39 }
  0x5e   :  { %5388 = vst [vmem:[#allocation32_spill] sm:$0xff] %v3865_v46  ;;  %5389 = vst [vmem:[#allocation33_spill] sm:$0xff] %v3867_v51  ;;  %v228_v60 = vand.u32 4294901760, %v3781_v20  ;;  %v240_v61 = vand.u32 4294901760, %v3788_v25  ;;  %v3877_v2 = vand.u32 4294901760, %v73_v44  ;;  %v3879_v3 = vpack.c.bf16 %v161_v38, %v157_v30 }
  0x5f   :  { %5390 = vst [vmem:[#allocation34_spill] sm:$0xff] %v3871_v54  ;;  %v3881_v13 = vsub.f32 %v99_v10, %v157_v30  ;;  %v3883_v14 = vsub.f32 %v101_v15, %v161_v38  ;;  %v3885_v18 = vsub.f32 %v104_v24, %v163_v53  ;;  %v3889_v4 = vpack.c.bf16 %v167_v57, %v163_v53 }
  0x60   :  { %5391 = vst [vmem:[#allocation35_spill] sm:$0xff] %v3879_v3  ;;  %2929 = vmatpush1.bf16.msra.mxu1 %v3847_v17  ;;  %3025 = vmatpush1.bf16.msra.mxu0 %v3847_v17  ;;  %v229_v5 = vsub.f32 %v3781_v20, %v228_v60  ;;  %v241_v19 = vsub.f32 %v3788_v25, %v240_v61  ;;  %v234_v23 = vand.u32 4294901760, %v3792_v29  ;;  %v246_v24 = vand.u32 4294901760, %v3795_v33 }
  0x61   :  { %5392 = vst [vmem:[#allocation36_spill] sm:$0xff] %v3889_v4  ;;  %2931 = vmatprep.subr.bf16.mxu1 %v3855_v35  ;;  %3027 = vmatprep.subr.bf16.mxu0 %v3855_v35  ;;  %v3896_v10 = vsub.f32 %v106_v31, %v167_v57  ;;  %v3899_v15 = vsub.f32 %v73_v44, %v3877_v2  ;;  %v252_v30 = vand.u32 4294901760, %v3801_v40  ;;  %v264_v17 = vand.u32 4294901760, %v3803_v41 }
  0x62   :  { %v3903_v38 = vpack.c.bf16 %v169_v59, %v165_v58  ;;  %v3905_v53 = vsub.f32 %v103_v32, %v165_v58  ;;  %v235_v0 = vsub.f32 %v3792_v29, %v234_v23  ;;  %v230_v11 = vand.u32 4294901760, %v229_v5 }
  0x63   :  { %5393 = vst [vmem:[#allocation37_spill] sm:$0xff] %v3899_v15  ;;  %v242_v6 = vand.u32 4294901760, %v241_v19  ;;  %v206_v31 = vand.u32 4294901760, %v3899_v15  ;;  %v247_v57 = vsub.f32 %v3795_v33, %v246_v24  ;;  %v3913_v44 = vsub.f32 %v105_v39, %v169_v59 }
  0x64   :  { %5394 = vst [vmem:[#allocation38_spill] sm:$0xff] %v3903_v38  ;;  %2933 = vmatpush1.bf16.msra.mxu1 %v3863_v45  ;;  %3029 = vmatpush1.bf16.msra.mxu0 %v3863_v45  ;;  %v253_v35 = vsub.f32 %v3801_v40, %v252_v30  ;;  %v265_v32 = vsub.f32 %v3803_v41, %v264_v17  ;;  %v236_v19 = vand.u32 4294901760, %v235_v0  ;;  %v258_v56 = vand.u32 4294901760, %v3805_v42 }
  0x65   :  { %2935 = vmatprep.subr.bf16.mxu1 %v3867_v51  ;;  %3031 = vmatprep.subr.bf16.mxu0 %v3867_v51  ;;  %v3038_v58 = vpack.c.bf16 %v240_v61, %v228_v60  ;;  %v207_v5 = vsub.f32 %v3899_v15, %v206_v31  ;;  %v248_v50 = vand.u32 4294901760, %v247_v57  ;;  %v270_v43 = vand.u32 4294901760, %v3809_v47 }
  0x66   :  { %v276_v39 = vand.u32 4294901760, %v3811_v48  ;;  %v288_v59 = vand.u32 4294901760, %v3813_v49  ;;  %v2942_v45 = vpack.c.bf16 %v242_v6, %v230_v11  ;;  %v3040_v34 = vpack.c.bf16 %v246_v24, %v234_v23 }
  0x67   :  { %v259_v22 = vsub.f32 %v3805_v42, %v258_v56  ;;  %v282_v21 = vand.u32 4294901760, %v3819_v52  ;;  %v254_v0 = vand.u32 4294901760, %v253_v35  ;;  %v266_v60 = vand.u32 4294901760, %v265_v32 }
  0x68   :  { %2937 = vmatpush1.bf16.msra.mxu1 %v3879_v3  ;;  %3033 = vmatpush1.bf16.msra.mxu0 %v3879_v3  ;;  %v271_v61 = vsub.f32 %v3809_v47, %v270_v43  ;;  %v294_v57 = vand.u32 4294901760, %v3825_v62  ;;  %v3042_v6 = vpack.c.bf16 %v264_v17, %v252_v30  ;;  %v277_v11 = vsub.f32 %v3811_v48, %v276_v39 }
  0x69   :  { %2939 = vmatprep.subr.bf16.mxu1 %v3889_v4  ;;  %3035 = vmatprep.subr.bf16.mxu0 %v3889_v4  ;;  %v289_v23 = vsub.f32 %v3813_v49, %v288_v59  ;;  %v208_v24 = vand.u32 4294901760, %v207_v5  ;;  %v2944_v15 = vpack.c.bf16 %v248_v50, %v236_v19  ;;  %v283_v51 = vsub.f32 %v3819_v52, %v282_v21 }
  0x6a   :  { %v295_v35 = vsub.f32 %v3825_v62, %v294_v57  ;;  %v260_v32 = vand.u32 4294901760, %v259_v22  ;;  %v272_v3 = vand.u32 4294901760, %v271_v61  ;;  %v300_v47 = vand.u32 4294901760, %v3827_v63 }
  0x6b   :  { %v312_v42 = vand.u32 4294901760, %v3829_v1  ;;  %v2946_v17 = vpack.c.bf16 %v266_v60, %v254_v0  ;;  %v3044_v30 = vpack.c.bf16 %v270_v43, %v258_v56  ;;  %v278_v4 = vand.u32 4294901760, %v277_v11 }
  0x6c   :  { %2941 = vmatpush1.bf16.msra.mxu1 %v3903_v38  ;;  %3037 = vmatpush1.bf16.msra.mxu0 %v3903_v38  ;;  %v306_v5 = vand.u32 4294901760, %v3833_v7  ;;  %v290_v50 = vand.u32 4294901760, %v289_v23  ;;  %v301_v19 = vsub.f32 %v3827_v63, %v300_v47  ;;  %v318_v61 = vand.u32 4294901760, %v3835_v8 }
  0x6d   :  { %2943 = vmatprep.subr.bf16.mxu1 %v2942_v45  ;;  %3039 = vmatprep.subr.bf16.mxu0 %v3038_v58  ;;  %v313_v22 = vsub.f32 %v3829_v1, %v312_v42  ;;  %v3046_v62 = vpack.c.bf16 %v288_v59, %v276_v39  ;;  %v284_v52 = vand.u32 4294901760, %v283_v51  ;;  %v296_v49 = vand.u32 4294901760, %v295_v35 }
  0x6e   :  { %v324_v48 = vand.u32 4294901760, %v3837_v9  ;;  %v2948_v43 = vpack.c.bf16 %v272_v3, %v260_v32  ;;  %v3048_v56 = vpack.c.bf16 %v294_v57, %v282_v21  ;;  %v302_v0 = vand.u32 4294901760, %v301_v19 }
  0x6f   :  { %209 = vmatmul.mubr.f32.vlgmr.msra.gmra.mrb[0].mxu1 %v208_v24  ;;  %710 = vmatmul.mubr.f32.vlgmr.msra.gmra.mrb[0].mxu0 %v206_v31  ;;  %v307_v45 = vsub.f32 %v3833_v7, %v306_v5  ;;  %v314_v58 = vand.u32 4294901760, %v313_v22  ;;  %v319_v60 = vsub.f32 %v3835_v8, %v318_v61  ;;  %v336_v11 = vand.u32 4294901760, %v3843_v12 }
  0x70   :  { %2945 = vmatpush1.bf16.msra.mxu1 %v2944_v15  ;;  %3041 = vmatpush1.bf16.msra.mxu0 %v3040_v34  ;;  %v330_v39 = vand.u32 4294901760, %v3849_v26  ;;  %v2950_v51 = vpack.c.bf16 %v290_v50, %v278_v4  ;;  %v325_v59 = vsub.f32 %v3837_v9, %v324_v48  ;;  %v342_v3 = vand.u32 4294901760, %v3851_v27 }
  0x71   :  { %2947 = vmatprep.subr.bf16.mxu1 %v2946_v17  ;;  %3043 = vmatprep.subr.bf16.mxu0 %v3042_v6  ;;  %v348_v21 = vand.u32 4294901760, %v3853_v28  ;;  %v2952_v31 = vpack.c.bf16 %v296_v49, %v284_v52  ;;  %v337_v15 = vsub.f32 %v3843_v12, %v336_v11  ;;  %v5395_v57 = vmov 0.0  }
  0x72   :  { %v331_v34 = vsub.f32 %v3849_v26, %v330_v39  ;;  %214 = vmatprep.mubr.f32.mxu1 %v5395_v57  ;;  %715 = vmatprep.mubr.f32.mxu0 %v5395_v57  ;;  %v3050_v23 = vpack.c.bf16 %v312_v42, %v300_v47  ;;  %v308_v24 = vand.u32 4294901760, %v307_v45  ;;  %v343_v6 = vsub.f32 %v3851_v27, %v342_v3 }
  0x73   :  { %v349_v4 = vsub.f32 %v3853_v28, %v348_v21  ;;  %v2954_v35 = vpack.c.bf16 %v314_v58, %v302_v0  ;;  %v320_v32 = vand.u32 4294901760, %v319_v60  ;;  %v360_v49 = vand.u32 4294901760, %v3857_v36 }
  0x74   :  { %2949 = vmatpush1.bf16.msra.mxu1 %v2948_v43  ;;  %3045 = vmatpush1.bf16.msra.mxu0 %v3044_v30  ;;  %v354_v52 = vand.u32 4294901760, %v3859_v37  ;;  %v326_v17 = vand.u32 4294901760, %v325_v59  ;;  %v338_v50 = vand.u32 4294901760, %v337_v15  ;;  %v366_v19 = vand.u32 4294901760, %v3865_v46 }
  0x75   :  { %2951 = vmatprep.subr.bf16.mxu1 %v2950_v51  ;;  %3047 = vmatprep.subr.bf16.mxu0 %v3046_v62  ;;  %v372_v42 = vand.u32 4294901760, %v3871_v54  ;;  %v3052_v47 = vpack.c.bf16 %v318_v61, %v306_v5  ;;  %v332_v22 = vand.u32 4294901760, %v331_v34  ;;  %v344_v45 = vand.u32 4294901760, %v343_v6 }
  0x76   :  { %v361_v43 = vsub.f32 %v3857_v36, %v360_v49  ;;  %v350_v30 = vand.u32 4294901760, %v349_v4  ;;  %v355_v0 = vsub.f32 %v3859_v37, %v354_v52  ;;  %v367_v58 = vsub.f32 %v3865_v46, %v366_v19  ;;  %v74_v4 = vld [vmem:[#allocation2 + $0x8] sm:$0xff] }
  0x77   :  { %v373_v60 = vsub.f32 %v3871_v54, %v372_v42  ;;  %v2956_v62 = vpack.c.bf16 %v320_v32, %v308_v24  ;;  %v384_v59 = vand.u32 4294901760, %v3873_v55  ;;  %v378_v15 = vand.u32 4294901760, %v3881_v13 }
  0x78   :  { %2953 = vmatpush1.bf16.msra.mxu1 %v2952_v31  ;;  %3049 = vmatpush1.bf16.msra.mxu0 %v3048_v56  ;;  %v362_v51 = vand.u32 4294901760, %v361_v43  ;;  %v2958_v5 = vpack.c.bf16 %v338_v50, %v326_v17  ;;  %v3054_v61 = vpack.c.bf16 %v336_v11, %v324_v48  ;;  %v390_v34 = vand.u32 4294901760, %v3883_v14 }
  0x79   :  { %2955 = vmatprep.subr.bf16.mxu1 %v2954_v35  ;;  %3051 = vmatprep.subr.bf16.mxu0 %v3050_v23  ;;  %v396_v6 = vand.u32 4294901760, %v3885_v18  ;;  %v2960_v38 = vpack.c.bf16 %v344_v45, %v332_v22  ;;  %v3056_v46 = vpack.c.bf16 %v342_v3, %v330_v39  ;;  %v3058_v54 = vpack.c.bf16 %v360_v49, %v348_v21 }
  0x7a   :  { %v385_v56 = vsub.f32 %v3873_v55, %v384_v59  ;;  %v2962_v31 = vpack.c.bf16 %v362_v51, %v350_v30  ;;  %v356_v24 = vand.u32 4294901760, %v355_v0  ;;  %v368_v32 = vand.u32 4294901760, %v367_v58 }
  0x7b   :  { %v374_v43 = vand.u32 4294901760, %v373_v60  ;;  %v379_v23 = vsub.f32 %v3881_v13, %v378_v15  ;;  %v391_v48 = vsub.f32 %v3883_v14, %v390_v34  ;;  %v408_v11 = vand.u32 4294901760, %v3896_v10 }
  0x7c   :  { %2957 = vmatpush1.bf16.msra.mxu1 %v2956_v62  ;;  %3053 = vmatpush1.bf16.msra.mxu0 %v3052_v47  ;;  %v3974_v35 = vand.u32 4294901760, %v74_v4  ;;  %v386_v39 = vand.u32 4294901760, %v385_v56  ;;  %v397_v3 = vsub.f32 %v3885_v18, %v396_v6  ;;  %v402_v21 = vand.u32 4294901760, %v3905_v53 }
  0x7d   :  { %2959 = vmatprep.subr.bf16.mxu1 %v2958_v5  ;;  %3055 = vmatprep.subr.bf16.mxu0 %v3054_v61  ;;  %v414_v49 = vand.u32 4294901760, %v3913_v44  ;;  %v409_v17 = vsub.f32 %v3896_v10, %v408_v11  ;;  %v3060_v47 = vpack.c.bf16 %v366_v19, %v354_v52  ;;  %v2964_v30 = vpack.c.bf16 %v368_v32, %v356_v24  ;;  %v3987_v52 = vld [vmem:[#allocation7 + $0x8] sm:$0xff]  ;;  %v3992_v24 = vld [vmem:[#allocation7] sm:$0xff] }
  0x7e   :  { %v3981_v50 = vsub.f32 %v74_v4, %v3974_v35  ;;  %v403_v22 = vsub.f32 %v3905_v53, %v402_v21  ;;  %v380_v0 = vand.u32 4294901760, %v379_v23  ;;  %v392_v58 = vand.u32 4294901760, %v391_v48  ;;  %v3997_v23 = vld [vmem:[#allocation7 + $0x28] sm:$0xff]  ;;  %v3999_v48 = vld [vmem:[#allocation7 + $0x38] sm:$0xff] }
  0x7f   :  { %v415_v45 = vsub.f32 %v3913_v44, %v414_v49  ;;  %v2966_v62 = vpack.c.bf16 %v386_v39, %v374_v43  ;;  %v3062_v51 = vpack.c.bf16 %v384_v59, %v372_v42  ;;  %v398_v5 = vand.u32 4294901760, %v397_v3  ;;  %v3994_v42 = vld [vmem:[#allocation7 + $0x10] sm:$0xff]  ;;  %v4001_v39 = vld [vmem:[#allocation7 + $0x20] sm:$0xff] }
  0x80   :  { %2961 = vmatpush1.bf16.msra.mxu1 %v2960_v38  ;;  %3057 = vmatpush1.bf16.msra.mxu0 %v3056_v46  ;;  %v217_v60 = vand.u32 4294901760, %v3981_v50  ;;  %v410_v61 = vand.u32 4294901760, %v409_v17  ;;  %v404_v19 = vand.u32 4294901760, %v403_v22  ;;  %v3990_v46 = vld [vmem:[#allocation7 + $0x18] sm:$0xff]  ;;  %v2968_v38 = vpack.c.bf16 %v392_v58, %v380_v0  ;;  %v4006_v17 = vld [vmem:[#allocation7 + $0x30] sm:$0xff]  ;;  %v4028_v0 = vld [vmem:[#allocation7 + $0x40] sm:$0xff] }
  0x81   :  { %2963 = vmatprep.subr.bf16.mxu1 %v2962_v31  ;;  %3059 = vmatprep.subr.bf16.mxu0 %v3058_v54  ;;  %v416_v56 = vand.u32 4294901760, %v415_v45  ;;  %v3064_v31 = vpack.c.bf16 %v390_v34, %v378_v15  ;;  %v3066_v32 = vpack.c.bf16 %v408_v11, %v396_v6  ;;  %v5194_v43 = vand.u32 4294901760, %v3987_v52 }
  0x82   :  { %v218_v4 = vsub.f32 %v3981_v50, %v217_v60  ;;  %719 = vmatmul.mubr.f32.gmra.mrb[2].mxu0 %v217_v60  ;;  %v2970_v59 = vpack.c.bf16 %v410_v61, %v398_v5  ;;  %v3068_v3 = vpack.c.bf16 %v414_v49, %v402_v21  ;;  %v2974_v15 = vpack.c.bf16 %v3788_v25, %v3781_v20  ;;  %v4042_v5 = vld [vmem:[#allocation7 + $0x50] sm:$0xff]  ;;  %v4044_v61 = vld [vmem:[#allocation7 + $0x68] sm:$0xff] }
  0x83   :  { %885 = vmatprep.mubr.f32.mxu0 %v5395_v57  ;;  %v5188_v34 = vand.u32 4294901760, %v3990_v46  ;;  %v2972_v6 = vpack.c.bf16 %v416_v56, %v404_v19  ;;  %v4014_v11 = vsub.f32 %v3987_v52, %v5194_v43  ;;  %v5187_v22 = vand.u32 4294901760, %v3992_v24  ;;  %v5407_v43 = vld [vmem:[#allocation15_spill] sm:$0xff] }
  0x84   :  { %2965 = vmatpush1.bf16.msra.mxu1 %v2964_v30  ;;  %3061 = vmatpush1.bf16.msra.mxu0 %v3060_v47  ;;  %v219_v54 = vand.u32 4294901760, %v218_v4  ;;  %v4008_v47 = vld [vmem:[#allocation7 + $0x48] sm:$0xff]  ;;  %v5186_v21 = vand.u32 4294901760, %v3994_v42  ;;  %v5184_v25 = vand.u32 4294901760, %v3997_v23  ;;  %v5182_v49 = vand.u32 4294901760, %v3999_v48  ;;  %v4026_v30 = vld [vmem:[#allocation7 + $0x58] sm:$0xff] }
  0x85   :  { %2967 = vmatprep.subr.bf16.mxu1 %v2966_v62  ;;  %3063 = vmatprep.subr.bf16.mxu0 %v3062_v51  ;;  %v4021_v20 = vsub.f32 %v3990_v46, %v5188_v34  ;;  %v5183_v45 = vand.u32 4294901760, %v4001_v39  ;;  %v4033_v58 = vsub.f32 %v3992_v24, %v5187_v22  ;;  %v5185_v62 = vand.u32 4294901760, %v4006_v17  ;;  %v4085_v34 = vld [vmem:[#allocation7 + $0x88] sm:$0xff] }
  0x86   :  { %220 = vmatmul.mubr.f32.gmra.mrb[2].mxu1 %v219_v54  ;;  %v4038_v60 = vsub.f32 %v3994_v42, %v5186_v21  ;;  %v5193_v51 = vand.u32 4294901760, %v4008_v47  ;;  %v4049_v4 = vsub.f32 %v3997_v23, %v5184_v25  ;;  %v4054_v19 = vsub.f32 %v3999_v48, %v5182_v49 }
  0x87   :  { %450 = vmatprep.mubr.f32.mxu1 %v5395_v57  ;;  %5396 = vst [vmem:[#allocation39_spill] sm:$0xff] %v4033_v58  ;;  %v4059_v56 = vsub.f32 %v4001_v39, %v5183_v45  ;;  %v4068_v54 = vsub.f32 %v4006_v17, %v5185_v62  ;;  %v5189_v49 = vand.u32 4294901760, %v4028_v0  ;;  %v4077_v45 = vld [vmem:[#allocation7 + $0x70] sm:$0xff]  ;;  %v2976_v25 = vpack.c.bf16 %v3795_v33, %v3792_v29 }
  0x88   :  { %2969 = vmatpush1.bf16.msra.mxu1 %v2968_v38  ;;  %3065 = vmatpush1.bf16.msra.mxu0 %v3064_v31  ;;  %5397 = vst [vmem:[#allocation40_spill] sm:$0xff] %v4038_v60  ;;  %5398 = vst [vmem:[#allocation41_spill] sm:$0xff] %v4049_v4  ;;  %v4061_v38 = vld [vmem:[#allocation7 + $0x78] sm:$0xff]  ;;  %v4063_v31 = vld [vmem:[#allocation7 + $0x60] sm:$0xff]  ;;  %v2978_v62 = vpack.c.bf16 %v3803_v41, %v3801_v40  ;;  %v5191_v21 = vand.u32 4294901760, %v4042_v5  ;;  %v5192_v22 = vand.u32 4294901760, %v4044_v61 }
  0x89   :  { %2971 = vmatprep.subr.bf16.mxu1 %v2970_v59  ;;  %3067 = vmatprep.subr.bf16.mxu0 %v3066_v32  ;;  %5399 = vst [vmem:[#allocation42_spill] sm:$0xff] %v4054_v19  ;;  %v5190_v59 = vand.u32 4294901760, %v4026_v30  ;;  %v4074_v32 = vsub.f32 %v4008_v47, %v5193_v51  ;;  %v4096_v29 = vsub.f32 %v4028_v0, %v5189_v49  ;;  %v5199_v33 = vand.u32 4294901760, %v4061_v38  ;;  %v4100_v41 = vld [vmem:[#allocation7 + $0x98] sm:$0xff]  ;;  %v4113_v49 = vld [vmem:[#allocation7 + $0x80] sm:$0xff] }
  0x8a   :  { %v5201_v40 = vand.u32 4294901760, %v4063_v31  ;;  %v5205_v51 = vand.u32 4294901760, %v4085_v34 }
  0x8b   :  { %5400 = vst [vmem:[#allocation43_spill] sm:$0xff] %v4074_v32  ;;  %5402 = vst [vmem:[#allocation45_spill] sm:$0xff] %v4096_v29  ;;  %v5410_v29 = vand.u32 4294901760, %v4077_v45 }
  0x8c   :  { %2973 = vmatpush1.bf16.msra.mxu1 %v2972_v6  ;;  %3069 = vmatpush1.bf16.msra.mxu0 %v3068_v3  ;;  %v4091_v6 = vsub.f32 %v4026_v30, %v5190_v59  ;;  %v4110_v3 = vsub.f32 %v4044_v61, %v5192_v22  ;;  %v4115_v59 = vld [vmem:[#allocation7 + $0x90] sm:$0xff]  ;;  %v4127_v22 = vsub.f32 %v4063_v31, %v5201_v40 }
  0x8d   :  { %2975 = vmatprep.subr.bf16.mxu1 %v2974_v15  ;;  %3071 = vmatprep.subr.bf16.mxu0 %v3779_v16  ;;  %v4105_v16 = vsub.f32 %v4042_v5, %v5191_v21  ;;  %v4122_v21 = vsub.f32 %v4061_v38, %v5199_v33  ;;  %v5408_v15 = vld [vmem:[#allocation18_spill] sm:$0xff]  ;;  %v5204_v33 = vand.u32 4294901760, %v4100_v41  ;;  %v5412_v40 = vld [vmem:[#allocation21_spill] sm:$0xff] }
  0x8e   :  { %5401 = vst [vmem:[#allocation44_spill] sm:$0xff] %v4091_v6  ;;  %5404 = vst [vmem:[#allocation47_spill] sm:$0xff] %v4110_v3  ;;  %v5409_v3 = vld [vmem:[#allocation20_spill] sm:$0xff]  ;;  %v4136_v6 = vsub.f32 %v4077_v45, %v5410_v29  ;;  %v5415_v29 = vld [vmem:[#allocation17_spill] sm:$0xff] }
  0x8f   :  { %5403 = vst [vmem:[#allocation46_spill] sm:$0xff] %v4105_v16  ;;  %452 = vmatmul.mubr.f32.vlgmr.msra.gmra.mrb[0].mxu1 %v3877_v2  ;;  %887 = vmatmul.mubr.f32.vlgmr.msra.gmra.mrb[0].mxu0 %v3877_v2  ;;  %5405 = vst [vmem:[#allocation48_spill] sm:$0xff] %v4122_v21  ;;  %v2980_v16 = vpack.c.bf16 %v5409_v3, %v5408_v15  ;;  %v5411_v21 = vld [vmem:[#allocation16_spill] sm:$0xff]  ;;  %v1083_v3 = vand.u32 4294901760, %v4115_v59  ;;  %v5417_v15 = vld [vmem:[#allocation26_spill] sm:$0xff] }
  0x90   :  { %5406 = vst [vmem:[#allocation49_spill] sm:$0xff] %v4127_v22  ;;  %2977 = vmatpush1.bf16.msra.mxu1 %v2976_v25  ;;  %3073 = vmatpush1.bf16.msra.mxu0 %v5407_v43  ;;  %v5413_v22 = vld [vmem:[#allocation22_spill] sm:$0xff]  ;;  %v4145_v43 = vsub.f32 %v4085_v34, %v5205_v51  ;;  %v5207_v25 = vand.u32 4294901760, %v4113_v49  ;;  %v5418_v51 = vld [vmem:[#allocation19_spill] sm:$0xff] }
  0x91   :  { %2979 = vmatprep.subr.bf16.mxu1 %v2978_v62  ;;  %3075 = vmatprep.subr.bf16.mxu0 %v5411_v21  ;;  %v2982_v32 = vpack.c.bf16 %v5413_v22, %v5412_v40  ;;  %v4154_v21 = vsub.f32 %v4100_v41, %v5204_v33  ;;  %v4166_v62 = vsub.f32 %v4115_v59, %v1083_v3  ;;  %v5416_v40 = vld [vmem:[#allocation24_spill] sm:$0xff]  ;;  %v1040_v59 = vld [vmem:[#allocation7 + $0xd8] sm:$0xff] }
  0x92   :  { %457 = vmatprep.mubr.f32.mxu1 %v5395_v57  ;;  %892 = vmatprep.mubr.f32.mxu0 %v5395_v57  ;;  %v4161_v22 = vsub.f32 %v4113_v49, %v5207_v25  ;;  %v2984_v33 = vpack.c.bf16 %v5417_v15, %v5416_v40  ;;  %v5419_v25 = vld [vmem:[#allocation23_spill] sm:$0xff]  ;;  %v3004_v40 = vpack.c.bf16 %v3913_v44, %v3905_v53  ;;  %v5431_v15 = vand.u32 4294901760, %v3987_v52 }
  0x93   :  { %5414 = vst [vmem:[#allocation15_spill] sm:$0xff] %v4154_v21  ;;  %459 = vmatmul.mubr.f32.gmra.mrb[2].mxu1 %v3974_v35  ;;  %894 = vmatmul.mubr.f32.gmra.mrb[2].mxu0 %v3974_v35  ;;  %v2986_v21 = vpack.c.bf16 %v3829_v1, %v3827_v63  ;;  %v2992_v63 = vpack.c.bf16 %v3851_v27, %v3849_v26  ;;  %v5422_v1 = vld [vmem:[#allocation28_spill] sm:$0xff]  ;;  %v5427_v26 = vld [vmem:[#allocation31_spill] sm:$0xff]  ;;  %v5437_v53 = vand.u32 4294901760, %v3997_v23  ;;  %v5438_v44 = vand.u32 4294901760, %v3999_v48 }
  0x94   :  { %2981 = vmatpush1.bf16.msra.mxu1 %v2980_v16  ;;  %3077 = vmatpush1.bf16.msra.mxu0 %v5415_v29  ;;  %v2988_v16 = vpack.c.bf16 %v3835_v8, %v3833_v7  ;;  %v5420_v29 = vld [vmem:[#allocation25_spill] sm:$0xff]  ;;  %v5424_v8 = vld [vmem:[#allocation32_spill] sm:$0xff]  ;;  %v3000_v27 = vpack.c.bf16 %v3883_v14, %v3881_v13  ;;  %v5433_v14 = vld [vmem:[#allocation38_spill] sm:$0xff]  ;;  %v5444_v23 = vand.u32 4294901760, %v4008_v47  ;;  %v5445_v48 = vand.u32 4294901760, %v4026_v30 }
  0x95   :  { %2983 = vmatprep.subr.bf16.mxu1 %v2982_v32  ;;  %3079 = vmatprep.subr.bf16.mxu0 %v5418_v51  ;;  %v2990_v32 = vpack.c.bf16 %v3843_v12, %v3837_v9  ;;  %v5421_v51 = vld [vmem:[#allocation27_spill] sm:$0xff]  ;;  %v5423_v7 = vld [vmem:[#allocation29_spill] sm:$0xff]  ;;  %v5425_v9 = vld [vmem:[#allocation30_spill] sm:$0xff]  ;;  %v4222_v52 = vpack.c.bf16 %v5438_v44, %v5437_v53  ;;  %v5450_v47 = vand.u32 4294901760, %v4044_v61  ;;  %v5459_v61 = vand.u32 4294901760, %v4113_v49 }
  0x96   :  { %593 = vmatprep.mubr.f32.mxu1 %v5395_v57  ;;  %996 = vmatprep.mubr.f32.mxu0 %v5395_v57  ;;  %v5426_v12 = vld [vmem:[#allocation34_spill] sm:$0xff]  ;;  %v1038_v49 = vld [vmem:[#allocation7 + $0xc8] sm:$0xff]  ;;  %v1043_v53 = vld [vmem:[#allocation7 + $0xf0] sm:$0xff]  ;;  %v5208_v44 = vand.u32 4294901760, %v4014_v11 }
  0x97   :  { %5439 = vst [vmem:[#allocation20_spill] sm:$0xff] %v4222_v52 }
  0x98   :  { %2985 = vmatpush1.bf16.msra.mxu1 %v2984_v33  ;;  %3081 = vmatpush1.bf16.msra.mxu0 %v5419_v25  ;;  %v2994_v33 = vpack.c.bf16 %v3857_v36, %v3853_v28  ;;  %v2996_v25 = vpack.c.bf16 %v5424_v8, %v3859_v37  ;;  %v5428_v28 = vld [vmem:[#allocation33_spill] sm:$0xff]  ;;  %v3002_v36 = vpack.c.bf16 %v3896_v10, %v3885_v18  ;;  %v5429_v37 = vld [vmem:[#allocation35_spill] sm:$0xff]  ;;  %v5434_v18 = vand.u32 4294901760, %v3992_v24 }
  0x99   :  { %2987 = vmatprep.subr.bf16.mxu1 %v2986_v21  ;;  %3083 = vmatprep.subr.bf16.mxu0 %v5420_v29  ;;  %v2998_v21 = vpack.c.bf16 %v3873_v55, %v5426_v12  ;;  %v5430_v55 = vld [vmem:[#allocation36_spill] sm:$0xff]  ;;  %v5435_v10 = vand.u32 4294901760, %v3994_v42  ;;  %v5441_v24 = vand.u32 4294901760, %v4001_v39  ;;  %v5442_v42 = vand.u32 4294901760, %v4006_v17  ;;  %v1033_v8 = vld [vmem:[#allocation7 + $0xa0] sm:$0xff] }
  0x9a   :  { %v5448_v39 = vand.u32 4294901760, %v4042_v5  ;;  %v5457_v5 = vand.u32 4294901760, %v4100_v41  ;;  %v1035_v41 = vld [vmem:[#allocation7 + $0xb0] sm:$0xff] }
  0x9b   :  { %v4216_v29 = vpack.c.bf16 %v5435_v10, %v5434_v18  ;;  %v1041_v10 = vld [vmem:[#allocation7 + $0xe0] sm:$0xff] }
  0x9c   :  { %2989 = vmatpush1.bf16.msra.mxu1 %v2988_v16  ;;  %3085 = vmatpush1.bf16.msra.mxu0 %v5421_v51  ;;  %v5432_v16 = vand.u32 4294901760, %v3990_v46  ;;  %v5440_v46 = vld [vmem:[#allocation37_spill] sm:$0xff]  ;;  %v4240_v51 = vpack.c.bf16 %v5445_v48, %v5444_v23  ;;  %v5216_v23 = vand.u32 4294901760, %v4033_v58  ;;  %v5219_v48 = vand.u32 4294901760, %v4038_v60 }
  0x9d   :  { %2991 = vmatprep.subr.bf16.mxu1 %v2990_v32  ;;  %3087 = vmatprep.subr.bf16.mxu0 %v5422_v1  ;;  %5436 = vst [vmem:[#allocation18_spill] sm:$0xff] %v4216_v29  ;;  %v4233_v32 = vpack.c.bf16 %v5442_v42, %v5441_v24  ;;  %v1103_v24 = vand.u32 4294901760, %v1041_v10  ;;  %v1107_v42 = vand.u32 4294901760, %v1043_v53 }
  0x9e   :  { %v4208_v13 = vpack.c.bf16 %v5432_v16, %v5431_v15  ;;  %5446 = vst [vmem:[#allocation21_spill] sm:$0xff] %v4240_v51  ;;  %v1042_v15 = vld [vmem:[#allocation7 + $0xe8] sm:$0xff]  ;;  %v1044_v16 = vld [vmem:[#allocation7 + $0xf8] sm:$0xff] }
  0x9f   :  { %5443 = vst [vmem:[#allocation16_spill] sm:$0xff] %v4233_v32  ;;  %v1105_v18 = vand.u32 4294901760, %v1044_v16 }
  0xa0   :  { %2993 = vmatpush1.bf16.msra.mxu1 %v2992_v63  ;;  %3089 = vmatpush1.bf16.msra.mxu0 %v5423_v7  ;;  %v5454_v63 = vand.u32 4294901760, %v4077_v45  ;;  %v1034_v45 = vld [vmem:[#allocation7 + $0xa8] sm:$0xff] }
  0xa1   :  { %2995 = vmatprep.subr.bf16.mxu1 %v2994_v33  ;;  %3091 = vmatprep.subr.bf16.mxu0 %v5425_v9  ;;  %v1085_v7 = vand.u32 4294901760, %v1034_v45  ;;  %v1091_v9 = vand.u32 4294901760, %v1035_v41 }
  0xa4   :  { %2997 = vmatpush1.bf16.msra.mxu1 %v2996_v25  ;;  %3093 = vmatpush1.bf16.msra.mxu0 %v5427_v26  ;;  %v1087_v25 = vand.u32 4294901760, %v1033_v8  ;;  %v1097_v26 = vand.u32 4294901760, %v1040_v59 }
  0xa5   :  { %2999 = vmatprep.subr.bf16.mxu1 %v2998_v21  ;;  %3095 = vmatprep.subr.bf16.mxu0 %v5428_v28  ;;  %v1039_v28 = vld [vmem:[#allocation7 + $0xd0] sm:$0xff] }
  0xa6   :  { %v4285_v21 = vpack.c.bf16 %v1091_v9, %v1087_v25 }
  0xa8   :  { %3001 = vmatpush1.bf16.msra.mxu1 %v3000_v27  ;;  %3097 = vmatpush1.bf16.msra.mxu0 %v5429_v37  ;;  %5462 = vst [vmem:[#allocation25_spill] sm:$0xff] %v4285_v21  ;;  %v1037_v27 = vld [vmem:[#allocation7 + $0xc0] sm:$0xff]  ;;  %v1099_v37 = vand.u32 4294901760, %v1039_v28 }
  0xa9   :  { %3003 = vmatprep.subr.bf16.mxu1 %v3002_v36  ;;  %3099 = vmatprep.subr.bf16.mxu0 %v5430_v55  ;;  %v1095_v36 = vand.u32 4294901760, %v1037_v27 }
  0xab   :  { %v4291_v55 = vpack.c.bf16 %v1099_v37, %v1095_v36 }
  0xac   :  { %3005 = vmatpush1.bf16.msra.mxu1 %v3004_v40  ;;  %3101 = vmatpush1.bf16.msra.mxu0 %v5433_v14  ;;  %v1101_v14 = vand.u32 4294901760, %v1042_v15 }
  0xad   :  { %3103 = vmatprep.subr.bf16.mxu1 %v4208_v13  ;;  %5464 = vst [vmem:[#allocation28_spill] sm:$0xff] %v4291_v55 }
  0xaf   :  { %596 = vmatmul.mubr.f32.vlgmr.msra.gmra.mrb[0].mxu1 %v5440_v46  ;;  %998 = vmatmul.mubr.f32.vlgmr.msra.gmra.mrb[0].mxu0 %v3877_v2  ;;  %v5447_v2 = vand.u32 4294901760, %v4028_v0  ;;  %v5456_v0 = vand.u32 4294901760, %v4085_v34  ;;  %v5209_v46 = vand.u32 4294901760, %v4021_v20 }
  0xb0   :  { %601 = vmatprep.mubr.f32.mxu1 %v5395_v57  ;;  %1003 = vmatprep.mubr.f32.mxu0 %v5395_v57 }
  0xb1   :  { %3105 = vmatpush1.bf16.msra.mxu1 %v4216_v29  ;;  %v4251_v17 = vpack.c.bf16 %v5448_v39, %v5447_v2  ;;  %v4272_v33 = vpack.c.bf16 %v5457_v5, %v5456_v0  ;;  %v4299_v2 = vpack.c.bf16 %v1105_v18, %v1101_v14  ;;  %v1167_v39 = vsub.f32 %v4014_v11, %v5208_v44 }
  0xb2   :  { %3107 = vmatprep.subr.bf16.mxu1 %v4222_v52 }
  0xb3   :  { %604 = vmatmul.mubr.f32.gmra.mrb[2].mxu1 %v3981_v50  ;;  %1005 = vmatmul.mubr.f32.gmra.mrb[2].mxu0 %v3974_v35  ;;  %5449 = vst [vmem:[#allocation22_spill] sm:$0xff] %v4251_v17  ;;  %v5451_v50 = vand.u32 4294901760, %v4061_v38  ;;  %v5453_v35 = vand.u32 4294901760, %v4063_v31  ;;  %5458 = vst [vmem:[#allocation26_spill] sm:$0xff] %v4272_v33  ;;  %v4279_v38 = vpack.c.bf16 %v1083_v3, %v5459_v61  ;;  %v1036_v31 = vld [vmem:[#allocation7 + $0xb8] sm:$0xff]  ;;  %v1093_v3 = vand.u32 4294901760, %v1038_v49 }
  0xb4   :  { %1141 = vmatprep.mubr.f32.mxu1 %v5395_v57  ;;  %2079 = vmatprep.mubr.f32.mxu0 %v5395_v57  ;;  %v1089_v34 = vand.u32 4294901760, %v1036_v31  ;;  %5465 = vst [vmem:[#allocation29_spill] sm:$0xff] %v4299_v2  ;;  %v1168_v0 = vand.u32 4294901760, %v1167_v39  ;;  %v4327_v39 = vsub.f32 %v1035_v41, %v1091_v9 }
  0xb5   :  { %3109 = vmatpush1.bf16.msra.mxu1 %v4233_v32  ;;  %v4258_v30 = vpack.c.bf16 %v5451_v50, %v5450_v47  ;;  %v4265_v1 = vpack.c.bf16 %v5454_v63, %v5453_v35  ;;  %5460 = vst [vmem:[#allocation19_spill] sm:$0xff] %v4279_v38  ;;  %v4289_v40 = vpack.c.bf16 %v1097_v26, %v1093_v3 }
  0xb6   :  { %3111 = vmatprep.subr.bf16.mxu1 %v4240_v51  ;;  %v4283_v12 = vpack.c.bf16 %v1089_v34, %v1085_v7  ;;  %v1179_v47 = vsub.f32 %v4021_v20, %v5209_v46  ;;  %v4307_v50 = vpack.c.bf16 %v1107_v42, %v1103_v24  ;;  %v1173_v35 = vsub.f32 %v4033_v58, %v5216_v23 }
  0xb7   :  { %5452 = vst [vmem:[#allocation17_spill] sm:$0xff] %v4258_v30  ;;  %5455 = vst [vmem:[#allocation24_spill] sm:$0xff] %v4265_v1  ;;  %v1185_v63 = vsub.f32 %v4038_v60, %v5219_v48  ;;  %v5231_v46 = vand.u32 4294901760, %v4049_v4  ;;  %v4323_v48 = vsub.f32 %v1036_v31, %v1089_v34  ;;  %v4339_v23 = vsub.f32 %v1044_v16, %v1105_v18 }
  0xb8   :  { %5461 = vst [vmem:[#allocation23_spill] sm:$0xff] %v4283_v12  ;;  %5463 = vst [vmem:[#allocation27_spill] sm:$0xff] %v4289_v40  ;;  %v1180_v5 = vand.u32 4294901760, %v1179_v47  ;;  %v1174_v61 = vand.u32 4294901760, %v1173_v35  ;;  %v4329_v47 = vsub.f32 %v1038_v49, %v1093_v3  ;;  %v4331_v35 = vsub.f32 %v1040_v59, %v1097_v26  ;;  %v5468_v49 = vld [vmem:[#allocation43_spill] sm:$0xff]  ;;  %v5469_v3 = vld [vmem:[#allocation44_spill] sm:$0xff] }
  0xb9   :  { %3113 = vmatpush1.bf16.msra.mxu1 %v4251_v17  ;;  %5466 = vst [vmem:[#allocation32_spill] sm:$0xff] %v4307_v50  ;;  %v1186_v44 = vand.u32 4294901760, %v1185_v63  ;;  %v4333_v63 = vsub.f32 %v1037_v27, %v1095_v36  ;;  %v4343_v31 = vsub.f32 %v1043_v53, %v1107_v42  ;;  %v1191_v34 = vsub.f32 %v4049_v4, %v5231_v46  ;;  %v5470_v27 = vld [vmem:[#allocation45_spill] sm:$0xff]  ;;  %v5472_v42 = vld [vmem:[#allocation47_spill] sm:$0xff] }
  0xba   :  { %3115 = vmatprep.subr.bf16.mxu1 %v4258_v30  ;;  %v5222_v59 = vand.u32 4294901760, %v5468_v49  ;;  %v5223_v26 = vand.u32 4294901760, %v5469_v3 }
  0xbb   :  { %v1192_v36 = vand.u32 4294901760, %v1191_v34  ;;  %v5473_v34 = vld [vmem:[#allocation48_spill] sm:$0xff] }
  0xbc   :  { %v1215_v18 = vsub.f32 %v5468_v49, %v5222_v59 }
  0xbd   :  { %3117 = vmatpush1.bf16.msra.mxu1 %v4265_v1 }
  0xbe   :  { %3119 = vmatprep.subr.bf16.mxu1 %v4272_v33 }
  0xc1   :  { %3121 = vmatpush1.bf16.msra.mxu1 %v4279_v38  ;;  %v5246_v38 = vand.u32 4294901760, %v4323_v48 }
  0xc2   :  { %3123 = vmatprep.subr.bf16.mxu1 %v4283_v12  ;;  %v4321_v12 = vsub.f32 %v1034_v45, %v1085_v7  ;;  %v4341_v45 = vsub.f32 %v1041_v10, %v1103_v24  ;;  %v4345_v7 = vpack.c.bf16 %v1186_v44, %v1174_v61  ;;  %v1227_v10 = vsub.f32 %v5469_v3, %v5223_v26 }
  0xc3   :  { %v5228_v61 = vand.u32 4294901760, %v5472_v42 }
  0xc5   :  { %3125 = vmatpush1.bf16.msra.mxu1 %v4285_v21  ;;  %v5226_v21 = vand.u32 4294901760, %v4059_v56 }
  0xc6   :  { %3127 = vmatprep.subr.bf16.mxu1 %v4289_v40  ;;  %v5227_v40 = vand.u32 4294901760, %v4054_v19 }
  0xc7   :  { %v1197_v41 = vsub.f32 %v4059_v56, %v5226_v21 }
  0xc9   :  { %3129 = vmatpush1.bf16.msra.mxu1 %v4291_v55  ;;  %v3134_v55 = vpack.c.bf16 %v1180_v5, %v1168_v0  ;;  %v4335_v0 = vsub.f32 %v1039_v28, %v1099_v37  ;;  %v4337_v5 = vsub.f32 %v1042_v15, %v1101_v14  ;;  %v5224_v28 = vand.u32 4294901760, %v5470_v27  ;;  %v5471_v15 = vld [vmem:[#allocation46_spill] sm:$0xff] }
  0xca   :  { %3131 = vmatprep.subr.bf16.mxu1 %v4299_v2  ;;  %v4325_v2 = vsub.f32 %v1033_v8, %v1087_v25  ;;  %v1203_v8 = vsub.f32 %v4054_v19, %v5227_v40  ;;  %v5467_v25 = vand.u32 4294901760, %v4068_v54  ;;  %v5225_v16 = vand.u32 4294901760, %v5471_v15 }
  0xcb   :  { %v1221_v53 = vsub.f32 %v5470_v27, %v5224_v28  ;;  %v1239_v28 = vsub.f32 %v5472_v42, %v5228_v61  ;;  %v5234_v40 = vand.u32 4294901760, %v4136_v6  ;;  %v5254_v17 = vand.u32 4294901760, %v4335_v0 }
  0xcc   :  { %v1209_v9 = vsub.f32 %v4068_v54, %v5467_v25  ;;  %v1204_v37 = vand.u32 4294901760, %v1203_v8  ;;  %v1233_v24 = vsub.f32 %v5471_v15, %v5225_v16  ;;  %v5229_v8 = vand.u32 4294901760, %v5473_v34 }
  0xcd   :  { %3133 = vmatpush1.bf16.msra.mxu1 %v4307_v50  ;;  %v1216_v25 = vand.u32 4294901760, %v1215_v18  ;;  %v1222_v59 = vand.u32 4294901760, %v1221_v53  ;;  %v1240_v53 = vand.u32 4294901760, %v1239_v28 }
  0xce   :  { %3135 = vmatprep.subr.bf16.mxu1 %v3134_v55  ;;  %v1198_v55 = vand.u32 4294901760, %v1197_v41  ;;  %v1210_v14 = vand.u32 4294901760, %v1209_v9  ;;  %v4372_v44 = vpack.c.bf16 %v1204_v37, %v1192_v36  ;;  %v1228_v9 = vand.u32 4294901760, %v1227_v10  ;;  %v5474_v37 = vld [vmem:[#allocation49_spill] sm:$0xff] }
  0xcf   :  { %v1234_v26 = vand.u32 4294901760, %v1233_v24  ;;  %v1251_v36 = vsub.f32 %v5473_v34, %v5229_v8  ;;  %v5230_v16 = vand.u32 4294901760, %v5474_v37  ;;  %v1257_v8 = vsub.f32 %v4136_v6, %v5234_v40 }
  0xd0   :  { %v4379_v41 = vpack.c.bf16 %v1210_v14, %v1198_v55  ;;  %v4388_v21 = vpack.c.bf16 %v1228_v9, %v1216_v25  ;;  %v5235_v55 = vand.u32 4294901760, %v4145_v43  ;;  %v5475_v14 = vld [vmem:[#allocation15_spill] sm:$0xff] }
  0xd1   :  { %v5236_v18 = vand.u32 4294901760, %v5475_v14  ;;  %v4393_v10 = vpack.c.bf16 %v1234_v26, %v1222_v59  ;;  %v1252_v24 = vand.u32 4294901760, %v1251_v36  ;;  %v1245_v61 = vsub.f32 %v5474_v37, %v5230_v16 }
  0xd2   :  { %v1263_v25 = vsub.f32 %v4145_v43, %v5235_v55  ;;  %v5239_v59 = vand.u32 4294901760, %v4161_v22  ;;  %v5240_v36 = vand.u32 4294901760, %v4166_v62  ;;  %v1258_v16 = vand.u32 4294901760, %v1257_v8 }
  0xd3   :  { %v1275_v9 = vsub.f32 %v5475_v14, %v5236_v18  ;;  %v4408_v26 = vpack.c.bf16 %v1252_v24, %v1240_v53  ;;  %v1246_v28 = vand.u32 4294901760, %v1245_v61  ;;  %v5243_v18 = vand.u32 4294901760, %v4321_v12 }
  0xd4   :  { %v1264_v46 = vand.u32 4294901760, %v1263_v25  ;;  %v1269_v40 = vsub.f32 %v4161_v22, %v5239_v59  ;;  %v1281_v55 = vsub.f32 %v4166_v62, %v5240_v36  ;;  %v5247_v53 = vand.u32 4294901760, %v4325_v2 }
  0xd5   :  { %v1276_v50 = vand.u32 4294901760, %v1275_v9  ;;  %v4420_v61 = vpack.c.bf16 %v1258_v16, %v1246_v28  ;;  %v5248_v25 = vand.u32 4294901760, %v4327_v39  ;;  %v1287_v59 = vsub.f32 %v4321_v12, %v5243_v18 }
  0xd6   :  { %v1270_v8 = vand.u32 4294901760, %v1269_v40  ;;  %v1282_v9 = vand.u32 4294901760, %v1281_v55  ;;  %v1299_v36 = vsub.f32 %v4323_v48, %v5246_v38  ;;  %v1293_v33 = vsub.f32 %v4325_v2, %v5247_v53 }
  0xd7   :  { %v4422_v24 = vpack.c.bf16 %v1276_v50, %v1264_v46  ;;  %v1305_v46 = vsub.f32 %v4327_v39, %v5248_v25  ;;  %v5256_v40 = vand.u32 4294901760, %v4329_v47  ;;  %v5253_v50 = vand.u32 4294901760, %v4331_v35 }
  0xd8   :  { %v4439_v16 = vpack.c.bf16 %v1282_v9, %v1270_v8  ;;  %v1288_v55 = vand.u32 4294901760, %v1287_v59  ;;  %v1300_v28 = vand.u32 4294901760, %v1299_v36  ;;  %v1294_v18 = vand.u32 4294901760, %v1293_v33 }
  0xd9   :  { %v1306_v1 = vand.u32 4294901760, %v1305_v46  ;;  %v1311_v38 = vsub.f32 %v4329_v47, %v5256_v40  ;;  %v1323_v53 = vsub.f32 %v4331_v35, %v5253_v50  ;;  %v5255_v25 = vand.u32 4294901760, %v4333_v63 }
  0xda   :  { %v4448_v30 = vpack.c.bf16 %v1300_v28, %v1288_v55  ;;  %v1329_v9 = vsub.f32 %v4335_v0, %v5254_v17  ;;  %v5263_v46 = vand.u32 4294901760, %v4337_v5  ;;  %v5264_v50 = vand.u32 4294901760, %v4339_v23 }
  0xdb   :  { %v4451_v8 = vpack.c.bf16 %v1306_v1, %v1294_v18  ;;  %v1312_v59 = vand.u32 4294901760, %v1311_v38  ;;  %v1324_v36 = vand.u32 4294901760, %v1323_v53  ;;  %v1317_v33 = vsub.f32 %v4333_v63, %v5255_v25 }
  0xdc   :  { %v5265_v55 = vand.u32 4294901760, %v4341_v45  ;;  %v5268_v38 = vand.u32 4294901760, %v4343_v31  ;;  %v1330_v18 = vand.u32 4294901760, %v1329_v9  ;;  %v1335_v53 = vsub.f32 %v4337_v5, %v5263_v46 }
  0xdd   :  { %v4462_v28 = vpack.c.bf16 %v1324_v36, %v1312_v59  ;;  %v1318_v1 = vand.u32 4294901760, %v1317_v33  ;;  %v1347_v17 = vsub.f32 %v4339_v23, %v5264_v50  ;;  %v3166_v46 = vpack.c.bf16 %v4021_v20, %v4014_v11 }
  0xde   :  { %v1341_v25 = vsub.f32 %v4341_v45, %v5265_v55  ;;  %v1353_v59 = vsub.f32 %v4343_v31, %v5268_v38  ;;  %v1336_v33 = vand.u32 4294901760, %v1335_v53  ;;  %v3168_v50 = vpack.c.bf16 %v4038_v60, %v4033_v58 }
  0xdf   :  { %v3160_v36 = vpack.c.bf16 %v1330_v18, %v1318_v1  ;;  %v1348_v40 = vand.u32 4294901760, %v1347_v17  ;;  %v3170_v55 = vpack.c.bf16 %v4054_v19, %v4049_v4 }
  0xe0   :  { %v1342_v9 = vand.u32 4294901760, %v1341_v25  ;;  %v1354_v51 = vand.u32 4294901760, %v1353_v59 }
  0xe1   :  { %v3162_v32 = vpack.c.bf16 %v1348_v40, %v1336_v33 }
  0xe2   :  { %v3164_v52 = vpack.c.bf16 %v1354_v51, %v1342_v9 }
 0x182   :  { %v597_v25 = vpop.f32.mrb[0].mxu1  ;;  %v999_v18 = vpop.f32.mrb[0].mxu0 }
 0x183   :  { %v3486_v51 = vadd.f32 %v999_v18, %v597_v25  ;;  %v599_v17 = vpop.f32.mrb[1].mxu1  ;;  %v1001_v53 = vpop.f32.mrb[1].mxu0 }
 0x184   :  { %v3487_v1 = vadd.f32 %v1001_v53, %v599_v17 }
 0x185   :  { %v4509_v29 = vand.u32 4294901760, %v3486_v51 }
 0x186   :  { %1011 = vst [vmem:[#allocation10] sm:$0xff] %v3487_v1  ;;  %v605_v59 = vpop.f32.mrb[2].mxu1  ;;  %v1006_v33 = vpop.f32.mrb[2].mxu0 }
 0x187   :  { %v4512_v19 = vsub.f32 %v3486_v51, %v4509_v29  ;;  %v3488_v9 = vadd.f32 %v1006_v33, %v605_v59  ;;  %v607_v4 = vpop.f32.mrb[3].mxu1  ;;  %v1008_v38 = vpop.f32.mrb[3].mxu0  ;;  %v1962_v59 = vld [vmem:[#allocation8 + $0x58] sm:$0xff]  ;;  %v1959_v33 = vld [vmem:[#allocation8 + $0x40] sm:$0xff] }
 0x188   :  { %v3489_v60 = vadd.f32 %v1008_v38, %v607_v4 }
 0x189   :  { %v5274_v40 = vand.u32 4294901760, %v4512_v19  ;;  %v4515_v58 = vand.u32 4294901760, %v3488_v9 }
 0x18a   :  { %1012 = vst [vmem:[#allocation10 + $0x20] sm:$0xff] %v3489_v60 }
 0x18b   :  { %v1145_v17 = vsub.f32 %v4512_v19, %v5274_v40  ;;  %v4521_v1 = vsub.f32 %v3488_v9, %v4515_v58  ;;  %v1961_v9 = vld [vmem:[#allocation8 + $0x50] sm:$0xff] }
 0x18d   :  { %v1146_v25 = vand.u32 4294901760, %v1145_v17  ;;  %v5273_v51 = vand.u32 4294901760, %v4521_v1 }
 0x18f   :  { %1147 = vmatmul.mubr.f32.vlgmr.msra.gmra.mrb[4].mxu1 %v1146_v25  ;;  %v1156_v4 = vsub.f32 %v4521_v1, %v5273_v51  ;;  %v1963_v51 = vld [vmem:[#allocation8 + $0x60] sm:$0xff] }
 0x190   :  { %3137 = vmatpush1.bf16.msra.mxu1 %v4345_v7  ;;  %1152 = vmatprep.mubr.f32.mxu1 %v5395_v57  ;;  %v1954_v7 = vld [vmem:[#allocation8 + $0x18] sm:$0xff] }
 0x191   :  { %3139 = vmatprep.subr.bf16.mxu1 %v4372_v44  ;;  %v1157_v60 = vand.u32 4294901760, %v1156_v4  ;;  %v1951_v44 = vld [vmem:[#allocation8] sm:$0xff] }
 0x193   :  { %1158 = vmatmul.mubr.f32.gmra.mrb[6].mxu1 %v1157_v60 }
 0x194   :  { %3141 = vmatpush1.bf16.msra.mxu1 %v4379_v41  ;;  %1388 = vmatprep.mubr.f32.mxu1 %v5395_v57  ;;  %v1953_v41 = vld [vmem:[#allocation8 + $0x10] sm:$0xff] }
 0x195   :  { %3143 = vmatprep.subr.bf16.mxu1 %v4388_v21  ;;  %v1952_v21 = vld [vmem:[#allocation8 + $0x8] sm:$0xff] }
 0x198   :  { %3145 = vmatpush1.bf16.msra.mxu1 %v4393_v10  ;;  %v1985_v10 = vand.u32 4294901760, %v1951_v44 }
 0x199   :  { %3147 = vmatprep.subr.bf16.mxu1 %v4408_v26  ;;  %v1956_v26 = vld [vmem:[#allocation8 + $0x28] sm:$0xff] }
 0x19a   :  { %v4557_v53 = vsub.f32 %v1951_v44, %v1985_v10 }
 0x19c   :  { %3149 = vmatpush1.bf16.msra.mxu1 %v4420_v61  ;;  %v1958_v61 = vld [vmem:[#allocation8 + $0x38] sm:$0xff]  ;;  %5480 = vst [vmem:[#allocation31_spill] sm:$0xff] %v4557_v53 }
 0x19d   :  { %3151 = vmatprep.subr.bf16.mxu1 %v4422_v24  ;;  %v5477_v24 = vpack.c.bf16 %v5469_v3, %v5468_v49 }
 0x1a0   :  { %3153 = vmatpush1.bf16.msra.mxu1 %v4439_v16  ;;  %v1991_v16 = vand.u32 4294901760, %v1956_v26 }
 0x1a1   :  { %3155 = vmatprep.subr.bf16.mxu1 %v4448_v30  ;;  %v5476_v30 = vpack.c.bf16 %v4068_v54, %v4059_v56 }
 0x1a2   :  { %v4565_v60 = vsub.f32 %v1956_v26, %v1991_v16  ;;  %v2003_v26 = vand.u32 4294901760, %v1962_v59 }
 0x1a4   :  { %3157 = vmatpush1.bf16.msra.mxu1 %v4451_v8  ;;  %v1995_v8 = vand.u32 4294901760, %v1958_v61  ;;  %5484 = vst [vmem:[#allocation38_spill] sm:$0xff] %v4565_v60  ;;  %v1967_v60 = vld [vmem:[#allocation8 + $0x80] sm:$0xff] }
 0x1a5   :  { %3159 = vmatprep.subr.bf16.mxu1 %v4462_v28  ;;  %v1960_v28 = vld [vmem:[#allocation8 + $0x48] sm:$0xff] }
 0x1a6   :  { %v4563_v4 = vpack.c.bf16 %v1995_v8, %v1991_v16 }
 0x1a8   :  { %3161 = vmatpush1.bf16.msra.mxu1 %v3160_v36  ;;  %5483 = vst [vmem:[#allocation36_spill] sm:$0xff] %v4563_v4 }
 0x1a9   :  { %3163 = vmatprep.subr.bf16.mxu1 %v3162_v32  ;;  %v1983_v32 = vand.u32 4294901760, %v1952_v21 }
 0x1ab   :  { %v4553_v36 = vsub.f32 %v1952_v21, %v1983_v32  ;;  %v5485_v21 = vpack.c.bf16 %v5471_v15, %v5470_v27 }
 0x1ac   :  { %3165 = vmatpush1.bf16.msra.mxu1 %v3164_v52  ;;  %v1987_v52 = vand.u32 4294901760, %v1954_v7 }
 0x1ad   :  { %3167 = vmatprep.subr.bf16.mxu1 %v3166_v46  ;;  %v1955_v46 = vld [vmem:[#allocation8 + $0x20] sm:$0xff] }
 0x1ae   :  { %v4551_v38 = vpack.c.bf16 %v1987_v52, %v1983_v32  ;;  %v4555_v18 = vsub.f32 %v1954_v7, %v1987_v52  ;;  %v4571_v7 = vsub.f32 %v1958_v61, %v1995_v8  ;;  %v1993_v44 = vand.u32 4294901760, %v1955_v46 }
 0x1af   :  { %1390 = vmatmul.mubr.f32.vlgmr.msra.gmra.mrb[4].mxu1 %v4509_v29  ;;  %v1999_v52 = vand.u32 4294901760, %v1960_v28 }
 0x1b0   :  { %3169 = vmatpush1.bf16.msra.mxu1 %v3168_v50  ;;  %1395 = vmatprep.mubr.f32.mxu1 %v5395_v57  ;;  %v1989_v50 = vand.u32 4294901760, %v1953_v41  ;;  %5478 = vst [vmem:[#allocation30_spill] sm:$0xff] %v4551_v38  ;;  %5479 = vst [vmem:[#allocation34_spill] sm:$0xff] %v4555_v18  ;;  %v4580_v8 = vsub.f32 %v1955_v46, %v1993_v44  ;;  %v5496_v46 = vpack.c.bf16 %v4136_v6, %v5474_v37 }
 0x1b1   :  { %3171 = vmatprep.subr.bf16.mxu1 %v3170_v55  ;;  %v1957_v55 = vld [vmem:[#allocation8 + $0x30] sm:$0xff]  ;;  %3295 = vmatprep.subr.bf16.mxu0 %v4551_v38  ;;  %5486 = vst [vmem:[#allocation37_spill] sm:$0xff] %v4571_v7  ;;  %v4584_v38 = vsub.f32 %v1960_v28, %v1999_v52  ;;  %v1968_v7 = vld [vmem:[#allocation8 + $0x88] sm:$0xff] }
 0x1b2   :  { %v4559_v17 = vpack.c.bf16 %v1989_v50, %v1985_v10  ;;  %v4561_v25 = vsub.f32 %v1953_v41, %v1989_v50  ;;  %v1997_v32 = vand.u32 4294901760, %v1957_v55  ;;  %v1966_v10 = vld [vmem:[#allocation8 + $0x78] sm:$0xff]  ;;  %v5487_v41 = vpack.c.bf16 %v5473_v34, %v5472_v42  ;;  %5489 = vst [vmem:[#allocation44_spill] sm:$0xff] %v4580_v8 }
 0x1b3   :  { %1397 = vmatmul.mubr.f32.gmra.mrb[6].mxu1 %v4515_v58  ;;  %v2005_v50 = vand.u32 4294901760, %v1961_v9  ;;  %5491 = vst [vmem:[#allocation46_spill] sm:$0xff] %v4584_v38  ;;  %v2011_v28 = vand.u32 4294901760, %v1966_v10  ;;  %v5505_v38 = vpack.c.bf16 %v4166_v62, %v4161_v22  ;;  %v5549_v8 = vand.u32 4294901760, %v4512_v19 }
 0x1b4   :  { %3173 = vmatpush1.bf16.msra.mxu1 %v5476_v30  ;;  %1531 = vmatprep.mubr.f32.mxu1 %v5395_v57  ;;  %5481 = vst [vmem:[#allocation33_spill] sm:$0xff] %v4559_v17  ;;  %5482 = vst [vmem:[#allocation35_spill] sm:$0xff] %v4561_v25  ;;  %v1964_v30 = vld [vmem:[#allocation8 + $0x68] sm:$0xff]  ;;  %v4578_v61 = vpack.c.bf16 %v1997_v32, %v1993_v44  ;;  %v4582_v40 = vsub.f32 %v1957_v55, %v1997_v32  ;;  %v2009_v32 = vand.u32 4294901760, %v1963_v51 }
 0x1b5   :  { %3175 = vmatprep.subr.bf16.mxu1 %v5477_v24  ;;  %3297 = vmatpush1.bf16.msra.mxu0 %v4559_v17  ;;  %v2001_v24 = vand.u32 4294901760, %v1959_v33  ;;  %v2007_v16 = vand.u32 4294901760, %v1964_v30  ;;  %v4586_v17 = vpack.c.bf16 %v2003_v26, %v1999_v52  ;;  %v4588_v25 = vsub.f32 %v1962_v59, %v2003_v26 }
 0x1b6   :  { %3299 = vmatprep.subr.bf16.mxu0 %v4563_v4  ;;  %5488 = vst [vmem:[#allocation43_spill] sm:$0xff] %v4578_v61  ;;  %5490 = vst [vmem:[#allocation45_spill] sm:$0xff] %v4582_v40  ;;  %v1969_v4 = vld [vmem:[#allocation8 + $0x90] sm:$0xff]  ;;  %v4597_v55 = vsub.f32 %v1961_v9, %v2005_v50  ;;  %v5499_v52 = vpack.c.bf16 %v5475_v14, %v4145_v43  ;;  %v4608_v9 = vsub.f32 %v1966_v10, %v2011_v28 }
 0x1b7   :  { %5492 = vst [vmem:[#allocation47_spill] sm:$0xff] %v4586_v17  ;;  %5493 = vst [vmem:[#allocation48_spill] sm:$0xff] %v4588_v25  ;;  %v4590_v53 = vpack.c.bf16 %v2005_v50, %v2001_v24  ;;  %v4592_v18 = vsub.f32 %v1959_v33, %v2001_v24  ;;  %v4599_v44 = vsub.f32 %v1964_v30, %v2007_v16  ;;  %v2015_v33 = vand.u32 4294901760, %v1968_v7  ;;  %v1973_v25 = vld [vmem:[#allocation8 + $0xb0] sm:$0xff] }
 0x1b8   :  { %3177 = vmatpush1.bf16.msra.mxu1 %v5485_v21  ;;  %v1965_v21 = vld [vmem:[#allocation8 + $0x70] sm:$0xff]  ;;  %5497 = vst [vmem:[#allocation50_spill] sm:$0xff] %v4597_v55  ;;  %v2017_v24 = vand.u32 4294901760, %v1967_v60  ;;  %5501 = vst [vmem:[#allocation53_spill] sm:$0xff] %v4608_v9  ;;  %v4610_v50 = vsub.f32 %v1963_v51, %v2009_v32  ;;  %v2021_v30 = vand.u32 4294901760, %v1969_v4  ;;  %v5509_v51 = vpack.c.bf16 %v4323_v48, %v4321_v12 }
 0x1b9   :  { %3179 = vmatprep.subr.bf16.mxu1 %v5487_v41  ;;  %v1970_v41 = vld [vmem:[#allocation8 + $0x98] sm:$0xff]  ;;  %5494 = vst [vmem:[#allocation49_spill] sm:$0xff] %v4590_v53  ;;  %5495 = vst [vmem:[#allocation15_spill] sm:$0xff] %v4592_v18  ;;  %3301 = vmatpush1.bf16.msra.mxu0 %v4578_v61  ;;  %v2013_v59 = vand.u32 4294901760, %v1965_v21  ;;  %v4606_v18 = vpack.c.bf16 %v2011_v28, %v2007_v16  ;;  %v1971_v61 = vld [vmem:[#allocation8 + $0xa0] sm:$0xff] }
 0x1ba   :  { %5498 = vst [vmem:[#allocation51_spill] sm:$0xff] %v4599_v44  ;;  %v2019_v26 = vand.u32 4294901760, %v1970_v41  ;;  %3303 = vmatprep.subr.bf16.mxu0 %v4586_v17  ;;  %5502 = vst [vmem:[#allocation54_spill] sm:$0xff] %v4610_v50  ;;  %v1974_v44 = vld [vmem:[#allocation8 + $0xb8] sm:$0xff]  ;;  %v4621_v16 = vsub.f32 %v1967_v60, %v2017_v24  ;;  %v4623_v10 = vsub.f32 %v1969_v4, %v2021_v30 }
 0x1bb   :  { %5500 = vst [vmem:[#allocation52_spill] sm:$0xff] %v4606_v18  ;;  %v4612_v55 = vsub.f32 %v1965_v21, %v2013_v59  ;;  %v2027_v28 = vand.u32 4294901760, %v1974_v44  ;;  %v5547_v50 = vld [vmem:[#allocation42_spill] sm:$0xff] }
 0x1bc   :  { %3181 = vmatpush1.bf16.msra.mxu1 %v5496_v46  ;;  %v1972_v46 = vld [vmem:[#allocation8 + $0xa8] sm:$0xff]  ;;  %v4619_v17 = vsub.f32 %v1970_v41, %v2019_v26  ;;  %5507 = vst [vmem:[#allocation58_spill] sm:$0xff] %v4621_v16  ;;  %5508 = vst [vmem:[#allocation59_spill] sm:$0xff] %v4623_v10  ;;  %v2029_v41 = vand.u32 4294901760, %v1973_v25  ;;  %v5514_v10 = vpack.c.bf16 %v4327_v39, %v4325_v2  ;;  %v5548_v9 = vand.u32 4294901760, %v5547_v50 }
 0x1bd   :  { %3183 = vmatprep.subr.bf16.mxu1 %v5499_v52  ;;  %5503 = vst [vmem:[#allocation55_spill] sm:$0xff] %v4612_v55  ;;  %v4614_v52 = vsub.f32 %v1968_v7, %v2015_v33  ;;  %3305 = vmatpush1.bf16.msra.mxu0 %v4590_v53  ;;  %v4629_v7 = vpack.c.bf16 %v2013_v59, %v2009_v32  ;;  %v2023_v21 = vand.u32 4294901760, %v1972_v46  ;;  %v5540_v53 = vld [vmem:[#allocation32_spill] sm:$0xff]  ;;  %v5554_v50 = vand.u32 4294901760, %v4521_v1 }
 0x1be   :  { %5506 = vst [vmem:[#allocation57_spill] sm:$0xff] %v4619_v17  ;;  %3307 = vmatprep.subr.bf16.mxu0 %v4606_v18  ;;  %v4636_v4 = vsub.f32 %v1974_v44, %v2027_v28  ;;  %v4643_v32 = vsub.f32 %v1973_v25, %v2029_v41  ;;  %v5517_v59 = vpack.c.bf16 %v4331_v35, %v4329_v47  ;;  %v5545_v17 = vld [vmem:[#allocation41_spill] sm:$0xff] }
 0x1bf   :  { %5504 = vst [vmem:[#allocation56_spill] sm:$0xff] %v4614_v52  ;;  %5510 = vst [vmem:[#allocation60_spill] sm:$0xff] %v4629_v7  ;;  %v4632_v52 = vpack.c.bf16 %v2019_v26, %v2015_v33  ;;  %v4634_v60 = vsub.f32 %v1972_v46, %v2023_v21  ;;  %v4649_v33 = vpack.c.bf16 %v2021_v30, %v2017_v24  ;;  %v5524_v30 = vld [vmem:[#allocation18_spill] sm:$0xff]  ;;  %v5525_v46 = vld [vmem:[#allocation20_spill] sm:$0xff]  ;;  %v5546_v55 = vand.u32 4294901760, %v5545_v17 }
 0x1c0   :  { %3185 = vmatpush1.bf16.msra.mxu1 %v5505_v38  ;;  %v2025_v38 = vand.u32 4294901760, %v1971_v61  ;;  %5513 = vst [vmem:[#allocation63_spill] sm:$0xff] %v4636_v4  ;;  %5516 = vst [vmem:[#allocation65_spill] sm:$0xff] %v4643_v32  ;;  %v4652_v44 = vpack.c.bf16 %v2027_v28, %v2023_v21  ;;  %v5520_v26 = vpack.c.bf16 %v4335_v0, %v4333_v63  ;;  %v5527_v21 = vld [vmem:[#allocation21_spill] sm:$0xff]  ;;  %v5528_v28 = vld [vmem:[#allocation22_spill] sm:$0xff] }
 0x1c1   :  { %3187 = vmatprep.subr.bf16.mxu1 %v5509_v51  ;;  %5511 = vst [vmem:[#allocation61_spill] sm:$0xff] %v4632_v52  ;;  %5512 = vst [vmem:[#allocation62_spill] sm:$0xff] %v4634_v60  ;;  %3309 = vmatpush1.bf16.msra.mxu0 %v4629_v7  ;;  %v5521_v25 = vpack.c.bf16 %v4339_v23, %v4337_v5  ;;  %v5523_v24 = vpack.c.bf16 %v4343_v31, %v4341_v45  ;;  %v5539_v7 = vand.u32 4294901760, %v4021_v20  ;;  %v5541_v32 = vld [vmem:[#allocation39_spill] sm:$0xff]  ;;  %v5543_v4 = vld [vmem:[#allocation40_spill] sm:$0xff] }
 0x1c2   :  { %v4641_v51 = vsub.f32 %v1971_v61, %v2025_v38  ;;  %5518 = vst [vmem:[#allocation66_spill] sm:$0xff] %v4649_v33  ;;  %3311 = vmatprep.subr.bf16.mxu0 %v4632_v52  ;;  %5519 = vst [vmem:[#allocation67_spill] sm:$0xff] %v4652_v44  ;;  %v4661_v61 = vpack.c.bf16 %v2029_v41, %v2025_v38  ;;  %v5529_v38 = vld [vmem:[#allocation17_spill] sm:$0xff]  ;;  %v5530_v41 = vld [vmem:[#allocation24_spill] sm:$0xff]  ;;  %v5538_v52 = vand.u32 4294901760, %v4014_v11  ;;  %v5544_v60 = vand.u32 4294901760, %v5543_v4 }
 0x1c3   :  { %v3234_v40 = vpack.c.bf16 %v5548_v9, %v5546_v55  ;;  %v5550_v11 = vand.u32 4294901760, %v4059_v56  ;;  %v5551_v20 = vand.u32 4294901760, %v4068_v54  ;;  %v5557_v56 = vand.u32 4294901760, %v5472_v42 }
 0x1c4   :  { %3189 = vmatpush1.bf16.msra.mxu1 %v5514_v10  ;;  %5515 = vst [vmem:[#allocation64_spill] sm:$0xff] %v4641_v51  ;;  %5522 = vst [vmem:[#allocation68_spill] sm:$0xff] %v4661_v61  ;;  %v5526_v10 = vld [vmem:[#allocation16_spill] sm:$0xff]  ;;  %v3230_v18 = vpack.c.bf16 %v5539_v7, %v5538_v52  ;;  %v5542_v51 = vand.u32 4294901760, %v5541_v32  ;;  %v5552_v7 = vand.u32 4294901760, %v5468_v49  ;;  %v5558_v54 = vand.u32 4294901760, %v5473_v34 }
 0x1c5   :  { %3191 = vmatprep.subr.bf16.mxu1 %v5517_v59  ;;  %3313 = vmatpush1.bf16.msra.mxu0 %v4649_v33  ;;  %v5531_v59 = vld [vmem:[#allocation26_spill] sm:$0xff]  ;;  %v5537_v33 = vld [vmem:[#allocation29_spill] sm:$0xff]  ;;  %v3236_v52 = vpack.c.bf16 %v5551_v20, %v5550_v11  ;;  %v5564_v42 = vand.u32 4294901760, %v4166_v62  ;;  %v5565_v34 = vand.u32 4294901760, %v4321_v12  ;;  %v5571_v62 = vand.u32 4294901760, %v4333_v63 }
 0x1c6   :  { %3315 = vmatprep.subr.bf16.mxu0 %v4652_v44  ;;  %v5536_v44 = vld [vmem:[#allocation28_spill] sm:$0xff]  ;;  %v3232_v16 = vpack.c.bf16 %v5544_v60, %v5542_v51  ;;  %v3242_v49 = vpack.c.bf16 %v5558_v54, %v5557_v56  ;;  %v5572_v12 = vand.u32 4294901760, %v4335_v0  ;;  %v1975_v0 = vld [vmem:[#allocation8 + $0xc0] sm:$0xff] }
 0x1c8   :  { %3193 = vmatpush1.bf16.msra.mxu1 %v5520_v26  ;;  %v5532_v26 = vld [vmem:[#allocation19_spill] sm:$0xff]  ;;  %v3256_v11 = vpack.c.bf16 %v5572_v12, %v5571_v62 }
 0x1c9   :  { %3195 = vmatprep.subr.bf16.mxu1 %v5521_v25  ;;  %3317 = vmatpush1.bf16.msra.mxu0 %v4661_v61  ;;  %v5533_v25 = vld [vmem:[#allocation23_spill] sm:$0xff] }
 0x1ca   :  { %v5535_v61 = vld [vmem:[#allocation27_spill] sm:$0xff] }
 0x1cc   :  { %3197 = vmatpush1.bf16.msra.mxu1 %v5523_v24  ;;  %v5534_v24 = vld [vmem:[#allocation25_spill] sm:$0xff] }
 0x1cd   :  { %3199 = vmatprep.subr.bf16.mxu1 %v4208_v13 }
 0x1cf   :  { %1534 = vmatmul.mubr.f32.vlgmr.msra.gmra.mrb[4].mxu1 %v4512_v19  ;;  %v5555_v19 = vand.u32 4294901760, %v5470_v27  ;;  %v5561_v27 = vand.u32 4294901760, %v4145_v43  ;;  %v5568_v43 = vand.u32 4294901760, %v4327_v39  ;;  %v5575_v39 = vand.u32 4294901760, %v4341_v45 }
 0x1d0   :  { %3201 = vmatpush1.bf16.msra.mxu1 %v5524_v30  ;;  %1539 = vmatprep.mubr.f32.mxu1 %v5395_v57  ;;  %v2033_v45 = vand.u32 4294901760, %v1975_v0 }
 0x1d1   :  { %3203 = vmatprep.subr.bf16.mxu1 %v5525_v46 }
 0x1d3   :  { %1542 = vmatmul.mubr.f32.gmra.mrb[6].mxu1 %v4521_v1 }
 0x1d4   :  { %3205 = vmatpush1.bf16.msra.mxu1 %v5526_v10  ;;  %1644 = vmatprep.mubr.f32.mxu1 %v5395_v57 }
 0x1d5   :  { %3207 = vmatprep.subr.bf16.mxu1 %v5527_v21 }
 0x1d8   :  { %3209 = vmatpush1.bf16.msra.mxu1 %v5528_v28 }
 0x1d9   :  { %3211 = vmatprep.subr.bf16.mxu1 %v5529_v38 }
 0x1dc   :  { %3213 = vmatpush1.bf16.msra.mxu1 %v5530_v41 }
 0x1dd   :  { %3215 = vmatprep.subr.bf16.mxu1 %v5531_v59 }
 0x1e0   :  { %3217 = vmatpush1.bf16.msra.mxu1 %v5532_v26 }
 0x1e1   :  { %3219 = vmatprep.subr.bf16.mxu1 %v5533_v25 }
 0x1e4   :  { %3221 = vmatpush1.bf16.msra.mxu1 %v5534_v24 }
 0x1e5   :  { %3223 = vmatprep.subr.bf16.mxu1 %v5535_v61 }
 0x1e8   :  { %3225 = vmatpush1.bf16.msra.mxu1 %v5536_v44 }
 0x1e9   :  { %3227 = vmatprep.subr.bf16.mxu1 %v5537_v33 }
 0x1ec   :  { %3229 = vmatpush1.bf16.msra.mxu1 %v5540_v53 }
 0x1ed   :  { %3231 = vmatprep.subr.bf16.mxu1 %v3230_v18  ;;  %v5553_v18 = vand.u32 4294901760, %v5469_v3  ;;  %v5559_v3 = vand.u32 4294901760, %v5474_v37  ;;  %v5566_v37 = vand.u32 4294901760, %v4323_v48  ;;  %v5573_v48 = vand.u32 4294901760, %v4337_v5  ;;  %v1977_v5 = vld [vmem:[#allocation8 + $0xd0] sm:$0xff] }
 0x1ef   :  { %1648 = vmatmul.mubr.f32.vlgmr.msra.gmra.mrb[4].mxu1 %v5549_v8  ;;  %v3238_v17 = vpack.c.bf16 %v5553_v18, %v5552_v7  ;;  %v5556_v8 = vand.u32 4294901760, %v5471_v15  ;;  %v5562_v15 = vand.u32 4294901760, %v5475_v14  ;;  %v3250_v4 = vpack.c.bf16 %v5566_v37, %v5565_v34 }
 0x1f0   :  { %3233 = vmatpush1.bf16.msra.mxu1 %v3232_v16  ;;  %1653 = vmatprep.mubr.f32.mxu1 %v5395_v57  ;;  %v5563_v16 = vand.u32 4294901760, %v4161_v22  ;;  %v5569_v14 = vand.u32 4294901760, %v4329_v47  ;;  %v5570_v22 = vand.u32 4294901760, %v4331_v35  ;;  %v5576_v47 = vand.u32 4294901760, %v4343_v31 }
 0x1f1   :  { %3235 = vmatprep.subr.bf16.mxu1 %v3234_v40  ;;  %v3240_v55 = vpack.c.bf16 %v5556_v8, %v5555_v19  ;;  %v5560_v40 = vand.u32 4294901760, %v4136_v6  ;;  %v3246_v9 = vpack.c.bf16 %v5562_v15, %v5561_v27  ;;  %v5567_v6 = vand.u32 4294901760, %v4325_v2 }
 0x1f2   :  { %v3248_v60 = vpack.c.bf16 %v5564_v42, %v5563_v16  ;;  %v3254_v32 = vpack.c.bf16 %v5570_v22, %v5569_v14  ;;  %v5574_v2 = vand.u32 4294901760, %v4339_v23  ;;  %v1978_v23 = vld [vmem:[#allocation8 + $0xd8] sm:$0xff]  ;;  %v2037_v31 = vand.u32 4294901760, %v1977_v5  ;;  %v5585_v42 = vld [vmem:[#allocation45_spill] sm:$0xff] }
 0x1f3   :  { %1657 = vmatmul.mubr.f32.gmra.mrb[6].mxu1 %v5554_v50  ;;  %v3244_v1 = vpack.c.bf16 %v5560_v40, %v5559_v3  ;;  %v3252_v51 = vpack.c.bf16 %v5568_v43, %v5567_v6  ;;  %v2035_v63 = vand.u32 4294901760, %v1978_v23  ;;  %v5582_v3 = vld [vmem:[#allocation38_spill] sm:$0xff] }
 0x1f4   :  { %3237 = vmatpush1.bf16.msra.mxu1 %v3236_v52  ;;  %1823 = vmatprep.mubr.f32.mxu1 %v5395_v57  ;;  %v3258_v20 = vpack.c.bf16 %v5574_v2, %v5573_v48  ;;  %v3260_v52 = vpack.c.bf16 %v5576_v47, %v5575_v39  ;;  %v5337_v40 = vand.u32 4294901760, %v5582_v3  ;;  %v4819_v6 = vsub.f32 %v1977_v5, %v2037_v31  ;;  %v5592_v2 = vld [vmem:[#allocation46_spill] sm:$0xff]  ;;  %v5593_v39 = vld [vmem:[#allocation48_spill] sm:$0xff] }
 0x1f5   :  { %3239 = vmatprep.subr.bf16.mxu1 %v3238_v17  ;;  %v4815_v37 = vsub.f32 %v1978_v23, %v2035_v63  ;;  %v5328_v47 = vand.u32 4294901760, %v5593_v39 }
 0x1f6   :  { %5588 = vst [vmem:[#allocation22_spill] sm:$0xff] %v4819_v6  ;;  %v2129_v62 = vsub.f32 %v5582_v3, %v5337_v40  ;;  %v5607_v40 = vld [vmem:[#allocation65_spill] sm:$0xff] }
 0x1f7   :  { %5587 = vst [vmem:[#allocation21_spill] sm:$0xff] %v4815_v37 }
 0x1f8   :  { %3241 = vmatpush1.bf16.msra.mxu1 %v3240_v55  ;;  %v2130_v23 = vand.u32 4294901760, %v2129_v62 }
 0x1f9   :  { %3243 = vmatprep.subr.bf16.mxu1 %v3242_v49 }
 0x1fc   :  { %3245 = vmatpush1.bf16.msra.mxu1 %v3244_v1  ;;  %v5583_v1 = vld [vmem:[#allocation37_spill] sm:$0xff] }
 0x1fd   :  { %3247 = vmatprep.subr.bf16.mxu1 %v3246_v9  ;;  %v5336_v27 = vand.u32 4294901760, %v5583_v1  ;;  %v5584_v9 = vld [vmem:[#allocation44_spill] sm:$0xff] }
 0x1fe   :  { %v5334_v16 = vand.u32 4294901760, %v5584_v9 }
 0x1ff   :  { %v2141_v12 = vsub.f32 %v5583_v1, %v5336_v27 }
 0x200   :  { %3249 = vmatpush1.bf16.msra.mxu1 %v3248_v60  ;;  %v5331_v60 = vand.u32 4294901760, %v5585_v42 }
 0x201   :  { %3251 = vmatprep.subr.bf16.mxu1 %v3250_v4  ;;  %v4817_v4 = vsub.f32 %v1975_v0, %v2033_v45  ;;  %v5595_v0 = vld [vmem:[#allocation50_spill] sm:$0xff] }
 0x202   :  { %v2147_v48 = vsub.f32 %v5585_v42, %v5331_v60  ;;  %v5326_v5 = vand.u32 4294901760, %v5595_v0 }
 0x204   :  { %3253 = vmatpush1.bf16.msra.mxu1 %v3252_v51 }
 0x205   :  { %3255 = vmatprep.subr.bf16.mxu1 %v3254_v32 }
 0x208   :  { %3257 = vmatpush1.bf16.msra.mxu1 %v3256_v11  ;;  %v2135_v11 = vsub.f32 %v5584_v9, %v5334_v16  ;;  %v5606_v16 = vld [vmem:[#allocation64_spill] sm:$0xff] }
 0x209   :  { %3259 = vmatprep.subr.bf16.mxu1 %v3258_v20  ;;  %v5330_v20 = vand.u32 4294901760, %v5592_v2 }
 0x20c   :  { %3261 = vmatpush1.bf16.msra.mxu1 %v3260_v52  ;;  %v5594_v52 = vld [vmem:[#allocation15_spill] sm:$0xff] }
 0x20d   :  { %3263 = vmatprep.subr.bf16.mxu1 %v4208_v13  ;;  %v1976_v13 = vld [vmem:[#allocation8 + $0xc8] sm:$0xff] }
 0x20e   :  { %v2031_v35 = vand.u32 4294901760, %v1976_v13 }
 0x20f   :  { %1825 = vmatmul.mubr.f32.vlgmr.msra.gmra.mrb[4].mxu1 %v4509_v29 }
 0x210   :  { %3265 = vmatpush1.bf16.msra.mxu1 %v5524_v30  ;;  %1830 = vmatprep.mubr.f32.mxu1 %v5395_v57  ;;  %v4813_v34 = vsub.f32 %v1976_v13, %v2031_v35  ;;  %v5327_v13 = vand.u32 4294901760, %v5594_v52 }
 0x211   :  { %3267 = vmatprep.subr.bf16.mxu1 %v5525_v46  ;;  %v1979_v46 = vld [vmem:[#allocation8 + $0xe0] sm:$0xff] }
 0x212   :  { %5586 = vst [vmem:[#allocation16_spill] sm:$0xff] %v4813_v34 }
 0x213   :  { %1832 = vmatmul.mubr.f32.gmra.mrb[6].mxu1 %v4515_v58 }
 0x214   :  { %3269 = vmatpush1.bf16.msra.mxu1 %v5526_v10  ;;  %1934 = vmatprep.mubr.f32.mxu1 %v5395_v57  ;;  %v5349_v10 = vand.u32 4294901760, %v4553_v36 }
 0x215   :  { %3271 = vmatprep.subr.bf16.mxu1 %v5527_v21  ;;  %v5577_v21 = vld [vmem:[#allocation34_spill] sm:$0xff] }
 0x216   :  { %v2105_v18 = vsub.f32 %v4553_v36, %v5349_v10 }
 0x218   :  { %3273 = vmatpush1.bf16.msra.mxu1 %v5528_v28  ;;  %v5345_v28 = vand.u32 4294901760, %v5577_v21  ;;  %v2106_v55 = vand.u32 4294901760, %v2105_v18 }
 0x219   :  { %3275 = vmatprep.subr.bf16.mxu1 %v5529_v38  ;;  %v2041_v38 = vand.u32 4294901760, %v1979_v46 }
 0x21a   :  { %v2117_v17 = vsub.f32 %v5577_v21, %v5345_v28 }
 0x21b   :  { %v4825_v14 = vsub.f32 %v1979_v46, %v2041_v38  ;;  %v5596_v46 = vld [vmem:[#allocation51_spill] sm:$0xff] }
 0x21c   :  { %3277 = vmatpush1.bf16.msra.mxu1 %v5530_v41  ;;  %v2118_v56 = vand.u32 4294901760, %v2117_v17 }
 0x21d   :  { %3279 = vmatprep.subr.bf16.mxu1 %v5531_v59  ;;  %v5578_v59 = vld [vmem:[#allocation31_spill] sm:$0xff]  ;;  %5590 = vst [vmem:[#allocation24_spill] sm:$0xff] %v4825_v14 }
 0x21e   :  { %v3326_v15 = vpack.c.bf16 %v2118_v56, %v2106_v55 }
 0x220   :  { %3281 = vmatpush1.bf16.msra.mxu1 %v5532_v26  ;;  %v5344_v26 = vand.u32 4294901760, %v5578_v59 }
 0x221   :  { %3283 = vmatprep.subr.bf16.mxu1 %v5533_v25  ;;  %v5579_v25 = vld [vmem:[#allocation35_spill] sm:$0xff] }
 0x222   :  { %v2111_v19 = vsub.f32 %v5578_v59, %v5344_v26 }
 0x224   :  { %3285 = vmatpush1.bf16.msra.mxu1 %v5534_v24  ;;  %v5338_v24 = vand.u32 4294901760, %v5579_v25  ;;  %v2112_v54 = vand.u32 4294901760, %v2111_v19 }
 0x225   :  { %3287 = vmatprep.subr.bf16.mxu1 %v5535_v61  ;;  %v4781_v61 = vpack.c.bf16 %v2035_v63, %v2031_v35  ;;  %v2142_v35 = vand.u32 4294901760, %v2141_v12  ;;  %v2136_v63 = vand.u32 4294901760, %v2135_v11  ;;  %v5599_v12 = vld [vmem:[#allocation55_spill] sm:$0xff] }
 0x226   :  { %v2123_v8 = vsub.f32 %v5579_v25, %v5338_v24  ;;  %v5324_v11 = vand.u32 4294901760, %v5599_v12  ;;  %v5340_v24 = vand.u32 4294901760, %v5607_v40 }
 0x227   :  { %3319 = vmatprep.subr.bf16.mxu0 %v4781_v61 }
 0x228   :  { %3289 = vmatpush1.bf16.msra.mxu1 %v5536_v44  ;;  %v4783_v44 = vpack.c.bf16 %v2037_v31, %v2033_v45  ;;  %v2124_v49 = vand.u32 4294901760, %v2123_v8  ;;  %v2148_v45 = vand.u32 4294901760, %v2147_v48  ;;  %v2153_v31 = vsub.f32 %v5592_v2, %v5330_v20 }
 0x229   :  { %3291 = vmatprep.subr.bf16.mxu1 %v5537_v33  ;;  %v1980_v33 = vld [vmem:[#allocation8 + $0xe8] sm:$0xff] }
 0x22a   :  { %3321 = vmatpush1.bf16.msra.mxu0 %v4783_v44  ;;  %v4829_v32 = vpack.c.bf16 %v2124_v49, %v2112_v54  ;;  %v4863_v18 = vpack.c.bf16 %v2148_v45, %v2136_v63  ;;  %v2154_v17 = vand.u32 4294901760, %v2153_v31  ;;  %v5598_v49 = vld [vmem:[#allocation54_spill] sm:$0xff]  ;;  %v2195_v45 = vsub.f32 %v5599_v12, %v5324_v11  ;;  %v5600_v31 = vld [vmem:[#allocation56_spill] sm:$0xff] }
 0x22c   :  { %3293 = vmatpush1.bf16.msra.mxu1 %v5540_v53  ;;  %v1982_v53 = vld [vmem:[#allocation8 + $0xf8] sm:$0xff] }
 0x22d   :  { %v2043_v30 = vand.u32 4294901760, %v1982_v53 }
 0x22f   :  { %1936 = vmatmul.mubr.f32.vlgmr.msra.gmra.mrb[4].mxu1 %v4509_v29  ;;  %v2039_v29 = vand.u32 4294901760, %v1980_v33  ;;  %v4823_v51 = vsub.f32 %v1982_v53, %v2043_v30  ;;  %v2159_v53 = vsub.f32 %v5594_v52, %v5327_v13 }
 0x230   :  { %1941 = vmatprep.mubr.f32.mxu1 %v5395_v57 }
 0x231   :  { %v4791_v7 = vpack.c.bf16 %v2043_v30, %v2039_v29  ;;  %v4821_v43 = vsub.f32 %v1980_v33, %v2039_v29  ;;  %5589 = vst [vmem:[#allocation17_spill] sm:$0xff] %v4823_v51  ;;  %v2165_v33 = vsub.f32 %v5593_v39, %v5328_v47  ;;  %v4856_v29 = vpack.c.bf16 %v2142_v35, %v2130_v23 }
 0x232   :  { %v2171_v30 = vsub.f32 %v5595_v0, %v5326_v5  ;;  %v2160_v8 = vand.u32 4294901760, %v2159_v53  ;;  %v5601_v53 = vld [vmem:[#allocation57_spill] sm:$0xff]  ;;  %v5605_v5 = vld [vmem:[#allocation63_spill] sm:$0xff] }
 0x233   :  { %1943 = vmatmul.mubr.f32.gmra.mrb[6].mxu1 %v4515_v58  ;;  %v1981_v58 = vld [vmem:[#allocation8 + $0xf0] sm:$0xff]  ;;  %5580 = vst [vmem:[#allocation18_spill] sm:$0xff] %v4791_v7  ;;  %3323 = vmatprep.subr.bf16.mxu0 %v4791_v7  ;;  %v2166_v19 = vand.u32 4294901760, %v2165_v33  ;;  %v5329_v33 = vand.u32 4294901760, %v5600_v31 }
 0x234   :  { %v2045_v41 = vand.u32 4294901760, %v1981_v58  ;;  %v2172_v55 = vand.u32 4294901760, %v2171_v30  ;;  %v5332_v30 = vand.u32 4294901760, %v5601_v53 }
 0x235   :  { %v4872_v62 = vpack.c.bf16 %v2166_v19, %v2154_v17  ;;  %v5602_v17 = vld [vmem:[#allocation58_spill] sm:$0xff] }
 0x236   :  { %v4799_v50 = vpack.c.bf16 %v2045_v41, %v2041_v38  ;;  %v4827_v22 = vsub.f32 %v1981_v58, %v2045_v41  ;;  %v5325_v58 = vand.u32 4294901760, %v5596_v46  ;;  %v5597_v38 = vld [vmem:[#allocation53_spill] sm:$0xff]  ;;  %v4875_v48 = vpack.c.bf16 %v2172_v55, %v2160_v8  ;;  %v5603_v55 = vld [vmem:[#allocation59_spill] sm:$0xff] }
 0x237   :  { %v5322_v41 = vand.u32 4294901760, %v5597_v38  ;;  %v5333_v19 = vand.u32 4294901760, %v5602_v17  ;;  %v2213_v11 = vsub.f32 %v5601_v53, %v5332_v30 }
 0x238   :  { %5581 = vst [vmem:[#allocation20_spill] sm:$0xff] %v4799_v50  ;;  %3325 = vmatpush1.bf16.msra.mxu0 %v4799_v50  ;;  %5591 = vst [vmem:[#allocation26_spill] sm:$0xff] %v4827_v22  ;;  %v2177_v56 = vsub.f32 %v5596_v46, %v5325_v58  ;;  %v5356_v50 = vand.u32 4294901760, %v4827_v22 }
 0x239   :  { %3327 = vmatprep.subr.bf16.mxu0 %v3326_v15  ;;  %v2189_v54 = vsub.f32 %v5597_v38, %v5322_v41  ;;  %v5323_v15 = vand.u32 4294901760, %v5598_v49  ;;  %v2207_v58 = vsub.f32 %v5602_v17, %v5333_v19 }
 0x23a   :  { %v2178_v23 = vand.u32 4294901760, %v2177_v56  ;;  %v5335_v56 = vand.u32 4294901760, %v5603_v55 }
 0x23b   :  { %v2190_v35 = vand.u32 4294901760, %v2189_v54  ;;  %v2183_v63 = vsub.f32 %v5598_v49, %v5323_v15  ;;  %v2196_v54 = vand.u32 4294901760, %v2195_v45  ;;  %v2201_v15 = vsub.f32 %v5600_v31, %v5329_v33 }
 0x23c   :  { %v5339_v45 = vand.u32 4294901760, %v5605_v5  ;;  %v2214_v33 = vand.u32 4294901760, %v2213_v11  ;;  %v2208_v20 = vand.u32 4294901760, %v2207_v58 }
 0x23d   :  { %v4886_v41 = vpack.c.bf16 %v2190_v35, %v2178_v23  ;;  %v2184_v8 = vand.u32 4294901760, %v2183_v63  ;;  %v2219_v23 = vsub.f32 %v5603_v55, %v5335_v56  ;;  %v5604_v35 = vld [vmem:[#allocation62_spill] sm:$0xff]  ;;  %v2202_v47 = vand.u32 4294901760, %v2201_v15 }
 0x23e   :  { %v5342_v63 = vand.u32 4294901760, %v5604_v35  ;;  %v2237_v19 = vsub.f32 %v5605_v5, %v5339_v45  ;;  %v5341_v56 = vand.u32 4294901760, %v5606_v16  ;;  %v5346_v45 = vand.u32 4294901760, %v4815_v37 }
 0x23f   :  { %v4903_v13 = vpack.c.bf16 %v2196_v54, %v2184_v8  ;;  %v2220_v60 = vand.u32 4294901760, %v2219_v23  ;;  %v4912_v27 = vpack.c.bf16 %v2214_v33, %v2202_v47  ;;  %v2243_v54 = vsub.f32 %v5607_v40, %v5340_v24 }
 0x240   :  { %v2225_v30 = vsub.f32 %v5604_v35, %v5342_v63  ;;  %v2238_v11 = vand.u32 4294901760, %v2237_v19  ;;  %v2231_v58 = vsub.f32 %v5606_v16, %v5341_v56  ;;  %v5343_v23 = vand.u32 4294901760, %v4813_v34 }
 0x241   :  { %v4915_v8 = vpack.c.bf16 %v2220_v60, %v2208_v20  ;;  %v5347_v47 = vand.u32 4294901760, %v4817_v4  ;;  %v5348_v20 = vand.u32 4294901760, %v4819_v6  ;;  %v2261_v24 = vsub.f32 %v4815_v37, %v5346_v45 }
 0x242   :  { %v2226_v15 = vand.u32 4294901760, %v2225_v30  ;;  %v2232_v60 = vand.u32 4294901760, %v2231_v58  ;;  %v2244_v30 = vand.u32 4294901760, %v2243_v54  ;;  %v2249_v19 = vsub.f32 %v4813_v34, %v5343_v23 }
 0x243   :  { %v2255_v56 = vsub.f32 %v4817_v4, %v5347_v47  ;;  %v5355_v58 = vand.u32 4294901760, %v4823_v51  ;;  %v2262_v23 = vand.u32 4294901760, %v2261_v24 }
 0x244   :  { %v4926_v33 = vpack.c.bf16 %v2238_v11, %v2226_v15  ;;  %v2267_v15 = vsub.f32 %v4819_v6, %v5348_v20  ;;  %v5354_v11 = vand.u32 4294901760, %v4821_v43  ;;  %v4943_v54 = vpack.c.bf16 %v2244_v30, %v2232_v60 }
 0x245   :  { %v2250_v63 = vand.u32 4294901760, %v2249_v19  ;;  %v2256_v26 = vand.u32 4294901760, %v2255_v56  ;;  %v2285_v47 = vsub.f32 %v4823_v51, %v5355_v58  ;;  %v5357_v20 = vand.u32 4294901760, %v4825_v14 }
 0x246   :  { %v2268_v28 = vand.u32 4294901760, %v2267_v15  ;;  %v2273_v45 = vsub.f32 %v4821_v43, %v5354_v11  ;;  %v2291_v56 = vsub.f32 %v4827_v22, %v5356_v50  ;;  %v3382_v50 = vpack.c.bf16 %v4815_v37, %v4813_v34 }
 0x247   :  { %v3350_v10 = vpack.c.bf16 %v2262_v23, %v2250_v63  ;;  %v2286_v30 = vand.u32 4294901760, %v2285_v47  ;;  %v2279_v24 = vsub.f32 %v4825_v14, %v5357_v20  ;;  %v3358_v63 = vpack.c.bf16 %v5577_v21, %v4553_v36 }
 0x248   :  { %v3352_v7 = vpack.c.bf16 %v2268_v28, %v2256_v26  ;;  %v2274_v60 = vand.u32 4294901760, %v2273_v45  ;;  %v2292_v11 = vand.u32 4294901760, %v2291_v56  ;;  %v3360_v28 = vpack.c.bf16 %v5579_v25, %v5578_v59 }
 0x249   :  { %v2280_v15 = vand.u32 4294901760, %v2279_v24  ;;  %v3362_v26 = vpack.c.bf16 %v5583_v1, %v5582_v3  ;;  %v3364_v45 = vpack.c.bf16 %v5585_v42, %v5584_v9  ;;  %v3366_v23 = vpack.c.bf16 %v5593_v39, %v5592_v2 }
 0x24a   :  { %v3354_v19 = vpack.c.bf16 %v2286_v30, %v2274_v60  ;;  %v3368_v47 = vpack.c.bf16 %v5595_v0, %v5594_v52  ;;  %v3372_v60 = vpack.c.bf16 %v5599_v12, %v5598_v49  ;;  %v3374_v30 = vpack.c.bf16 %v5601_v53, %v5600_v31 }
 0x24b   :  { %v3356_v58 = vpack.c.bf16 %v2292_v11, %v2280_v15  ;;  %v3370_v11 = vpack.c.bf16 %v5597_v38, %v5596_v46  ;;  %v3376_v24 = vpack.c.bf16 %v5603_v55, %v5602_v17  ;;  %v3378_v56 = vpack.c.bf16 %v5605_v5, %v5604_v35 }
 0x24c   :  { %v3380_v15 = vpack.c.bf16 %v5607_v40, %v5606_v16  ;;  %v3384_v20 = vpack.c.bf16 %v4819_v6, %v4817_v4  ;;  %v3386_v12 = vpack.c.bf16 %v4823_v51, %v4821_v43  ;;  %v3388_v53 = vpack.c.bf16 %v4827_v22, %v4825_v14 }
 0x302   :  { %v1937_v31 = vpop.f32.mrb[4].mxu1 }
 0x303   :  { %v4991_v55 = vand.u32 4294901760, %v1937_v31  ;;  %v1939_v17 = vpop.f32.mrb[5].mxu1 }
 0x304   :  { %1949 = vst [vmem:[#allocation10 + $0x8] sm:$0xff] %v1939_v17 }
 0x305   :  { %v4994_v5 = vsub.f32 %v1937_v31, %v4991_v55 }
 0x306   :  { %v1944_v40 = vpop.f32.mrb[6].mxu1 }
 0x307   :  { %v2082_v37 = vand.u32 4294901760, %v4994_v5  ;;  %v4997_v34 = vand.u32 4294901760, %v1944_v40  ;;  %v1946_v6 = vpop.f32.mrb[7].mxu1 }
 0x308   :  { %1950 = vst [vmem:[#allocation10 + $0x28] sm:$0xff] %v1946_v6 }
 0x309   :  { %v2083_v51 = vsub.f32 %v4994_v5, %v2082_v37  ;;  %v5003_v22 = vsub.f32 %v1944_v40, %v4997_v34  ;;  %v5610_v40 = vld [vmem:[#allocation36_spill] sm:$0xff] }
 0x30b   :  { %v2084_v14 = vand.u32 4294901760, %v2083_v51  ;;  %v2093_v17 = vand.u32 4294901760, %v5003_v22  ;;  %v5613_v51 = vld [vmem:[#allocation49_spill] sm:$0xff] }
 0x30d   :  { %2085 = vmatmul.mubr.f32.vlgmr.msra.gmra.mrb[4].mxu0 %v2084_v14  ;;  %v2094_v31 = vsub.f32 %v5003_v22, %v2093_v17  ;;  %v5614_v14 = vld [vmem:[#allocation52_spill] sm:$0xff] }
 0x30e   :  { %3329 = vmatpush1.bf16.msra.mxu0 %v4829_v32  ;;  %2090 = vmatprep.mubr.f32.mxu0 %v5395_v57  ;;  %v5615_v32 = vld [vmem:[#allocation60_spill] sm:$0xff] }
 0x30f   :  { %3331 = vmatprep.subr.bf16.mxu0 %v4856_v29  ;;  %v2095_v6 = vand.u32 4294901760, %v2094_v31  ;;  %v5617_v29 = vld [vmem:[#allocation66_spill] sm:$0xff]  ;;  %v5650_v31 = vand.u32 4294901760, %v5606_v16 }
 0x311   :  { %2096 = vmatmul.mubr.f32.gmra.mrb[6].mxu0 %v2095_v6  ;;  %v5651_v6 = vld [vmem:[#allocation65_spill] sm:$0xff] }
 0x312   :  { %3333 = vmatpush1.bf16.msra.mxu0 %v4863_v18  ;;  %2326 = vmatprep.mubr.f32.mxu0 %v5395_v57  ;;  %v5619_v18 = vld [vmem:[#allocation68_spill] sm:$0xff] }
 0x313   :  { %3335 = vmatprep.subr.bf16.mxu0 %v4872_v62  ;;  %v5620_v62 = vld [vmem:[#allocation18_spill] sm:$0xff] }
 0x316   :  { %3337 = vmatpush1.bf16.msra.mxu0 %v4875_v48  ;;  %v5622_v48 = vand.u32 4294901760, %v5577_v21  ;;  %v5629_v21 = vand.u32 4294901760, %v5585_v42  ;;  %v5635_v42 = vand.u32 4294901760, %v5597_v38  ;;  %v5647_v38 = vand.u32 4294901760, %v5604_v35 }
 0x317   :  { %3339 = vmatprep.subr.bf16.mxu0 %v4886_v41  ;;  %v5618_v41 = vld [vmem:[#allocation67_spill] sm:$0xff] }
 0x31a   :  { %3341 = vmatpush1.bf16.msra.mxu0 %v4903_v13  ;;  %v5616_v13 = vld [vmem:[#allocation61_spill] sm:$0xff] }
 0x31b   :  { %3343 = vmatprep.subr.bf16.mxu0 %v4912_v27  ;;  %v5611_v27 = vld [vmem:[#allocation43_spill] sm:$0xff] }
 0x31e   :  { %3345 = vmatpush1.bf16.msra.mxu0 %v4915_v8  ;;  %v5623_v8 = vld [vmem:[#allocation20_spill] sm:$0xff] }
 0x31f   :  { %3347 = vmatprep.subr.bf16.mxu0 %v4926_v33  ;;  %v5624_v33 = vand.u32 4294901760, %v5578_v59 }
 0x322   :  { %3349 = vmatpush1.bf16.msra.mxu0 %v4943_v54  ;;  %v5626_v54 = vand.u32 4294901760, %v5582_v3 }
 0x323   :  { %3351 = vmatprep.subr.bf16.mxu0 %v3350_v10  ;;  %v5608_v10 = vld [vmem:[#allocation30_spill] sm:$0xff] }
 0x326   :  { %3353 = vmatpush1.bf16.msra.mxu0 %v3352_v7  ;;  %v5609_v7 = vld [vmem:[#allocation33_spill] sm:$0xff] }
 0x327   :  { %3355 = vmatprep.subr.bf16.mxu0 %v3354_v19  ;;  %v5627_v19 = vand.u32 4294901760, %v5583_v1  ;;  %v5632_v1 = vand.u32 4294901760, %v5594_v52 }
 0x32a   :  { %3357 = vmatpush1.bf16.msra.mxu0 %v3356_v58 }
 0x32b   :  { %3359 = vmatprep.subr.bf16.mxu0 %v3358_v63  ;;  %v3426_v63 = vpack.c.bf16 %v5627_v19, %v5626_v54  ;;  %v5657_v19 = vand.u32 4294901760, %v4817_v4 }
 0x32d   :  { %2328 = vmatmul.mubr.f32.vlgmr.msra.gmra.mrb[4].mxu0 %v4991_v55 }
 0x32e   :  { %3361 = vmatpush1.bf16.msra.mxu0 %v3360_v28  ;;  %2333 = vmatprep.mubr.f32.mxu0 %v5395_v57  ;;  %v5631_v28 = vand.u32 4294901760, %v5593_v39  ;;  %v5636_v39 = vand.u32 4294901760, %v5598_v49 }
 0x32f   :  { %3363 = vmatprep.subr.bf16.mxu0 %v3362_v26  ;;  %v5637_v26 = vld [vmem:[#allocation55_spill] sm:$0xff] }
 0x331   :  { %2335 = vmatmul.mubr.f32.gmra.mrb[6].mxu0 %v4997_v34 }
 0x332   :  { %3365 = vmatpush1.bf16.msra.mxu0 %v3364_v45  ;;  %2469 = vmatprep.mubr.f32.mxu0 %v5395_v57 }
 0x333   :  { %3367 = vmatprep.subr.bf16.mxu0 %v3366_v23  ;;  %v5639_v23 = vld [vmem:[#allocation56_spill] sm:$0xff] }
 0x334   :  { %v5640_v52 = vand.u32 4294901760, %v5639_v23 }
 0x336   :  { %3369 = vmatpush1.bf16.msra.mxu0 %v3368_v47  ;;  %v5641_v47 = vld [vmem:[#allocation57_spill] sm:$0xff] }
 0x337   :  { %3371 = vmatprep.subr.bf16.mxu0 %v3370_v11 }
 0x33a   :  { %3373 = vmatpush1.bf16.msra.mxu0 %v3372_v60  ;;  %v5643_v60 = vld [vmem:[#allocation58_spill] sm:$0xff] }
 0x33b   :  { %3375 = vmatprep.subr.bf16.mxu0 %v3374_v30  ;;  %v5644_v30 = vand.u32 4294901760, %v5643_v60 }
 0x33e   :  { %3377 = vmatpush1.bf16.msra.mxu0 %v3376_v24  ;;  %v5645_v24 = vld [vmem:[#allocation59_spill] sm:$0xff] }
 0x33f   :  { %3379 = vmatprep.subr.bf16.mxu0 %v3378_v56 }
 0x342   :  { %3381 = vmatpush1.bf16.msra.mxu0 %v3380_v15  ;;  %v5648_v15 = vld [vmem:[#allocation63_spill] sm:$0xff] }
 0x343   :  { %3383 = vmatprep.subr.bf16.mxu0 %v3382_v50  ;;  %v5612_v50 = vld [vmem:[#allocation47_spill] sm:$0xff]  ;;  %v5649_v49 = vand.u32 4294901760, %v5648_v15 }
 0x346   :  { %3385 = vmatpush1.bf16.msra.mxu0 %v3384_v20  ;;  %v5625_v20 = vand.u32 4294901760, %v5579_v25  ;;  %v5630_v25 = vand.u32 4294901760, %v5592_v2 }
 0x347   :  { %3387 = vmatprep.subr.bf16.mxu0 %v3386_v12  ;;  %v5621_v12 = vand.u32 4294901760, %v4553_v36  ;;  %v5628_v36 = vand.u32 4294901760, %v5584_v9  ;;  %v5634_v9 = vand.u32 4294901760, %v5596_v46  ;;  %v5646_v46 = vand.u32 4294901760, %v5645_v24 }
 0x348   :  { %v3424_v58 = vpack.c.bf16 %v5625_v20, %v5624_v33  ;;  %v3430_v3 = vpack.c.bf16 %v5631_v28, %v5630_v25  ;;  %v5655_v20 = vld [vmem:[#allocation21_spill] sm:$0xff]  ;;  %v5663_v28 = vld [vmem:[#allocation24_spill] sm:$0xff] }
 0x349   :  { %v3428_v59 = vpack.c.bf16 %v5629_v21, %v5628_v36  ;;  %v3434_v2 = vpack.c.bf16 %v5635_v42, %v5634_v9  ;;  %v3440_v56 = vpack.c.bf16 %v5646_v46, %v5644_v30  ;;  %v5660_v21 = vand.u32 4294901760, %v4821_v43 }
 0x34a   :  { %3389 = vmatpush1.bf16.msra.mxu0 %v3388_v53  ;;  %v3422_v53 = vpack.c.bf16 %v5622_v48, %v5621_v12  ;;  %v5652_v12 = vand.u32 4294901760, %v5651_v6 }
 0x34b   :  { %3391 = vmatprep.subr.bf16.mxu0 %v5608_v10 }
 0x34c   :  { %v3444_v48 = vpack.c.bf16 %v5652_v12, %v5650_v31 }
 0x34d   :  { %2472 = vmatmul.mubr.f32.vlgmr.msra.gmra.mrb[4].mxu0 %v4994_v5 }
 0x34e   :  { %3393 = vmatpush1.bf16.msra.mxu0 %v5609_v7  ;;  %2477 = vmatprep.mubr.f32.mxu0 %v5395_v57 }
 0x34f   :  { %3395 = vmatprep.subr.bf16.mxu0 %v5610_v40 }
 0x351   :  { %2480 = vmatmul.mubr.f32.gmra.mrb[6].mxu0 %v5003_v22  ;;  %v5638_v22 = vand.u32 4294901760, %v5637_v26 }
 0x352   :  { %3397 = vmatpush1.bf16.msra.mxu0 %v5611_v27  ;;  %2582 = vmatprep.mubr.f32.mxu0 %v5395_v57 }
 0x353   :  { %3399 = vmatprep.subr.bf16.mxu0 %v5612_v50  ;;  %v3436_v45 = vpack.c.bf16 %v5638_v22, %v5636_v39 }
 0x356   :  { %3401 = vmatpush1.bf16.msra.mxu0 %v5613_v51 }
 0x357   :  { %3403 = vmatprep.subr.bf16.mxu0 %v5614_v14 }
 0x35a   :  { %3405 = vmatpush1.bf16.msra.mxu0 %v5615_v32 }
 0x35b   :  { %3407 = vmatprep.subr.bf16.mxu0 %v5616_v13 }
 0x35e   :  { %3409 = vmatpush1.bf16.msra.mxu0 %v5617_v29 }
 0x35f   :  { %3411 = vmatprep.subr.bf16.mxu0 %v5618_v41 }
 0x362   :  { %3413 = vmatpush1.bf16.msra.mxu0 %v5619_v18 }
 0x363   :  { %3415 = vmatprep.subr.bf16.mxu0 %v4781_v61 }
 0x366   :  { %3417 = vmatpush1.bf16.msra.mxu0 %v4783_v44 }
 0x367   :  { %3419 = vmatprep.subr.bf16.mxu0 %v5620_v62 }
 0x36a   :  { %3421 = vmatpush1.bf16.msra.mxu0 %v5623_v8 }
 0x36b   :  { %3423 = vmatprep.subr.bf16.mxu0 %v3422_v53  ;;  %v5653_v53 = vld [vmem:[#allocation16_spill] sm:$0xff] }
 0x36c   :  { %v5654_v33 = vand.u32 4294901760, %v5653_v53 }
 0x36d   :  { %2586 = vmatmul.mubr.f32.vlgmr.msra.gmra.mrb[4].mxu0 %v2082_v37  ;;  %v5633_v37 = vand.u32 4294901760, %v5595_v0  ;;  %v5642_v0 = vand.u32 4294901760, %v5641_v47 }
 0x36e   :  { %3425 = vmatpush1.bf16.msra.mxu0 %v3424_v58  ;;  %2591 = vmatprep.mubr.f32.mxu0 %v5395_v57  ;;  %v5656_v58 = vand.u32 4294901760, %v5655_v20 }
 0x36f   :  { %3427 = vmatprep.subr.bf16.mxu0 %v3426_v63  ;;  %v3432_v5 = vpack.c.bf16 %v5633_v37, %v5632_v1  ;;  %v3438_v11 = vpack.c.bf16 %v5642_v0, %v5640_v52  ;;  %v5658_v63 = vld [vmem:[#allocation22_spill] sm:$0xff] }
 0x370   :  { %v3446_v54 = vpack.c.bf16 %v5656_v58, %v5654_v33  ;;  %v5659_v35 = vand.u32 4294901760, %v5658_v63  ;;  %v5665_v1 = vld [vmem:[#allocation26_spill] sm:$0xff] }
 0x371   :  { %2595 = vmatmul.mubr.f32.gmra.mrb[6].mxu0 %v2093_v17  ;;  %v3442_v17 = vpack.c.bf16 %v5649_v49, %v5647_v38  ;;  %v5666_v37 = vand.u32 4294901760, %v5665_v1 }
 0x372   :  { %3429 = vmatpush1.bf16.msra.mxu0 %v3428_v59  ;;  %2761 = vmatprep.mubr.f32.mxu0 %v5395_v57  ;;  %v3448_v36 = vpack.c.bf16 %v5659_v35, %v5657_v19  ;;  %v5661_v59 = vld [vmem:[#allocation17_spill] sm:$0xff] }
 0x373   :  { %3431 = vmatprep.subr.bf16.mxu0 %v3430_v3  ;;  %v5662_v16 = vand.u32 4294901760, %v5661_v59  ;;  %v5664_v3 = vand.u32 4294901760, %v5663_v28 }
 0x375   :  { %v3450_v25 = vpack.c.bf16 %v5662_v16, %v5660_v21 }
 0x376   :  { %3433 = vmatpush1.bf16.msra.mxu0 %v3432_v5  ;;  %v3452_v5 = vpack.c.bf16 %v5666_v37, %v5664_v3 }
 0x377   :  { %3435 = vmatprep.subr.bf16.mxu0 %v3434_v2 }
 0x37a   :  { %3437 = vmatpush1.bf16.msra.mxu0 %v3436_v45 }
 0x37b   :  { %3439 = vmatprep.subr.bf16.mxu0 %v3438_v11 }
 0x37e   :  { %3441 = vmatpush1.bf16.msra.mxu0 %v3440_v56 }
 0x37f   :  { %3443 = vmatprep.subr.bf16.mxu0 %v3442_v17 }
 0x382   :  { %3445 = vmatpush1.bf16.msra.mxu0 %v3444_v48 }
 0x383   :  { %3447 = vmatprep.subr.bf16.mxu0 %v3446_v54 }
 0x386   :  { %3449 = vmatpush1.bf16.msra.mxu0 %v3448_v36 }
 0x387   :  { %3451 = vmatprep.subr.bf16.mxu0 %v3450_v25 }
 0x38a   :  { %3453 = vmatpush1.bf16.msra.mxu0 %v3452_v5 }
 0x38b   :  { %3455 = vmatprep.subr.bf16.mxu0 %v5608_v10 }
 0x38d   :  { %2763 = vmatmul.mubr.f32.vlgmr.msra.gmra.mrb[4].mxu0 %v4991_v55 }
 0x38e   :  { %3457 = vmatpush1.bf16.msra.mxu0 %v5609_v7  ;;  %2768 = vmatprep.mubr.f32.mxu0 %v5395_v57 }
 0x38f   :  { %3459 = vmatprep.subr.bf16.mxu0 %v5610_v40 }
 0x391   :  { %2770 = vmatmul.mubr.f32.gmra.mrb[6].mxu0 %v4997_v34 }
 0x392   :  { %3461 = vmatpush1.bf16.msra.mxu0 %v5611_v27  ;;  %2872 = vmatprep.mubr.f32.mxu0 %v5395_v57 }
 0x393   :  { %3463 = vmatprep.subr.bf16.mxu0 %v5612_v50 }
 0x396   :  { %3465 = vmatpush1.bf16.msra.mxu0 %v5613_v51 }
 0x397   :  { %3467 = vmatprep.subr.bf16.mxu0 %v5614_v14 }
 0x39a   :  { %3469 = vmatpush1.bf16.msra.mxu0 %v5615_v32 }
 0x39b   :  { %3471 = vmatprep.subr.bf16.mxu0 %v5616_v13 }
 0x39e   :  { %3473 = vmatpush1.bf16.msra.mxu0 %v5617_v29 }
 0x39f   :  { %3475 = vmatprep.subr.bf16.mxu0 %v5618_v41 }
 0x3a2   :  { %3477 = vmatpush1.bf16.msra.mxu0 %v5619_v18 }
 0x3a3   :  { %3479 = vmatprep.subr.bf16.mxu0 %v4781_v61 }
 0x3a6   :  { %3481 = vmatpush1.bf16.msra.mxu0 %v4783_v44 }
 0x3a7   :  { %3483 = vmatprep.subr.bf16.mxu0 %v5620_v62 }
 0x3aa   :  { %3485 = vmatpush1.bf16.msra.mxu0 %v5623_v8 }
 0x3ad   :  { %2874 = vmatmul.mubr.f32.vlgmr.msra.gmra.mrb[4].mxu0 %v4991_v55 }
 0x3ae   :  { %2879 = vmatprep.mubr.f32.mxu0 %v5395_v57 }
 0x3b1   :  { %2881 = vmatmul.mubr.f32.gmra.mrb[6].mxu0 %v4997_v34 }
 0x480   :  { %v2875_v4 = vpop.f32.mrb[4].mxu0 }
 0x481   :  { %2889 = vst [vmem:[#allocation10 + $0x18] sm:$0xff] %v2875_v4  ;;  %v2877_v43 = vpop.f32.mrb[5].mxu0 }
 0x482   :  { %2887 = vst [vmem:[#allocation10 + $0x10] sm:$0xff] %v2877_v43 }
 0x484   :  { %v2882_v61 = vpop.f32.mrb[6].mxu0 }
 0x485   :  { %2890 = vst [vmem:[#allocation10 + $0x38] sm:$0xff] %v2882_v61  ;;  %v2884_v44 = vpop.f32.mrb[7].mxu0 }
 0x486   :  { %2888 = vst [vmem:[#allocation10 + $0x30] sm:$0xff] %v2884_v44 }
 0x487   :  { %3657 = shalt.err (!%p3654_p8)
}
 0x488   :  { %s3658_s15 = scalar_lea.hbm %s5155_s4, 1024 }
 0x489   :  { %p3659_p9 = scmp.ne.s32.totalorder %s5155_s4, %s3658_s15  ;;  %p3662_p10 = scmp.lt.u32.totalorder %s3658_s15, %s5155_s4 }
 0x48b   :  { %p3664_p11 = pnand %p3662_p10, %p3659_p9 }
 0x48d   :  { %3667 = shalt.err (!%p3664_p11)
}
 0x48e   :  { %s3686_s20 = smov 512   ;;  %s3687_s21 = smov 32  }
 0x48f   :  { %2902 = dma.vmem_to_hbm [thread:$0]  %s2897_s25, 1024, %s5155_s4, [#allocation4], %s3686_s20, %s3686_s20, %s3687_s21  }
 0x490   :  { %3674 = dma.done.wait [#allocation4], 1024  }
 0x491   :  { %3675 = vsyncadd [#allocation4], 4294966272 }
 0x492   :  { %2906 = vsyncpa [#allocation3], 1 }
 0x493   :  { %2907 = vsyncpa [#allocation6], 1 }
 0x494   :  { %2908 = vsyncpa [#allocation9], 1 }
 0x495   :  { %2909 = vsyncpa [#allocation4], 1 }

// kernel: tpu_custom_call.1
= control target key start
LH: loop header
LB: loop body
LE: loop exit
PB: predicated region body
PF: predicated region fallthrough
CT: control target
= control target key end

     0   :  { %9 = vsyncpa [#allocation3], 0  ;;  %s5151_s0 = inlined_call_operand.hbm [shape: f32[16,128], index: 0, kind: input, shape index: {}]   ;;  %s5152_s1 = inlined_call_operand.hbm [shape: f32[128,256], index: 1, kind: input, shape index: {}]   ;;  %s5153_s2 = inlined_call_operand.hbm [shape: f32[128,256], index: 2, kind: input, shape index: {}]   ;;  %s5154_s3 = inlined_call_operand.hbm [shape: f32[128,256], index: 3, kind: input, shape index: {}]   ;;  %s5155_s4 = inlined_call_operand.hbm [shape: f32[16,512], index: 4, kind: output, shape index: {}]  }
   0x1   :  { %10 = vsyncpa [#allocation6], 0 }
   0x2   :  { %11 = vsyncpa [#allocation9], 0 }
   0x3   :  { %12 = vsyncpa [#allocation4], 0  ;;  %s3676_s15 = smov [#allocation5]   ;;  %s3558_s19 = scalar_lea.hbm %s5152_s1, 4096 }
   0x4   :  { %s30_s16 = sshll.u32 %s3676_s15, 4  ;;  %p3559_p0 = scmp.ne.s32.totalorder %s5152_s1, %s3558_s19  ;;  %s31_s16 = int_to_ptr.vmem [resolvable:$true] %s30_s16 }
   0x5   :  { %p3562_p1 = scmp.lt.u32.totalorder %s3558_s19, %s5152_s1 }
   0x7   :  { %p3564_p2 = pnand %p3562_p1, %p3559_p0 }
   0x9   :  { %3567 = shalt.err (!%p3564_p2)
}
   0xa   :  { %s3568_s24 = scalar_lea.vmem %s31_s16, 4096  ;;  %p3573_p4 = scmp.lt.s32.totalorder %s31_s16, %s31_s16 }
   0xb   :  { %p3569_p3 = scmp.ne.s32.totalorder %s31_s16, %s3568_s24  ;;  %p3574_p5 = scmp.lt.s32.totalorder %s3568_s24, %s3568_s24 }
   0xd   :  { %p3575_p6 = por %p3574_p5, %p3573_p4 }
   0xf   :  { %p3576_p7 = pnand %p3575_p6, %p3569_p3 }
  0x11   :  { %3579 = shalt.err (!%p3576_p7)
}
  0x12   :  { %s3677_s25 = smov 256   ;;  %s3678_s26 = smov 16  }
  0x13   :  { %36 = dma.hbm_to_vmem [thread:$0]  %s5152_s1, 4096, %s31_s16, [#allocation6], %s3677_s25, %s3677_s25, %s3678_s26  }
  0x14   :  { %s3679_s29 = smov [#allocation2]   ;;  %s3580_s7 = scalar_lea.hbm %s5151_s0, 256 }
  0x15   :  { %s18_s30 = sshll.u32 %s3679_s29, 4  ;;  %p3581_p8 = scmp.ne.s32.totalorder %s5151_s0, %s3580_s7  ;;  %s19_s30 = int_to_ptr.vmem [resolvable:$true] %s18_s30 }
  0x16   :  { %p3584_p9 = scmp.lt.u32.totalorder %s3580_s7, %s5151_s0 }
  0x18   :  { %p3586_p10 = pnand %p3584_p9, %p3581_p8 }
  0x1a   :  { %3589 = shalt.err (!%p3586_p10)
}
  0x1b   :  { %s3590_s12 = scalar_lea.vmem %s19_s30, 256  ;;  %p3595_p12 = scmp.lt.s32.totalorder %s19_s30, %s19_s30 }
  0x1c   :  { %p3591_p11 = scmp.ne.s32.totalorder %s19_s30, %s3590_s12  ;;  %p3596_p13 = scmp.lt.s32.totalorder %s3590_s12, %s3590_s12 }
  0x1e   :  { %p3597_p0 = por %p3596_p13, %p3595_p12 }
  0x20   :  { %p3598_p1 = pnand %p3597_p0, %p3591_p11 }
  0x22   :  { %3601 = shalt.err (!%p3598_p1)
}
  0x23   :  { %s3680_s1 = smov 128   ;;  %s3681_s13 = smov 8  }
  0x24   :  { %24 = dma.hbm_to_vmem [thread:$0]  %s5151_s0, 256, %s19_s30, [#allocation3], %s3680_s1, %s3680_s1, %s3681_s13  }
  0x25   :  { %s3682_s16 = smov [#allocation7]   ;;  %s3683_s18 = smov [#allocation8]  }
  0x26   :  { %s42_s17 = sshll.u32 %s3682_s16, 4  ;;  %s54_s19 = sshll.u32 %s3683_s18, 4  ;;  %s43_s17 = int_to_ptr.vmem [resolvable:$true] %s42_s17  ;;  %s3740_s19 = int_to_ptr.vmem [resolvable:$true] %s54_s19 }
  0x27   :  { %s3602_s22 = scalar_lea.hbm %s5153_s2, 4096 }
  0x28   :  { %p3603_p2 = scmp.ne.s32.totalorder %s5153_s2, %s3602_s22  ;;  %p3606_p3 = scmp.lt.u32.totalorder %s3602_s22, %s5153_s2 }
  0x2a   :  { %p3608_p4 = pnand %p3606_p3, %p3603_p2 }
  0x2c   :  { %3611 = shalt.err (!%p3608_p4)
}
  0x2d   :  { %s3612_s0 = scalar_lea.vmem %s43_s17, 4096  ;;  %p3617_p6 = scmp.lt.s32.totalorder %s43_s17, %s43_s17 }
  0x2e   :  { %p3613_p5 = scmp.ne.s32.totalorder %s43_s17, %s3612_s0  ;;  %p3618_p7 = scmp.lt.s32.totalorder %s3612_s0, %s3612_s0 }
  0x30   :  { %p3619_p8 = por %p3618_p7, %p3617_p6 }
  0x32   :  { %p3620_p9 = pnand %p3619_p8, %p3613_p5 }
  0x34   :  { %3623 = shalt.err (!%p3620_p9)
}
  0x35   :  { %48 = dma.hbm_to_vmem [thread:$0]  %s5153_s2, 4096, %s43_s17, [#allocation6], %s3677_s25, %s3677_s25, %s3678_s26  }
  0x36   :  { %s3624_s7 = scalar_lea.hbm %s5154_s3, 4096 }
  0x37   :  { %p3625_p10 = scmp.ne.s32.totalorder %s5154_s3, %s3624_s7  ;;  %p3628_p11 = scmp.lt.u32.totalorder %s3624_s7, %s5154_s3 }
  0x39   :  { %p3630_p12 = pnand %p3628_p11, %p3625_p10 }
  0x3b   :  { %3633 = shalt.err (!%p3630_p12)
}
  0x3c   :  { %s3634_s12 = scalar_lea.vmem %s3740_s19, 4096  ;;  %p3639_p0 = scmp.lt.s32.totalorder %s3740_s19, %s3740_s19 }
  0x3d   :  { %p3635_p13 = scmp.ne.s32.totalorder %s3740_s19, %s3634_s12  ;;  %p3640_p1 = scmp.lt.s32.totalorder %s3634_s12, %s3634_s12 }
  0x3f   :  { %p3641_p2 = por %p3640_p1, %p3639_p0 }
  0x41   :  { %p3642_p3 = pnand %p3641_p2, %p3635_p13 }
  0x43   :  { %3645 = shalt.err (!%p3642_p3)
}
  0x44   :  { %60 = dma.hbm_to_vmem [thread:$0]  %s5154_s3, 4096, %s3740_s19, [#allocation9], %s3677_s25, %s3677_s25, %s3678_s26  }
  0x45   :  { %3668 = dma.done.wait [#allocation3], 256  }
  0x46   :  { %3669 = vsyncadd [#allocation3], 4294967040 }
  0x47   :  { %3670 = dma.done.wait [#allocation6], 8192  }
  0x48   :  { %3671 = vsyncadd [#allocation6], 4294959104 }
  0x49   :  { %3672 = dma.done.wait [#allocation9], 4096  }
  0x4a   :  { %3673 = vsyncadd [#allocation9], 4294963200  ;;  %v5156_v0 = vmov 0.0   ;;  %v76_v1 = vld [vmem:[#allocation5 + $0x8] sm:$0xff]  ;;  %v78_v2 = vld [vmem:[#allocation5 + $0x18] sm:$0xff]  ;;  %s3685_s3 = smov [#allocation10]  }
  0x4b   :  { %203 = vmatprep.mubr.f32.mxu1 %v5156_v0  ;;  %706 = vmatprep.mubr.f32.mxu0 %v5156_v0  ;;  %v75_v3 = vld [vmem:[#allocation5] sm:$0xff]  ;;  %v107_v4 = vand.u32 4294901760, %v76_v1  ;;  %v111_v5 = vand.u32 4294901760, %v78_v2  ;;  %v77_v6 = vld [vmem:[#allocation5 + $0x10] sm:$0xff]  ;;  %v80_v8 = vld [vmem:[#allocation5 + $0x28] sm:$0xff]  ;;  %s2896_s25 = sshll.u32 %s3685_s3, 4  ;;  %s2897_s25 = int_to_ptr.vmem [resolvable:$true] %s2896_s25 }
  0x4c   :  { %v109_v7 = vand.u32 4294901760, %v75_v3  ;;  %v82_v9 = vld [vmem:[#allocation5 + $0x38] sm:$0xff]  ;;  %v113_v10 = vand.u32 4294901760, %v77_v6  ;;  %v115_v11 = vand.u32 4294901760, %v80_v8  ;;  %v79_v13 = vld [vmem:[#allocation5 + $0x20] sm:$0xff]  ;;  %v81_v14 = vld [vmem:[#allocation5 + $0x30] sm:$0xff]  ;;  %p3651_p5 = scmp.lt.s32.totalorder %s2897_s25, %s2897_s25 }
  0x4d   :  { %v119_v12 = vand.u32 4294901760, %v82_v9  ;;  %v84_v15 = vld [vmem:[#allocation5 + $0x48] sm:$0xff]  ;;  %v3779_v16 = vpack.c.bf16 %v111_v5, %v107_v4  ;;  %v86_v17 = vld [vmem:[#allocation5 + $0x58] sm:$0xff]  ;;  %v83_v18 = vld [vmem:[#allocation5 + $0x40] sm:$0xff]  ;;  %v3781_v20 = vsub.f32 %v76_v1, %v107_v4  ;;  %v3788_v25 = vsub.f32 %v78_v2, %v111_v5  ;;  %s3646_s26 = scalar_lea.vmem %s2897_s25, 1024 }
  0x4e   :  { %v85_v19 = vld [vmem:[#allocation5 + $0x50] sm:$0xff]  ;;  %v3783_v21 = vpack.c.bf16 %v113_v10, %v109_v7  ;;  %v88_v23 = vld [vmem:[#allocation5 + $0x68] sm:$0xff]  ;;  %v90_v24 = vld [vmem:[#allocation5 + $0x78] sm:$0xff]  ;;  %v117_v26 = vand.u32 4294901760, %v79_v13  ;;  %v121_v27 = vand.u32 4294901760, %v81_v14  ;;  %v123_v28 = vand.u32 4294901760, %v84_v15  ;;  %p3647_p4 = scmp.ne.s32.totalorder %s2897_s25, %s3646_s26  ;;  %p3652_p6 = scmp.lt.s32.totalorder %s3646_s26, %s3646_s26 }
  0x4f   :  { %v3785_v22 = vpack.c.bf16 %v119_v12, %v115_v11  ;;  %2911 = vmatprep.subr.bf16.mxu1 %v3779_v16  ;;  %3007 = vmatprep.subr.bf16.mxu0 %v3779_v16  ;;  %v3792_v29 = vsub.f32 %v75_v3, %v109_v7  ;;  %v127_v30 = vand.u32 4294901760, %v86_v17  ;;  %v125_v31 = vand.u32 4294901760, %v83_v18  ;;  %v87_v37 = vld [vmem:[#allocation5 + $0x60] sm:$0xff]  ;;  %v89_v38 = vld [vmem:[#allocation5 + $0x70] sm:$0xff]  ;;  %v92_v39 = vld [vmem:[#allocation5 + $0x88] sm:$0xff] }
  0x50   :  { %5371 = vst [vmem:[#allocation15_spill] sm:$0xff] %v3783_v21  ;;  %2913 = vmatpush1.bf16.msra.mxu1 %v3783_v21  ;;  %3009 = vmatpush1.bf16.msra.mxu0 %v3783_v21  ;;  %v129_v32 = vand.u32 4294901760, %v85_v19  ;;  %v3795_v33 = vsub.f32 %v77_v6, %v113_v10  ;;  %v3799_v34 = vpack.c.bf16 %v121_v27, %v117_v26  ;;  %v131_v35 = vand.u32 4294901760, %v88_v23  ;;  %v94_v44 = vld [vmem:[#allocation5 + $0x98] sm:$0xff]  ;;  %v91_v45 = vld [vmem:[#allocation5 + $0x80] sm:$0xff]  ;;  %v93_v46 = vld [vmem:[#allocation5 + $0x90] sm:$0xff]  ;;  %p3653_p7 = por %p3652_p6, %p3651_p5 }
  0x51   :  { %5372 = vst [vmem:[#allocation16_spill] sm:$0xff] %v3785_v22  ;;  %2915 = vmatprep.subr.bf16.mxu1 %v3785_v22  ;;  %3011 = vmatprep.subr.bf16.mxu0 %v3785_v22  ;;  %v135_v36 = vand.u32 4294901760, %v90_v24  ;;  %v3801_v40 = vsub.f32 %v80_v8, %v115_v11  ;;  %v3803_v41 = vsub.f32 %v82_v9, %v119_v12  ;;  %v96_v51 = vld [vmem:[#allocation5 + $0xa8] sm:$0xff]  ;;  %v133_v53 = vand.u32 4294901760, %v87_v37  ;;  %v98_v60 = vld [vmem:[#allocation5 + $0xb8] sm:$0xff]  ;;  %v95_v61 = vld [vmem:[#allocation5 + $0xa0] sm:$0xff] }
  0x52   :  { %5373 = vst [vmem:[#allocation17_spill] sm:$0xff] %v3799_v34  ;;  %v3805_v42 = vsub.f32 %v79_v13, %v117_v26  ;;  %v3807_v43 = vpack.c.bf16 %v127_v30, %v123_v28  ;;  %v3809_v47 = vsub.f32 %v81_v14, %v121_v27  ;;  %v3811_v48 = vsub.f32 %v84_v15, %v123_v28  ;;  %v97_v3 = vld [vmem:[#allocation5 + $0xb0] sm:$0xff]  ;;  %v100_v4 = vld [vmem:[#allocation5 + $0xc8] sm:$0xff]  ;;  %v102_v5 = vld [vmem:[#allocation5 + $0xd8] sm:$0xff]  ;;  %p3654_p8 = pnand %p3653_p7, %p3647_p4 }
  0x53   :  { %v3813_v49 = vsub.f32 %v86_v17, %v127_v30  ;;  %v3815_v50 = vpack.c.bf16 %v129_v32, %v125_v31  ;;  %v3819_v52 = vsub.f32 %v83_v18, %v125_v31  ;;  %v137_v54 = vand.u32 4294901760, %v89_v38  ;;  %v99_v10 = vld [vmem:[#allocation5 + $0xc0] sm:$0xff]  ;;  %v101_v15 = vld [vmem:[#allocation5 + $0xd0] sm:$0xff]  ;;  %v106_v31 = vld [vmem:[#allocation5 + $0xf8] sm:$0xff] }
  0x54   :  { %5374 = vst [vmem:[#allocation18_spill] sm:$0xff] %v3805_v42  ;;  %5375 = vst [vmem:[#allocation19_spill] sm:$0xff] %v3807_v43  ;;  %2917 = vmatpush1.bf16.msra.mxu1 %v3799_v34  ;;  %3013 = vmatpush1.bf16.msra.mxu0 %v3799_v34  ;;  %v139_v55 = vand.u32 4294901760, %v92_v39  ;;  %v3823_v56 = vpack.c.bf16 %v135_v36, %v131_v35  ;;  %v143_v57 = vand.u32 4294901760, %v94_v44  ;;  %v141_v58 = vand.u32 4294901760, %v91_v45 }
  0x55   :  { %5376 = vst [vmem:[#allocation20_spill] sm:$0xff] %v3809_v47  ;;  %5377 = vst [vmem:[#allocation21_spill] sm:$0xff] %v3811_v48  ;;  %2919 = vmatprep.subr.bf16.mxu1 %v3807_v43  ;;  %3015 = vmatprep.subr.bf16.mxu0 %v3807_v43  ;;  %v145_v59 = vand.u32 4294901760, %v93_v46  ;;  %v3825_v62 = vsub.f32 %v85_v19, %v129_v32  ;;  %v3827_v63 = vsub.f32 %v88_v23, %v131_v35  ;;  %v103_v32 = vld [vmem:[#allocation5 + $0xe0] sm:$0xff] }
  0x56   :  { %5378 = vst [vmem:[#allocation22_spill] sm:$0xff] %v3813_v49  ;;  %5379 = vst [vmem:[#allocation23_spill] sm:$0xff] %v3815_v50  ;;  %v3829_v1 = vsub.f32 %v90_v24, %v135_v36  ;;  %v147_v2 = vand.u32 4294901760, %v96_v51  ;;  %v3831_v6 = vpack.c.bf16 %v137_v54, %v133_v53  ;;  %v3833_v7 = vsub.f32 %v87_v37, %v133_v53  ;;  %v104_v24 = vld [vmem:[#allocation5 + $0xe8] sm:$0xff] }
  0x57   :  { %5380 = vst [vmem:[#allocation24_spill] sm:$0xff] %v3819_v52  ;;  %5381 = vst [vmem:[#allocation25_spill] sm:$0xff] %v3823_v56  ;;  %v3835_v8 = vsub.f32 %v89_v38, %v137_v54  ;;  %v3837_v9 = vsub.f32 %v92_v39, %v139_v55  ;;  %v3841_v11 = vpack.c.bf16 %v143_v57, %v139_v55  ;;  %v151_v13 = vand.u32 4294901760, %v98_v60  ;;  %v105_v39 = vld [vmem:[#allocation5 + $0xf0] sm:$0xff] }
  0x58   :  { %5382 = vst [vmem:[#allocation26_spill] sm:$0xff] %v3825_v62  ;;  %5383 = vst [vmem:[#allocation27_spill] sm:$0xff] %v3831_v6  ;;  %2921 = vmatpush1.bf16.msra.mxu1 %v3815_v50  ;;  %3017 = vmatpush1.bf16.msra.mxu0 %v3815_v50  ;;  %v3843_v12 = vsub.f32 %v94_v44, %v143_v57  ;;  %v149_v14 = vand.u32 4294901760, %v95_v61  ;;  %v3847_v17 = vpack.c.bf16 %v145_v59, %v141_v58  ;;  %v73_v44 = vld [vmem:[#allocation2] sm:$0xff] }
  0x59   :  { %5384 = vst [vmem:[#allocation28_spill] sm:$0xff] %v3841_v11  ;;  %2923 = vmatprep.subr.bf16.mxu1 %v3823_v56  ;;  %3019 = vmatprep.subr.bf16.mxu0 %v3823_v56  ;;  %v153_v18 = vand.u32 4294901760, %v97_v3  ;;  %v155_v19 = vand.u32 4294901760, %v100_v4  ;;  %v159_v23 = vand.u32 4294901760, %v102_v5  ;;  %v3849_v26 = vsub.f32 %v91_v45, %v141_v58 }
  0x5a   :  { %5385 = vst [vmem:[#allocation29_spill] sm:$0xff] %v3847_v17  ;;  %v3851_v27 = vsub.f32 %v93_v46, %v145_v59  ;;  %v3853_v28 = vsub.f32 %v96_v51, %v147_v2  ;;  %v157_v30 = vand.u32 4294901760, %v99_v10  ;;  %v3855_v35 = vpack.c.bf16 %v151_v13, %v147_v2 }
  0x5b   :  { %v3857_v36 = vsub.f32 %v98_v60, %v151_v13  ;;  %v3859_v37 = vsub.f32 %v95_v61, %v149_v14  ;;  %v161_v38 = vand.u32 4294901760, %v101_v15  ;;  %v3863_v45 = vpack.c.bf16 %v153_v18, %v149_v14 }
  0x5c   :  { %5386 = vst [vmem:[#allocation30_spill] sm:$0xff] %v3855_v35  ;;  %2925 = vmatpush1.bf16.msra.mxu1 %v3831_v6  ;;  %3021 = vmatpush1.bf16.msra.mxu0 %v3831_v6  ;;  %v3865_v46 = vsub.f32 %v97_v3, %v153_v18  ;;  %v3867_v51 = vpack.c.bf16 %v159_v23, %v155_v19  ;;  %v163_v53 = vand.u32 4294901760, %v104_v24  ;;  %v167_v57 = vand.u32 4294901760, %v106_v31 }
  0x5d   :  { %5387 = vst [vmem:[#allocation31_spill] sm:$0xff] %v3863_v45  ;;  %2927 = vmatprep.subr.bf16.mxu1 %v3841_v11  ;;  %3023 = vmatprep.subr.bf16.mxu0 %v3841_v11  ;;  %v3871_v54 = vsub.f32 %v100_v4, %v155_v19  ;;  %v3873_v55 = vsub.f32 %v102_v5, %v159_v23  ;;  %v165_v58 = vand.u32 4294901760, %v103_v32  ;;  %v169_v59 = vand.u32 4294901760, %v105_v39 }
  0x5e   :  { %5388 = vst [vmem:[#allocation32_spill] sm:$0xff] %v3865_v46  ;;  %5389 = vst [vmem:[#allocation33_spill] sm:$0xff] %v3867_v51  ;;  %v228_v60 = vand.u32 4294901760, %v3781_v20  ;;  %v240_v61 = vand.u32 4294901760, %v3788_v25  ;;  %v3877_v2 = vand.u32 4294901760, %v73_v44  ;;  %v3879_v3 = vpack.c.bf16 %v161_v38, %v157_v30 }
  0x5f   :  { %5390 = vst [vmem:[#allocation34_spill] sm:$0xff] %v3871_v54  ;;  %v3881_v13 = vsub.f32 %v99_v10, %v157_v30  ;;  %v3883_v14 = vsub.f32 %v101_v15, %v161_v38  ;;  %v3885_v18 = vsub.f32 %v104_v24, %v163_v53  ;;  %v3889_v4 = vpack.c.bf16 %v167_v57, %v163_v53 }
  0x60   :  { %5391 = vst [vmem:[#allocation35_spill] sm:$0xff] %v3879_v3  ;;  %2929 = vmatpush1.bf16.msra.mxu1 %v3847_v17  ;;  %3025 = vmatpush1.bf16.msra.mxu0 %v3847_v17  ;;  %v229_v5 = vsub.f32 %v3781_v20, %v228_v60  ;;  %v241_v19 = vsub.f32 %v3788_v25, %v240_v61  ;;  %v234_v23 = vand.u32 4294901760, %v3792_v29  ;;  %v246_v24 = vand.u32 4294901760, %v3795_v33 }
  0x61   :  { %5392 = vst [vmem:[#allocation36_spill] sm:$0xff] %v3889_v4  ;;  %2931 = vmatprep.subr.bf16.mxu1 %v3855_v35  ;;  %3027 = vmatprep.subr.bf16.mxu0 %v3855_v35  ;;  %v3896_v10 = vsub.f32 %v106_v31, %v167_v57  ;;  %v3899_v15 = vsub.f32 %v73_v44, %v3877_v2  ;;  %v252_v30 = vand.u32 4294901760, %v3801_v40  ;;  %v264_v17 = vand.u32 4294901760, %v3803_v41 }
  0x62   :  { %v3903_v38 = vpack.c.bf16 %v169_v59, %v165_v58  ;;  %v3905_v53 = vsub.f32 %v103_v32, %v165_v58  ;;  %v235_v0 = vsub.f32 %v3792_v29, %v234_v23  ;;  %v230_v11 = vand.u32 4294901760, %v229_v5 }
  0x63   :  { %5393 = vst [vmem:[#allocation37_spill] sm:$0xff] %v3899_v15  ;;  %v242_v6 = vand.u32 4294901760, %v241_v19  ;;  %v206_v31 = vand.u32 4294901760, %v3899_v15  ;;  %v247_v57 = vsub.f32 %v3795_v33, %v246_v24  ;;  %v3913_v44 = vsub.f32 %v105_v39, %v169_v59 }
  0x64   :  { %5394 = vst [vmem:[#allocation38_spill] sm:$0xff] %v3903_v38  ;;  %2933 = vmatpush1.bf16.msra.mxu1 %v3863_v45  ;;  %3029 = vmatpush1.bf16.msra.mxu0 %v3863_v45  ;;  %v253_v35 = vsub.f32 %v3801_v40, %v252_v30  ;;  %v265_v32 = vsub.f32 %v3803_v41, %v264_v17  ;;  %v236_v19 = vand.u32 4294901760, %v235_v0  ;;  %v258_v56 = vand.u32 4294901760, %v3805_v42 }
  0x65   :  { %2935 = vmatprep.subr.bf16.mxu1 %v3867_v51  ;;  %3031 = vmatprep.subr.bf16.mxu0 %v3867_v51  ;;  %v3038_v58 = vpack.c.bf16 %v240_v61, %v228_v60  ;;  %v207_v5 = vsub.f32 %v3899_v15, %v206_v31  ;;  %v248_v50 = vand.u32 4294901760, %v247_v57  ;;  %v270_v43 = vand.u32 4294901760, %v3809_v47 }
  0x66   :  { %v276_v39 = vand.u32 4294901760, %v3811_v48  ;;  %v288_v59 = vand.u32 4294901760, %v3813_v49  ;;  %v2942_v45 = vpack.c.bf16 %v242_v6, %v230_v11  ;;  %v3040_v34 = vpack.c.bf16 %v246_v24, %v234_v23 }
  0x67   :  { %v259_v22 = vsub.f32 %v3805_v42, %v258_v56  ;;  %v282_v21 = vand.u32 4294901760, %v3819_v52  ;;  %v254_v0 = vand.u32 4294901760, %v253_v35  ;;  %v266_v60 = vand.u32 4294901760, %v265_v32 }
  0x68   :  { %2937 = vmatpush1.bf16.msra.mxu1 %v3879_v3  ;;  %3033 = vmatpush1.bf16.msra.mxu0 %v3879_v3  ;;  %v271_v61 = vsub.f32 %v3809_v47, %v270_v43  ;;  %v294_v57 = vand.u32 4294901760, %v3825_v62  ;;  %v3042_v6 = vpack.c.bf16 %v264_v17, %v252_v30  ;;  %v277_v11 = vsub.f32 %v3811_v48, %v276_v39 }
  0x69   :  { %2939 = vmatprep.subr.bf16.mxu1 %v3889_v4  ;;  %3035 = vmatprep.subr.bf16.mxu0 %v3889_v4  ;;  %v289_v23 = vsub.f32 %v3813_v49, %v288_v59  ;;  %v208_v24 = vand.u32 4294901760, %v207_v5  ;;  %v2944_v15 = vpack.c.bf16 %v248_v50, %v236_v19  ;;  %v283_v51 = vsub.f32 %v3819_v52, %v282_v21 }
  0x6a   :  { %v295_v35 = vsub.f32 %v3825_v62, %v294_v57  ;;  %v260_v32 = vand.u32 4294901760, %v259_v22  ;;  %v272_v3 = vand.u32 4294901760, %v271_v61  ;;  %v300_v47 = vand.u32 4294901760, %v3827_v63 }
  0x6b   :  { %v312_v42 = vand.u32 4294901760, %v3829_v1  ;;  %v2946_v17 = vpack.c.bf16 %v266_v60, %v254_v0  ;;  %v3044_v30 = vpack.c.bf16 %v270_v43, %v258_v56  ;;  %v278_v4 = vand.u32 4294901760, %v277_v11 }
  0x6c   :  { %2941 = vmatpush1.bf16.msra.mxu1 %v3903_v38  ;;  %3037 = vmatpush1.bf16.msra.mxu0 %v3903_v38  ;;  %v306_v5 = vand.u32 4294901760, %v3833_v7  ;;  %v290_v50 = vand.u32 4294901760, %v289_v23  ;;  %v301_v19 = vsub.f32 %v3827_v63, %v300_v47  ;;  %v318_v61 = vand.u32 4294901760, %v3835_v8 }
  0x6d   :  { %2943 = vmatprep.subr.bf16.mxu1 %v2942_v45  ;;  %3039 = vmatprep.subr.bf16.mxu0 %v3038_v58  ;;  %v313_v22 = vsub.f32 %v3829_v1, %v312_v42  ;;  %v3046_v62 = vpack.c.bf16 %v288_v59, %v276_v39  ;;  %v284_v52 = vand.u32 4294901760, %v283_v51  ;;  %v296_v49 = vand.u32 4294901760, %v295_v35 }
  0x6e   :  { %v324_v48 = vand.u32 4294901760, %v3837_v9  ;;  %v2948_v43 = vpack.c.bf16 %v272_v3, %v260_v32  ;;  %v3048_v56 = vpack.c.bf16 %v294_v57, %v282_v21  ;;  %v302_v0 = vand.u32 4294901760, %v301_v19 }
  0x6f   :  { %209 = vmatmul.mubr.f32.vlgmr.msra.gmra.mrb[0].mxu1 %v208_v24  ;;  %710 = vmatmul.mubr.f32.vlgmr.msra.gmra.mrb[0].mxu0 %v206_v31  ;;  %v307_v45 = vsub.f32 %v3833_v7, %v306_v5  ;;  %v314_v58 = vand.u32 4294901760, %v313_v22  ;;  %v319_v60 = vsub.f32 %v3835_v8, %v318_v61  ;;  %v336_v11 = vand.u32 4294901760, %v3843_v12 }
  0x70   :  { %2945 = vmatpush1.bf16.msra.mxu1 %v2944_v15  ;;  %3041 = vmatpush1.bf16.msra.mxu0 %v3040_v34  ;;  %v330_v39 = vand.u32 4294901760, %v3849_v26  ;;  %v2950_v51 = vpack.c.bf16 %v290_v50, %v278_v4  ;;  %v325_v59 = vsub.f32 %v3837_v9, %v324_v48  ;;  %v342_v3 = vand.u32 4294901760, %v3851_v27 }
  0x71   :  { %2947 = vmatprep.subr.bf16.mxu1 %v2946_v17  ;;  %3043 = vmatprep.subr.bf16.mxu0 %v3042_v6  ;;  %v348_v21 = vand.u32 4294901760, %v3853_v28  ;;  %v2952_v31 = vpack.c.bf16 %v296_v49, %v284_v52  ;;  %v337_v15 = vsub.f32 %v3843_v12, %v336_v11  ;;  %v5395_v57 = vmov 0.0  }
  0x72   :  { %v331_v34 = vsub.f32 %v3849_v26, %v330_v39  ;;  %214 = vmatprep.mubr.f32.mxu1 %v5395_v57  ;;  %715 = vmatprep.mubr.f32.mxu0 %v5395_v57  ;;  %v3050_v23 = vpack.c.bf16 %v312_v42, %v300_v47  ;;  %v308_v24 = vand.u32 4294901760, %v307_v45  ;;  %v343_v6 = vsub.f32 %v3851_v27, %v342_v3 }
  0x73   :  { %v349_v4 = vsub.f32 %v3853_v28, %v348_v21  ;;  %v2954_v35 = vpack.c.bf16 %v314_v58, %v302_v0  ;;  %v320_v32 = vand.u32 4294901760, %v319_v60  ;;  %v360_v49 = vand.u32 4294901760, %v3857_v36 }
  0x74   :  { %2949 = vmatpush1.bf16.msra.mxu1 %v2948_v43  ;;  %3045 = vmatpush1.bf16.msra.mxu0 %v3044_v30  ;;  %v354_v52 = vand.u32 4294901760, %v3859_v37  ;;  %v326_v17 = vand.u32 4294901760, %v325_v59  ;;  %v338_v50 = vand.u32 4294901760, %v337_v15  ;;  %v366_v19 = vand.u32 4294901760, %v3865_v46 }
  0x75   :  { %2951 = vmatprep.subr.bf16.mxu1 %v2950_v51  ;;  %3047 = vmatprep.subr.bf16.mxu0 %v3046_v62  ;;  %v372_v42 = vand.u32 4294901760, %v3871_v54  ;;  %v3052_v47 = vpack.c.bf16 %v318_v61, %v306_v5  ;;  %v332_v22 = vand.u32 4294901760, %v331_v34  ;;  %v344_v45 = vand.u32 4294901760, %v343_v6 }
  0x76   :  { %v361_v43 = vsub.f32 %v3857_v36, %v360_v49  ;;  %v350_v30 = vand.u32 4294901760, %v349_v4  ;;  %v355_v0 = vsub.f32 %v3859_v37, %v354_v52  ;;  %v367_v58 = vsub.f32 %v3865_v46, %v366_v19  ;;  %v74_v4 = vld [vmem:[#allocation2 + $0x8] sm:$0xff] }
  0x77   :  { %v373_v60 = vsub.f32 %v3871_v54, %v372_v42  ;;  %v2956_v62 = vpack.c.bf16 %v320_v32, %v308_v24  ;;  %v384_v59 = vand.u32 4294901760, %v3873_v55  ;;  %v378_v15 = vand.u32 4294901760, %v3881_v13 }
  0x78   :  { %2953 = vmatpush1.bf16.msra.mxu1 %v2952_v31  ;;  %3049 = vmatpush1.bf16.msra.mxu0 %v3048_v56  ;;  %v362_v51 = vand.u32 4294901760, %v361_v43  ;;  %v2958_v5 = vpack.c.bf16 %v338_v50, %v326_v17  ;;  %v3054_v61 = vpack.c.bf16 %v336_v11, %v324_v48  ;;  %v390_v34 = vand.u32 4294901760, %v3883_v14 }
  0x79   :  { %2955 = vmatprep.subr.bf16.mxu1 %v2954_v35  ;;  %3051 = vmatprep.subr.bf16.mxu0 %v3050_v23  ;;  %v396_v6 = vand.u32 4294901760, %v3885_v18  ;;  %v2960_v38 = vpack.c.bf16 %v344_v45, %v332_v22  ;;  %v3056_v46 = vpack.c.bf16 %v342_v3, %v330_v39  ;;  %v3058_v54 = vpack.c.bf16 %v360_v49, %v348_v21 }
  0x7a   :  { %v385_v56 = vsub.f32 %v3873_v55, %v384_v59  ;;  %v2962_v31 = vpack.c.bf16 %v362_v51, %v350_v30  ;;  %v356_v24 = vand.u32 4294901760, %v355_v0  ;;  %v368_v32 = vand.u32 4294901760, %v367_v58 }
  0x7b   :  { %v374_v43 = vand.u32 4294901760, %v373_v60  ;;  %v379_v23 = vsub.f32 %v3881_v13, %v378_v15  ;;  %v391_v48 = vsub.f32 %v3883_v14, %v390_v34  ;;  %v408_v11 = vand.u32 4294901760, %v3896_v10 }
  0x7c   :  { %2957 = vmatpush1.bf16.msra.mxu1 %v2956_v62  ;;  %3053 = vmatpush1.bf16.msra.mxu0 %v3052_v47  ;;  %v3974_v35 = vand.u32 4294901760, %v74_v4  ;;  %v386_v39 = vand.u32 4294901760, %v385_v56  ;;  %v397_v3 = vsub.f32 %v3885_v18, %v396_v6  ;;  %v402_v21 = vand.u32 4294901760, %v3905_v53 }
  0x7d   :  { %2959 = vmatprep.subr.bf16.mxu1 %v2958_v5  ;;  %3055 = vmatprep.subr.bf16.mxu0 %v3054_v61  ;;  %v414_v49 = vand.u32 4294901760, %v3913_v44  ;;  %v409_v17 = vsub.f32 %v3896_v10, %v408_v11  ;;  %v3060_v47 = vpack.c.bf16 %v366_v19, %v354_v52  ;;  %v2964_v30 = vpack.c.bf16 %v368_v32, %v356_v24  ;;  %v3987_v52 = vld [vmem:[#allocation7 + $0x8] sm:$0xff]  ;;  %v3992_v24 = vld [vmem:[#allocation7] sm:$0xff] }
  0x7e   :  { %v3981_v50 = vsub.f32 %v74_v4, %v3974_v35  ;;  %v403_v22 = vsub.f32 %v3905_v53, %v402_v21  ;;  %v380_v0 = vand.u32 4294901760, %v379_v23  ;;  %v392_v58 = vand.u32 4294901760, %v391_v48  ;;  %v3997_v23 = vld [vmem:[#allocation7 + $0x28] sm:$0xff]  ;;  %v3999_v48 = vld [vmem:[#allocation7 + $0x38] sm:$0xff] }
  0x7f   :  { %v415_v45 = vsub.f32 %v3913_v44, %v414_v49  ;;  %v2966_v62 = vpack.c.bf16 %v386_v39, %v374_v43  ;;  %v3062_v51 = vpack.c.bf16 %v384_v59, %v372_v42  ;;  %v398_v5 = vand.u32 4294901760, %v397_v3  ;;  %v3994_v42 = vld [vmem:[#allocation7 + $0x10] sm:$0xff]  ;;  %v4001_v39 = vld [vmem:[#allocation7 + $0x20] sm:$0xff] }
  0x80   :  { %2961 = vmatpush1.bf16.msra.mxu1 %v2960_v38  ;;  %3057 = vmatpush1.bf16.msra.mxu0 %v3056_v46  ;;  %v217_v60 = vand.u32 4294901760, %v3981_v50  ;;  %v410_v61 = vand.u32 4294901760, %v409_v17  ;;  %v404_v19 = vand.u32 4294901760, %v403_v22  ;;  %v3990_v46 = vld [vmem:[#allocation7 + $0x18] sm:$0xff]  ;;  %v2968_v38 = vpack.c.bf16 %v392_v58, %v380_v0  ;;  %v4006_v17 = vld [vmem:[#allocation7 + $0x30] sm:$0xff]  ;;  %v4028_v0 = vld [vmem:[#allocation7 + $0x40] sm:$0xff] }
  0x81   :  { %2963 = vmatprep.subr.bf16.mxu1 %v2962_v31  ;;  %3059 = vmatprep.subr.bf16.mxu0 %v3058_v54  ;;  %v416_v56 = vand.u32 4294901760, %v415_v45  ;;  %v3064_v31 = vpack.c.bf16 %v390_v34, %v378_v15  ;;  %v3066_v32 = vpack.c.bf16 %v408_v11, %v396_v6  ;;  %v5194_v43 = vand.u32 4294901760, %v3987_v52 }
  0x82   :  { %v218_v4 = vsub.f32 %v3981_v50, %v217_v60  ;;  %719 = vmatmul.mubr.f32.gmra.mrb[2].mxu0 %v217_v60  ;;  %v2970_v59 = vpack.c.bf16 %v410_v61, %v398_v5  ;;  %v3068_v3 = vpack.c.bf16 %v414_v49, %v402_v21  ;;  %v2974_v15 = vpack.c.bf16 %v3788_v25, %v3781_v20  ;;  %v4042_v5 = vld [vmem:[#allocation7 + $0x50] sm:$0xff]  ;;  %v4044_v61 = vld [vmem:[#allocation7 + $0x68] sm:$0xff] }
  0x83   :  { %885 = vmatprep.mubr.f32.mxu0 %v5395_v57  ;;  %v5188_v34 = vand.u32 4294901760, %v3990_v46  ;;  %v2972_v6 = vpack.c.bf16 %v416_v56, %v404_v19  ;;  %v4014_v11 = vsub.f32 %v3987_v52, %v5194_v43  ;;  %v5187_v22 = vand.u32 4294901760, %v3992_v24  ;;  %v5407_v43 = vld [vmem:[#allocation15_spill] sm:$0xff] }
  0x84   :  { %2965 = vmatpush1.bf16.msra.mxu1 %v2964_v30  ;;  %3061 = vmatpush1.bf16.msra.mxu0 %v3060_v47  ;;  %v219_v54 = vand.u32 4294901760, %v218_v4  ;;  %v4008_v47 = vld [vmem:[#allocation7 + $0x48] sm:$0xff]  ;;  %v5186_v21 = vand.u32 4294901760, %v3994_v42  ;;  %v5184_v25 = vand.u32 4294901760, %v3997_v23  ;;  %v5182_v49 = vand.u32 4294901760, %v3999_v48  ;;  %v4026_v30 = vld [vmem:[#allocation7 + $0x58] sm:$0xff] }
  0x85   :  { %2967 = vmatprep.subr.bf16.mxu1 %v2966_v62  ;;  %3063 = vmatprep.subr.bf16.mxu0 %v3062_v51  ;;  %v4021_v20 = vsub.f32 %v3990_v46, %v5188_v34  ;;  %v5183_v45 = vand.u32 4294901760, %v4001_v39  ;;  %v4033_v58 = vsub.f32 %v3992_v24, %v5187_v22  ;;  %v5185_v62 = vand.u32 4294901760, %v4006_v17  ;;  %v4085_v34 = vld [vmem:[#allocation7 + $0x88] sm:$0xff] }
  0x86   :  { %220 = vmatmul.mubr.f32.gmra.mrb[2].mxu1 %v219_v54  ;;  %v4038_v60 = vsub.f32 %v3994_v42, %v5186_v21  ;;  %v5193_v51 = vand.u32 4294901760, %v4008_v47  ;;  %v4049_v4 = vsub.f32 %v3997_v23, %v5184_v25  ;;  %v4054_v19 = vsub.f32 %v3999_v48, %v5182_v49 }
  0x87   :  { %450 = vmatprep.mubr.f32.mxu1 %v5395_v57  ;;  %5396 = vst [vmem:[#allocation39_spill] sm:$0xff] %v4033_v58  ;;  %v4059_v56 = vsub.f32 %v4001_v39, %v5183_v45  ;;  %v4068_v54 = vsub.f32 %v4006_v17, %v5185_v62  ;;  %v5189_v49 = vand.u32 4294901760, %v4028_v0  ;;  %v4077_v45 = vld [vmem:[#allocation7 + $0x70] sm:$0xff]  ;;  %v2976_v25 = vpack.c.bf16 %v3795_v33, %v3792_v29 }
  0x88   :  { %2969 = vmatpush1.bf16.msra.mxu1 %v2968_v38  ;;  %3065 = vmatpush1.bf16.msra.mxu0 %v3064_v31  ;;  %5397 = vst [vmem:[#allocation40_spill] sm:$0xff] %v4038_v60  ;;  %5398 = vst [vmem:[#allocation41_spill] sm:$0xff] %v4049_v4  ;;  %v4061_v38 = vld [vmem:[#allocation7 + $0x78] sm:$0xff]  ;;  %v4063_v31 = vld [vmem:[#allocation7 + $0x60] sm:$0xff]  ;;  %v2978_v62 = vpack.c.bf16 %v3803_v41, %v3801_v40  ;;  %v5191_v21 = vand.u32 4294901760, %v4042_v5  ;;  %v5192_v22 = vand.u32 4294901760, %v4044_v61 }
  0x89   :  { %2971 = vmatprep.subr.bf16.mxu1 %v2970_v59  ;;  %3067 = vmatprep.subr.bf16.mxu0 %v3066_v32  ;;  %5399 = vst [vmem:[#allocation42_spill] sm:$0xff] %v4054_v19  ;;  %v5190_v59 = vand.u32 4294901760, %v4026_v30  ;;  %v4074_v32 = vsub.f32 %v4008_v47, %v5193_v51  ;;  %v4096_v29 = vsub.f32 %v4028_v0, %v5189_v49  ;;  %v5199_v33 = vand.u32 4294901760, %v4061_v38  ;;  %v4100_v41 = vld [vmem:[#allocation7 + $0x98] sm:$0xff]  ;;  %v4113_v49 = vld [vmem:[#allocation7 + $0x80] sm:$0xff] }
  0x8a   :  { %v5201_v40 = vand.u32 4294901760, %v4063_v31  ;;  %v5205_v51 = vand.u32 4294901760, %v4085_v34 }
  0x8b   :  { %5400 = vst [vmem:[#allocation43_spill] sm:$0xff] %v4074_v32  ;;  %5402 = vst [vmem:[#allocation45_spill] sm:$0xff] %v4096_v29  ;;  %v5410_v29 = vand.u32 4294901760, %v4077_v45 }
  0x8c   :  { %2973 = vmatpush1.bf16.msra.mxu1 %v2972_v6  ;;  %3069 = vmatpush1.bf16.msra.mxu0 %v3068_v3  ;;  %v4091_v6 = vsub.f32 %v4026_v30, %v5190_v59  ;;  %v4110_v3 = vsub.f32 %v4044_v61, %v5192_v22  ;;  %v4115_v59 = vld [vmem:[#allocation7 + $0x90] sm:$0xff]  ;;  %v4127_v22 = vsub.f32 %v4063_v31, %v5201_v40 }
  0x8d   :  { %2975 = vmatprep.subr.bf16.mxu1 %v2974_v15  ;;  %3071 = vmatprep.subr.bf16.mxu0 %v3779_v16  ;;  %v4105_v16 = vsub.f32 %v4042_v5, %v5191_v21  ;;  %v4122_v21 = vsub.f32 %v4061_v38, %v5199_v33  ;;  %v5408_v15 = vld [vmem:[#allocation18_spill] sm:$0xff]  ;;  %v5204_v33 = vand.u32 4294901760, %v4100_v41  ;;  %v5412_v40 = vld [vmem:[#allocation21_spill] sm:$0xff] }
  0x8e   :  { %5401 = vst [vmem:[#allocation44_spill] sm:$0xff] %v4091_v6  ;;  %5404 = vst [vmem:[#allocation47_spill] sm:$0xff] %v4110_v3  ;;  %v5409_v3 = vld [vmem:[#allocation20_spill] sm:$0xff]  ;;  %v4136_v6 = vsub.f32 %v4077_v45, %v5410_v29  ;;  %v5415_v29 = vld [vmem:[#allocation17_spill] sm:$0xff] }
  0x8f   :  { %5403 = vst [vmem:[#allocation46_spill] sm:$0xff] %v4105_v16  ;;  %452 = vmatmul.mubr.f32.vlgmr.msra.gmra.mrb[0].mxu1 %v3877_v2  ;;  %887 = vmatmul.mubr.f32.vlgmr.msra.gmra.mrb[0].mxu0 %v3877_v2  ;;  %5405 = vst [vmem:[#allocation48_spill] sm:$0xff] %v4122_v21  ;;  %v2980_v16 = vpack.c.bf16 %v5409_v3, %v5408_v15  ;;  %v5411_v21 = vld [vmem:[#allocation16_spill] sm:$0xff]  ;;  %v1083_v3 = vand.u32 4294901760, %v4115_v59  ;;  %v5417_v15 = vld [vmem:[#allocation26_spill] sm:$0xff] }
  0x90   :  { %5406 = vst [vmem:[#allocation49_spill] sm:$0xff] %v4127_v22  ;;  %2977 = vmatpush1.bf16.msra.mxu1 %v2976_v25  ;;  %3073 = vmatpush1.bf16.msra.mxu0 %v5407_v43  ;;  %v5413_v22 = vld [vmem:[#allocation22_spill] sm:$0xff]  ;;  %v4145_v43 = vsub.f32 %v4085_v34, %v5205_v51  ;;  %v5207_v25 = vand.u32 4294901760, %v4113_v49  ;;  %v5418_v51 = vld [vmem:[#allocation19_spill] sm:$0xff] }
  0x91   :  { %2979 = vmatprep.subr.bf16.mxu1 %v2978_v62  ;;  %3075 = vmatprep.subr.bf16.mxu0 %v5411_v21  ;;  %v2982_v32 = vpack.c.bf16 %v5413_v22, %v5412_v40  ;;  %v4154_v21 = vsub.f32 %v4100_v41, %v5204_v33  ;;  %v4166_v62 = vsub.f32 %v4115_v59, %v1083_v3  ;;  %v5416_v40 = vld [vmem:[#allocation24_spill] sm:$0xff]  ;;  %v1040_v59 = vld [vmem:[#allocation7 + $0xd8] sm:$0xff] }
  0x92   :  { %457 = vmatprep.mubr.f32.mxu1 %v5395_v57  ;;  %892 = vmatprep.mubr.f32.mxu0 %v5395_v57  ;;  %v4161_v22 = vsub.f32 %v4113_v49, %v5207_v25  ;;  %v2984_v33 = vpack.c.bf16 %v5417_v15, %v5416_v40  ;;  %v5419_v25 = vld [vmem:[#allocation23_spill] sm:$0xff]  ;;  %v3004_v40 = vpack.c.bf16 %v3913_v44, %v3905_v53  ;;  %v5431_v15 = vand.u32 4294901760, %v3987_v52 }
  0x93   :  { %5414 = vst [vmem:[#allocation15_spill] sm:$0xff] %v4154_v21  ;;  %459 = vmatmul.mubr.f32.gmra.mrb[2].mxu1 %v3974_v35  ;;  %894 = vmatmul.mubr.f32.gmra.mrb[2].mxu0 %v3974_v35  ;;  %v2986_v21 = vpack.c.bf16 %v3829_v1, %v3827_v63  ;;  %v2992_v63 = vpack.c.bf16 %v3851_v27, %v3849_v26  ;;  %v5422_v1 = vld [vmem:[#allocation28_spill] sm:$0xff]  ;;  %v5427_v26 = vld [vmem:[#allocation31_spill] sm:$0xff]  ;;  %v5437_v53 = vand.u32 4294901760, %v3997_v23  ;;  %v5438_v44 = vand.u32 4294901760, %v3999_v48 }
  0x94   :  { %2981 = vmatpush1.bf16.msra.mxu1 %v2980_v16  ;;  %3077 = vmatpush1.bf16.msra.mxu0 %v5415_v29  ;;  %v2988_v16 = vpack.c.bf16 %v3835_v8, %v3833_v7  ;;  %v5420_v29 = vld [vmem:[#allocation25_spill] sm:$0xff]  ;;  %v5424_v8 = vld [vmem:[#allocation32_spill] sm:$0xff]  ;;  %v3000_v27 = vpack.c.bf16 %v3883_v14, %v3881_v13  ;;  %v5433_v14 = vld [vmem:[#allocation38_spill] sm:$0xff]  ;;  %v5444_v23 = vand.u32 4294901760, %v4008_v47  ;;  %v5445_v48 = vand.u32 4294901760, %v4026_v30 }
  0x95   :  { %2983 = vmatprep.subr.bf16.mxu1 %v2982_v32  ;;  %3079 = vmatprep.subr.bf16.mxu0 %v5418_v51  ;;  %v2990_v32 = vpack.c.bf16 %v3843_v12, %v3837_v9  ;;  %v5421_v51 = vld [vmem:[#allocation27_spill] sm:$0xff]  ;;  %v5423_v7 = vld [vmem:[#allocation29_spill] sm:$0xff]  ;;  %v5425_v9 = vld [vmem:[#allocation30_spill] sm:$0xff]  ;;  %v4222_v52 = vpack.c.bf16 %v5438_v44, %v5437_v53  ;;  %v5450_v47 = vand.u32 4294901760, %v4044_v61  ;;  %v5459_v61 = vand.u32 4294901760, %v4113_v49 }
  0x96   :  { %593 = vmatprep.mubr.f32.mxu1 %v5395_v57  ;;  %996 = vmatprep.mubr.f32.mxu0 %v5395_v57  ;;  %v5426_v12 = vld [vmem:[#allocation34_spill] sm:$0xff]  ;;  %v1038_v49 = vld [vmem:[#allocation7 + $0xc8] sm:$0xff]  ;;  %v1043_v53 = vld [vmem:[#allocation7 + $0xf0] sm:$0xff]  ;;  %v5208_v44 = vand.u32 4294901760, %v4014_v11 }
  0x97   :  { %5439 = vst [vmem:[#allocation20_spill] sm:$0xff] %v4222_v52 }
  0x98   :  { %2985 = vmatpush1.bf16.msra.mxu1 %v2984_v33  ;;  %3081 = vmatpush1.bf16.msra.mxu0 %v5419_v25  ;;  %v2994_v33 = vpack.c.bf16 %v3857_v36, %v3853_v28  ;;  %v2996_v25 = vpack.c.bf16 %v5424_v8, %v3859_v37  ;;  %v5428_v28 = vld [vmem:[#allocation33_spill] sm:$0xff]  ;;  %v3002_v36 = vpack.c.bf16 %v3896_v10, %v3885_v18  ;;  %v5429_v37 = vld [vmem:[#allocation35_spill] sm:$0xff]  ;;  %v5434_v18 = vand.u32 4294901760, %v3992_v24 }
  0x99   :  { %2987 = vmatprep.subr.bf16.mxu1 %v2986_v21  ;;  %3083 = vmatprep.subr.bf16.mxu0 %v5420_v29  ;;  %v2998_v21 = vpack.c.bf16 %v3873_v55, %v5426_v12  ;;  %v5430_v55 = vld [vmem:[#allocation36_spill] sm:$0xff]  ;;  %v5435_v10 = vand.u32 4294901760, %v3994_v42  ;;  %v5441_v24 = vand.u32 4294901760, %v4001_v39  ;;  %v5442_v42 = vand.u32 4294901760, %v4006_v17  ;;  %v1033_v8 = vld [vmem:[#allocation7 + $0xa0] sm:$0xff] }
  0x9a   :  { %v5448_v39 = vand.u32 4294901760, %v4042_v5  ;;  %v5457_v5 = vand.u32 4294901760, %v4100_v41  ;;  %v1035_v41 = vld [vmem:[#allocation7 + $0xb0] sm:$0xff] }
  0x9b   :  { %v4216_v29 = vpack.c.bf16 %v5435_v10, %v5434_v18  ;;  %v1041_v10 = vld [vmem:[#allocation7 + $0xe0] sm:$0xff] }
  0x9c   :  { %2989 = vmatpush1.bf16.msra.mxu1 %v2988_v16  ;;  %3085 = vmatpush1.bf16.msra.mxu0 %v5421_v51  ;;  %v5432_v16 = vand.u32 4294901760, %v3990_v46  ;;  %v5440_v46 = vld [vmem:[#allocation37_spill] sm:$0xff]  ;;  %v4240_v51 = vpack.c.bf16 %v5445_v48, %v5444_v23  ;;  %v5216_v23 = vand.u32 4294901760, %v4033_v58  ;;  %v5219_v48 = vand.u32 4294901760, %v4038_v60 }
  0x9d   :  { %2991 = vmatprep.subr.bf16.mxu1 %v2990_v32  ;;  %3087 = vmatprep.subr.bf16.mxu0 %v5422_v1  ;;  %5436 = vst [vmem:[#allocation18_spill] sm:$0xff] %v4216_v29  ;;  %v4233_v32 = vpack.c.bf16 %v5442_v42, %v5441_v24  ;;  %v1103_v24 = vand.u32 4294901760, %v1041_v10  ;;  %v1107_v42 = vand.u32 4294901760, %v1043_v53 }
  0x9e   :  { %v4208_v13 = vpack.c.bf16 %v5432_v16, %v5431_v15  ;;  %5446 = vst [vmem:[#allocation21_spill] sm:$0xff] %v4240_v51  ;;  %v1042_v15 = vld [vmem:[#allocation7 + $0xe8] sm:$0xff]  ;;  %v1044_v16 = vld [vmem:[#allocation7 + $0xf8] sm:$0xff] }
  0x9f   :  { %5443 = vst [vmem:[#allocation16_spill] sm:$0xff] %v4233_v32  ;;  %v1105_v18 = vand.u32 4294901760, %v1044_v16 }
  0xa0   :  { %2993 = vmatpush1.bf16.msra.mxu1 %v2992_v63  ;;  %3089 = vmatpush1.bf16.msra.mxu0 %v5423_v7  ;;  %v5454_v63 = vand.u32 4294901760, %v4077_v45  ;;  %v1034_v45 = vld [vmem:[#allocation7 + $0xa8] sm:$0xff] }
  0xa1   :  { %2995 = vmatprep.subr.bf16.mxu1 %v2994_v33  ;;  %3091 = vmatprep.subr.bf16.mxu0 %v5425_v9  ;;  %v1085_v7 = vand.u32 4294901760, %v1034_v45  ;;  %v1091_v9 = vand.u32 4294901760, %v1035_v41 }
  0xa4   :  { %2997 = vmatpush1.bf16.msra.mxu1 %v2996_v25  ;;  %3093 = vmatpush1.bf16.msra.mxu0 %v5427_v26  ;;  %v1087_v25 = vand.u32 4294901760, %v1033_v8  ;;  %v1097_v26 = vand.u32 4294901760, %v1040_v59 }
  0xa5   :  { %2999 = vmatprep.subr.bf16.mxu1 %v2998_v21  ;;  %3095 = vmatprep.subr.bf16.mxu0 %v5428_v28  ;;  %v1039_v28 = vld [vmem:[#allocation7 + $0xd0] sm:$0xff] }
  0xa6   :  { %v4285_v21 = vpack.c.bf16 %v1091_v9, %v1087_v25 }
  0xa8   :  { %3001 = vmatpush1.bf16.msra.mxu1 %v3000_v27  ;;  %3097 = vmatpush1.bf16.msra.mxu0 %v5429_v37  ;;  %5462 = vst [vmem:[#allocation25_spill] sm:$0xff] %v4285_v21  ;;  %v1037_v27 = vld [vmem:[#allocation7 + $0xc0] sm:$0xff]  ;;  %v1099_v37 = vand.u32 4294901760, %v1039_v28 }
  0xa9   :  { %3003 = vmatprep.subr.bf16.mxu1 %v3002_v36  ;;  %3099 = vmatprep.subr.bf16.mxu0 %v5430_v55  ;;  %v1095_v36 = vand.u32 4294901760, %v1037_v27 }
  0xab   :  { %v4291_v55 = vpack.c.bf16 %v1099_v37, %v1095_v36 }
  0xac   :  { %3005 = vmatpush1.bf16.msra.mxu1 %v3004_v40  ;;  %3101 = vmatpush1.bf16.msra.mxu0 %v5433_v14  ;;  %v1101_v14 = vand.u32 4294901760, %v1042_v15 }
  0xad   :  { %3103 = vmatprep.subr.bf16.mxu1 %v4208_v13  ;;  %5464 = vst [vmem:[#allocation28_spill] sm:$0xff] %v4291_v55 }
  0xaf   :  { %596 = vmatmul.mubr.f32.vlgmr.msra.gmra.mrb[0].mxu1 %v5440_v46  ;;  %998 = vmatmul.mubr.f32.vlgmr.msra.gmra.mrb[0].mxu0 %v3877_v2  ;;  %v5447_v2 = vand.u32 4294901760, %v4028_v0  ;;  %v5456_v0 = vand.u32 4294901760, %v4085_v34  ;;  %v5209_v46 = vand.u32 4294901760, %v4021_v20 }
  0xb0   :  { %601 = vmatprep.mubr.f32.mxu1 %v5395_v57  ;;  %1003 = vmatprep.mubr.f32.mxu0 %v5395_v57 }
  0xb1   :  { %3105 = vmatpush1.bf16.msra.mxu1 %v4216_v29  ;;  %v4251_v17 = vpack.c.bf16 %v5448_v39, %v5447_v2  ;;  %v4272_v33 = vpack.c.bf16 %v5457_v5, %v5456_v0  ;;  %v4299_v2 = vpack.c.bf16 %v1105_v18, %v1101_v14  ;;  %v1167_v39 = vsub.f32 %v4014_v11, %v5208_v44 }
  0xb2   :  { %3107 = vmatprep.subr.bf16.mxu1 %v4222_v52 }
  0xb3   :  { %604 = vmatmul.mubr.f32.gmra.mrb[2].mxu1 %v3981_v50  ;;  %1005 = vmatmul.mubr.f32.gmra.mrb[2].mxu0 %v3974_v35  ;;  %5449 = vst [vmem:[#allocation22_spill] sm:$0xff] %v4251_v17  ;;  %v5451_v50 = vand.u32 4294901760, %v4061_v38  ;;  %v5453_v35 = vand.u32 4294901760, %v4063_v31  ;;  %5458 = vst [vmem:[#allocation26_spill] sm:$0xff] %v4272_v33  ;;  %v4279_v38 = vpack.c.bf16 %v1083_v3, %v5459_v61  ;;  %v1036_v31 = vld [vmem:[#allocation7 + $0xb8] sm:$0xff]  ;;  %v1093_v3 = vand.u32 4294901760, %v1038_v49 }
  0xb4   :  { %1141 = vmatprep.mubr.f32.mxu1 %v5395_v57  ;;  %2079 = vmatprep.mubr.f32.mxu0 %v5395_v57  ;;  %v1089_v34 = vand.u32 4294901760, %v1036_v31  ;;  %5465 = vst [vmem:[#allocation29_spill] sm:$0xff] %v4299_v2  ;;  %v1168_v0 = vand.u32 4294901760, %v1167_v39  ;;  %v4327_v39 = vsub.f32 %v1035_v41, %v1091_v9 }
  0xb5   :  { %3109 = vmatpush1.bf16.msra.mxu1 %v4233_v32  ;;  %v4258_v30 = vpack.c.bf16 %v5451_v50, %v5450_v47  ;;  %v4265_v1 = vpack.c.bf16 %v5454_v63, %v5453_v35  ;;  %5460 = vst [vmem:[#allocation19_spill] sm:$0xff] %v4279_v38  ;;  %v4289_v40 = vpack.c.bf16 %v1097_v26, %v1093_v3 }
  0xb6   :  { %3111 = vmatprep.subr.bf16.mxu1 %v4240_v51  ;;  %v4283_v12 = vpack.c.bf16 %v1089_v34, %v1085_v7  ;;  %v1179_v47 = vsub.f32 %v4021_v20, %v5209_v46  ;;  %v4307_v50 = vpack.c.bf16 %v1107_v42, %v1103_v24  ;;  %v1173_v35 = vsub.f32 %v4033_v58, %v5216_v23 }
  0xb7   :  { %5452 = vst [vmem:[#allocation17_spill] sm:$0xff] %v4258_v30  ;;  %5455 = vst [vmem:[#allocation24_spill] sm:$0xff] %v4265_v1  ;;  %v1185_v63 = vsub.f32 %v4038_v60, %v5219_v48  ;;  %v5231_v46 = vand.u32 4294901760, %v4049_v4  ;;  %v4323_v48 = vsub.f32 %v1036_v31, %v1089_v34  ;;  %v4339_v23 = vsub.f32 %v1044_v16, %v1105_v18 }
  0xb8   :  { %5461 = vst [vmem:[#allocation23_spill] sm:$0xff] %v4283_v12  ;;  %5463 = vst [vmem:[#allocation27_spill] sm:$0xff] %v4289_v40  ;;  %v1180_v5 = vand.u32 4294901760, %v1179_v47  ;;  %v1174_v61 = vand.u32 4294901760, %v1173_v35  ;;  %v4329_v47 = vsub.f32 %v1038_v49, %v1093_v3  ;;  %v4331_v35 = vsub.f32 %v1040_v59, %v1097_v26  ;;  %v5468_v49 = vld [vmem:[#allocation43_spill] sm:$0xff]  ;;  %v5469_v3 = vld [vmem:[#allocation44_spill] sm:$0xff] }
  0xb9   :  { %3113 = vmatpush1.bf16.msra.mxu1 %v4251_v17  ;;  %5466 = vst [vmem:[#allocation32_spill] sm:$0xff] %v4307_v50  ;;  %v1186_v44 = vand.u32 4294901760, %v1185_v63  ;;  %v4333_v63 = vsub.f32 %v1037_v27, %v1095_v36  ;;  %v4343_v31 = vsub.f32 %v1043_v53, %v1107_v42  ;;  %v1191_v34 = vsub.f32 %v4049_v4, %v5231_v46  ;;  %v5470_v27 = vld [vmem:[#allocation45_spill] sm:$0xff]  ;;  %v5472_v42 = vld [vmem:[#allocation47_spill] sm:$0xff] }
  0xba   :  { %3115 = vmatprep.subr.bf16.mxu1 %v4258_v30  ;;  %v5222_v59 = vand.u32 4294901760, %v5468_v49  ;;  %v5223_v26 = vand.u32 4294901760, %v5469_v3 }
  0xbb   :  { %v1192_v36 = vand.u32 4294901760, %v1191_v34  ;;  %v5473_v34 = vld [vmem:[#allocation48_spill] sm:$0xff] }
  0xbc   :  { %v1215_v18 = vsub.f32 %v5468_v49, %v5222_v59 }
  0xbd   :  { %3117 = vmatpush1.bf16.msra.mxu1 %v4265_v1 }
  0xbe   :  { %3119 = vmatprep.subr.bf16.mxu1 %v4272_v33 }
  0xc1   :  { %3121 = vmatpush1.bf16.msra.mxu1 %v4279_v38  ;;  %v5246_v38 = vand.u32 4294901760, %v4323_v48 }
  0xc2   :  { %3123 = vmatprep.subr.bf16.mxu1 %v4283_v12  ;;  %v4321_v12 = vsub.f32 %v1034_v45, %v1085_v7  ;;  %v4341_v45 = vsub.f32 %v1041_v10, %v1103_v24  ;;  %v4345_v7 = vpack.c.bf16 %v1186_v44, %v1174_v61  ;;  %v1227_v10 = vsub.f32 %v5469_v3, %v5223_v26 }
  0xc3   :  { %v5228_v61 = vand.u32 4294901760, %v5472_v42 }
  0xc5   :  { %3125 = vmatpush1.bf16.msra.mxu1 %v4285_v21  ;;  %v5226_v21 = vand.u32 4294901760, %v4059_v56 }
  0xc6   :  { %3127 = vmatprep.subr.bf16.mxu1 %v4289_v40  ;;  %v5227_v40 = vand.u32 4294901760, %v4054_v19 }
  0xc7   :  { %v1197_v41 = vsub.f32 %v4059_v56, %v5226_v21 }
  0xc9   :  { %3129 = vmatpush1.bf16.msra.mxu1 %v4291_v55  ;;  %v3134_v55 = vpack.c.bf16 %v1180_v5, %v1168_v0  ;;  %v4335_v0 = vsub.f32 %v1039_v28, %v1099_v37  ;;  %v4337_v5 = vsub.f32 %v1042_v15, %v1101_v14  ;;  %v5224_v28 = vand.u32 4294901760, %v5470_v27  ;;  %v5471_v15 = vld [vmem:[#allocation46_spill] sm:$0xff] }
  0xca   :  { %3131 = vmatprep.subr.bf16.mxu1 %v4299_v2  ;;  %v4325_v2 = vsub.f32 %v1033_v8, %v1087_v25  ;;  %v1203_v8 = vsub.f32 %v4054_v19, %v5227_v40  ;;  %v5467_v25 = vand.u32 4294901760, %v4068_v54  ;;  %v5225_v16 = vand.u32 4294901760, %v5471_v15 }
  0xcb   :  { %v1221_v53 = vsub.f32 %v5470_v27, %v5224_v28  ;;  %v1239_v28 = vsub.f32 %v5472_v42, %v5228_v61  ;;  %v5234_v40 = vand.u32 4294901760, %v4136_v6  ;;  %v5254_v17 = vand.u32 4294901760, %v4335_v0 }
  0xcc   :  { %v1209_v9 = vsub.f32 %v4068_v54, %v5467_v25  ;;  %v1204_v37 = vand.u32 4294901760, %v1203_v8  ;;  %v1233_v24 = vsub.f32 %v5471_v15, %v5225_v16  ;;  %v5229_v8 = vand.u32 4294901760, %v5473_v34 }
  0xcd   :  { %3133 = vmatpush1.bf16.msra.mxu1 %v4307_v50  ;;  %v1216_v25 = vand.u32 4294901760, %v1215_v18  ;;  %v1222_v59 = vand.u32 4294901760, %v1221_v53  ;;  %v1240_v53 = vand.u32 4294901760, %v1239_v28 }
  0xce   :  { %3135 = vmatprep.subr.bf16.mxu1 %v3134_v55  ;;  %v1198_v55 = vand.u32 4294901760, %v1197_v41  ;;  %v1210_v14 = vand.u32 4294901760, %v1209_v9  ;;  %v4372_v44 = vpack.c.bf16 %v1204_v37, %v1192_v36  ;;  %v1228_v9 = vand.u32 4294901760, %v1227_v10  ;;  %v5474_v37 = vld [vmem:[#allocation49_spill] sm:$0xff] }
  0xcf   :  { %v1234_v26 = vand.u32 4294901760, %v1233_v24  ;;  %v1251_v36 = vsub.f32 %v5473_v34, %v5229_v8  ;;  %v5230_v16 = vand.u32 4294901760, %v5474_v37  ;;  %v1257_v8 = vsub.f32 %v4136_v6, %v5234_v40 }
  0xd0   :  { %v4379_v41 = vpack.c.bf16 %v1210_v14, %v1198_v55  ;;  %v4388_v21 = vpack.c.bf16 %v1228_v9, %v1216_v25  ;;  %v5235_v55 = vand.u32 4294901760, %v4145_v43  ;;  %v5475_v14 = vld [vmem:[#allocation15_spill] sm:$0xff] }
  0xd1   :  { %v5236_v18 = vand.u32 4294901760, %v5475_v14  ;;  %v4393_v10 = vpack.c.bf16 %v1234_v26, %v1222_v59  ;;  %v1252_v24 = vand.u32 4294901760, %v1251_v36  ;;  %v1245_v61 = vsub.f32 %v5474_v37, %v5230_v16 }
  0xd2   :  { %v1263_v25 = vsub.f32 %v4145_v43, %v5235_v55  ;;  %v5239_v59 = vand.u32 4294901760, %v4161_v22  ;;  %v5240_v36 = vand.u32 4294901760, %v4166_v62  ;;  %v1258_v16 = vand.u32 4294901760, %v1257_v8 }
  0xd3   :  { %v1275_v9 = vsub.f32 %v5475_v14, %v5236_v18  ;;  %v4408_v26 = vpack.c.bf16 %v1252_v24, %v1240_v53  ;;  %v1246_v28 = vand.u32 4294901760, %v1245_v61  ;;  %v5243_v18 = vand.u32 4294901760, %v4321_v12 }
  0xd4   :  { %v1264_v46 = vand.u32 4294901760, %v1263_v25  ;;  %v1269_v40 = vsub.f32 %v4161_v22, %v5239_v59  ;;  %v1281_v55 = vsub.f32 %v4166_v62, %v5240_v36  ;;  %v5247_v53 = vand.u32 4294901760, %v4325_v2 }
  0xd5   :  { %v1276_v50 = vand.u32 4294901760, %v1275_v9  ;;  %v4420_v61 = vpack.c.bf16 %v1258_v16, %v1246_v28  ;;  %v5248_v25 = vand.u32 4294901760, %v4327_v39  ;;  %v1287_v59 = vsub.f32 %v4321_v12, %v5243_v18 }
  0xd6   :  { %v1270_v8 = vand.u32 4294901760, %v1269_v40  ;;  %v1282_v9 = vand.u32 4294901760, %v1281_v55  ;;  %v1299_v36 = vsub.f32 %v4323_v48, %v5246_v38  ;;  %v1293_v33 = vsub.f32 %v4325_v2, %v5247_v53 }
  0xd7   :  { %v4422_v24 = vpack.c.bf16 %v1276_v50, %v1264_v46  ;;  %v1305_v46 = vsub.f32 %v4327_v39, %v5248_v25  ;;  %v5256_v40 = vand.u32 4294901760, %v4329_v47  ;;  %v5253_v50 = vand.u32 4294901760, %v4331_v35 }
  0xd8   :  { %v4439_v16 = vpack.c.bf16 %v1282_v9, %v1270_v8  ;;  %v1288_v55 = vand.u32 4294901760, %v1287_v59  ;;  %v1300_v28 = vand.u32 4294901760, %v1299_v36  ;;  %v1294_v18 = vand.u32 4294901760, %v1293_v33 }
  0xd9   :  { %v1306_v1 = vand.u32 4294901760, %v1305_v46  ;;  %v1311_v38 = vsub.f32 %v4329_v47, %v5256_v40  ;;  %v1323_v53 = vsub.f32 %v4331_v35, %v5253_v50  ;;  %v5255_v25 = vand.u32 4294901760, %v4333_v63 }
  0xda   :  { %v4448_v30 = vpack.c.bf16 %v1300_v28, %v1288_v55  ;;  %v1329_v9 = vsub.f32 %v4335_v0, %v5254_v17  ;;  %v5263_v46 = vand.u32 4294901760, %v4337_v5  ;;  %v5264_v50 = vand.u32 4294901760, %v4339_v23 }
  0xdb   :  { %v4451_v8 = vpack.c.bf16 %v1306_v1, %v1294_v18  ;;  %v1312_v59 = vand.u32 4294901760, %v1311_v38  ;;  %v1324_v36 = vand.u32 4294901760, %v1323_v53  ;;  %v1317_v33 = vsub.f32 %v4333_v63, %v5255_v25 }
  0xdc   :  { %v5265_v55 = vand.u32 4294901760, %v4341_v45  ;;  %v5268_v38 = vand.u32 4294901760, %v4343_v31  ;;  %v1330_v18 = vand.u32 4294901760, %v1329_v9  ;;  %v1335_v53 = vsub.f32 %v4337_v5, %v5263_v46 }
  0xdd   :  { %v4462_v28 = vpack.c.bf16 %v1324_v36, %v1312_v59  ;;  %v1318_v1 = vand.u32 4294901760, %v1317_v33  ;;  %v1347_v17 = vsub.f32 %v4339_v23, %v5264_v50  ;;  %v3166_v46 = vpack.c.bf16 %v4021_v20, %v4014_v11 }
  0xde   :  { %v1341_v25 = vsub.f32 %v4341_v45, %v5265_v55  ;;  %v1353_v59 = vsub.f32 %v4343_v31, %v5268_v38  ;;  %v1336_v33 = vand.u32 4294901760, %v1335_v53  ;;  %v3168_v50 = vpack.c.bf16 %v4038_v60, %v4033_v58 }
  0xdf   :  { %v3160_v36 = vpack.c.bf16 %v1330_v18, %v1318_v1  ;;  %v1348_v40 = vand.u32 4294901760, %v1347_v17  ;;  %v3170_v55 = vpack.c.bf16 %v4054_v19, %v4049_v4 }
  0xe0   :  { %v1342_v9 = vand.u32 4294901760, %v1341_v25  ;;  %v1354_v51 = vand.u32 4294901760, %v1353_v59 }
  0xe1   :  { %v3162_v32 = vpack.c.bf16 %v1348_v40, %v1336_v33 }
  0xe2   :  { %v3164_v52 = vpack.c.bf16 %v1354_v51, %v1342_v9 }
 0x182   :  { %v597_v25 = vpop.f32.mrb[0].mxu1  ;;  %v999_v18 = vpop.f32.mrb[0].mxu0 }
 0x183   :  { %v3486_v51 = vadd.f32 %v999_v18, %v597_v25  ;;  %v599_v17 = vpop.f32.mrb[1].mxu1  ;;  %v1001_v53 = vpop.f32.mrb[1].mxu0 }
 0x184   :  { %v3487_v1 = vadd.f32 %v1001_v53, %v599_v17 }
 0x185   :  { %v4509_v29 = vand.u32 4294901760, %v3486_v51 }
 0x186   :  { %1011 = vst [vmem:[#allocation10] sm:$0xff] %v3487_v1  ;;  %v605_v59 = vpop.f32.mrb[2].mxu1  ;;  %v1006_v33 = vpop.f32.mrb[2].mxu0 }
 0x187   :  { %v4512_v19 = vsub.f32 %v3486_v51, %v4509_v29  ;;  %v3488_v9 = vadd.f32 %v1006_v33, %v605_v59  ;;  %v607_v4 = vpop.f32.mrb[3].mxu1  ;;  %v1008_v38 = vpop.f32.mrb[3].mxu0  ;;  %v1962_v59 = vld [vmem:[#allocation8 + $0x58] sm:$0xff]  ;;  %v1959_v33 = vld [vmem:[#allocation8 + $0x40] sm:$0xff] }
 0x188   :  { %v3489_v60 = vadd.f32 %v1008_v38, %v607_v4 }
 0x189   :  { %v5274_v40 = vand.u32 4294901760, %v4512_v19  ;;  %v4515_v58 = vand.u32 4294901760, %v3488_v9 }
 0x18a   :  { %1012 = vst [vmem:[#allocation10 + $0x20] sm:$0xff] %v3489_v60 }
 0x18b   :  { %v1145_v17 = vsub.f32 %v4512_v19, %v5274_v40  ;;  %v4521_v1 = vsub.f32 %v3488_v9, %v4515_v58  ;;  %v1961_v9 = vld [vmem:[#allocation8 + $0x50] sm:$0xff] }
 0x18d   :  { %v1146_v25 = vand.u32 4294901760, %v1145_v17  ;;  %v5273_v51 = vand.u32 4294901760, %v4521_v1 }
 0x18f   :  { %1147 = vmatmul.mubr.f32.vlgmr.msra.gmra.mrb[4].mxu1 %v1146_v25  ;;  %v1156_v4 = vsub.f32 %v4521_v1, %v5273_v51  ;;  %v1963_v51 = vld [vmem:[#allocation8 + $0x60] sm:$0xff] }
 0x190   :  { %3137 = vmatpush1.bf16.msra.mxu1 %v4345_v7  ;;  %1152 = vmatprep.mubr.f32.mxu1 %v5395_v57  ;;  %v1954_v7 = vld [vmem:[#allocation8 + $0x18] sm:$0xff] }
 0x191   :  { %3139 = vmatprep.subr.bf16.mxu1 %v4372_v44  ;;  %v1157_v60 = vand.u32 4294901760, %v1156_v4  ;;  %v1951_v44 = vld [vmem:[#allocation8] sm:$0xff] }
 0x193   :  { %1158 = vmatmul.mubr.f32.gmra.mrb[6].mxu1 %v1157_v60 }
 0x194   :  { %3141 = vmatpush1.bf16.msra.mxu1 %v4379_v41  ;;  %1388 = vmatprep.mubr.f32.mxu1 %v5395_v57  ;;  %v1953_v41 = vld [vmem:[#allocation8 + $0x10] sm:$0xff] }
 0x195   :  { %3143 = vmatprep.subr.bf16.mxu1 %v4388_v21  ;;  %v1952_v21 = vld [vmem:[#allocation8 + $0x8] sm:$0xff] }
 0x198   :  { %3145 = vmatpush1.bf16.msra.mxu1 %v4393_v10  ;;  %v1985_v10 = vand.u32 4294901760, %v1951_v44 }
 0x199   :  { %3147 = vmatprep.subr.bf16.mxu1 %v4408_v26  ;;  %v1956_v26 = vld [vmem:[#allocation8 + $0x28] sm:$0xff] }
 0x19a   :  { %v4557_v53 = vsub.f32 %v1951_v44, %v1985_v10 }
 0x19c   :  { %3149 = vmatpush1.bf16.msra.mxu1 %v4420_v61  ;;  %v1958_v61 = vld [vmem:[#allocation8 + $0x38] sm:$0xff]  ;;  %5480 = vst [vmem:[#allocation31_spill] sm:$0xff] %v4557_v53 }
 0x19d   :  { %3151 = vmatprep.subr.bf16.mxu1 %v4422_v24  ;;  %v5477_v24 = vpack.c.bf16 %v5469_v3, %v5468_v49 }
 0x1a0   :  { %3153 = vmatpush1.bf16.msra.mxu1 %v4439_v16  ;;  %v1991_v16 = vand.u32 4294901760, %v1956_v26 }
 0x1a1   :  { %3155 = vmatprep.subr.bf16.mxu1 %v4448_v30  ;;  %v5476_v30 = vpack.c.bf16 %v4068_v54, %v4059_v56 }
 0x1a2   :  { %v4565_v60 = vsub.f32 %v1956_v26, %v1991_v16  ;;  %v2003_v26 = vand.u32 4294901760, %v1962_v59 }
 0x1a4   :  { %3157 = vmatpush1.bf16.msra.mxu1 %v4451_v8  ;;  %v1995_v8 = vand.u32 4294901760, %v1958_v61  ;;  %5484 = vst [vmem:[#allocation38_spill] sm:$0xff] %v4565_v60  ;;  %v1967_v60 = vld [vmem:[#allocation8 + $0x80] sm:$0xff] }
 0x1a5   :  { %3159 = vmatprep.subr.bf16.mxu1 %v4462_v28  ;;  %v1960_v28 = vld [vmem:[#allocation8 + $0x48] sm:$0xff] }
 0x1a6   :  { %v4563_v4 = vpack.c.bf16 %v1995_v8, %v1991_v16 }
 0x1a8   :  { %3161 = vmatpush1.bf16.msra.mxu1 %v3160_v36  ;;  %5483 = vst [vmem:[#allocation36_spill] sm:$0xff] %v4563_v4 }
 0x1a9   :  { %3163 = vmatprep.subr.bf16.mxu1 %v3162_v32  ;;  %v1983_v32 = vand.u32 4294901760, %v1952_v21 }
 0x1ab   :  { %v4553_v36 = vsub.f32 %v1952_v21, %v1983_v32  ;;  %v5485_v21 = vpack.c.bf16 %v5471_v15, %v5470_v27 }
 0x1ac   :  { %3165 = vmatpush1.bf16.msra.mxu1 %v3164_v52  ;;  %v1987_v52 = vand.u32 4294901760, %v1954_v7 }
 0x1ad   :  { %3167 = vmatprep.subr.bf16.mxu1 %v3166_v46  ;;  %v1955_v46 = vld [vmem:[#allocation8 + $0x20] sm:$0xff] }
 0x1ae   :  { %v4551_v38 = vpack.c.bf16 %v1987_v52, %v1983_v32  ;;  %v4555_v18 = vsub.f32 %v1954_v7, %v1987_v52  ;;  %v4571_v7 = vsub.f32 %v1958_v61, %v1995_v8  ;;  %v1993_v44 = vand.u32 4294901760, %v1955_v46 }
 0x1af   :  { %1390 = vmatmul.mubr.f32.vlgmr.msra.gmra.mrb[4].mxu1 %v4509_v29  ;;  %v1999_v52 = vand.u32 4294901760, %v1960_v28 }
 0x1b0   :  { %3169 = vmatpush1.bf16.msra.mxu1 %v3168_v50  ;;  %1395 = vmatprep.mubr.f32.mxu1 %v5395_v57  ;;  %v1989_v50 = vand.u32 4294901760, %v1953_v41  ;;  %5478 = vst [vmem:[#allocation30_spill] sm:$0xff] %v4551_v38  ;;  %5479 = vst [vmem:[#allocation34_spill] sm:$0xff] %v4555_v18  ;;  %v4580_v8 = vsub.f32 %v1955_v46, %v1993_v44  ;;  %v5496_v46 = vpack.c.bf16 %v4136_v6, %v5474_v37 }
 0x1b1   :  { %3171 = vmatprep.subr.bf16.mxu1 %v3170_v55  ;;  %v1957_v55 = vld [vmem:[#allocation8 + $0x30] sm:$0xff]  ;;  %3295 = vmatprep.subr.bf16.mxu0 %v4551_v38  ;;  %5486 = vst [vmem:[#allocation37_spill] sm:$0xff] %v4571_v7  ;;  %v4584_v38 = vsub.f32 %v1960_v28, %v1999_v52  ;;  %v1968_v7 = vld [vmem:[#allocation8 + $0x88] sm:$0xff] }
 0x1b2   :  { %v4559_v17 = vpack.c.bf16 %v1989_v50, %v1985_v10  ;;  %v4561_v25 = vsub.f32 %v1953_v41, %v1989_v50  ;;  %v1997_v32 = vand.u32 4294901760, %v1957_v55  ;;  %v1966_v10 = vld [vmem:[#allocation8 + $0x78] sm:$0xff]  ;;  %v5487_v41 = vpack.c.bf16 %v5473_v34, %v5472_v42  ;;  %5489 = vst [vmem:[#allocation44_spill] sm:$0xff] %v4580_v8 }
 0x1b3   :  { %1397 = vmatmul.mubr.f32.gmra.mrb[6].mxu1 %v4515_v58  ;;  %v2005_v50 = vand.u32 4294901760, %v1961_v9  ;;  %5491 = vst [vmem:[#allocation46_spill] sm:$0xff] %v4584_v38  ;;  %v2011_v28 = vand.u32 4294901760, %v1966_v10  ;;  %v5505_v38 = vpack.c.bf16 %v4166_v62, %v4161_v22  ;;  %v5549_v8 = vand.u32 4294901760, %v4512_v19 }
 0x1b4   :  { %3173 = vmatpush1.bf16.msra.mxu1 %v5476_v30  ;;  %1531 = vmatprep.mubr.f32.mxu1 %v5395_v57  ;;  %5481 = vst [vmem:[#allocation33_spill] sm:$0xff] %v4559_v17  ;;  %5482 = vst [vmem:[#allocation35_spill] sm:$0xff] %v4561_v25  ;;  %v1964_v30 = vld [vmem:[#allocation8 + $0x68] sm:$0xff]  ;;  %v4578_v61 = vpack.c.bf16 %v1997_v32, %v1993_v44  ;;  %v4582_v40 = vsub.f32 %v1957_v55, %v1997_v32  ;;  %v2009_v32 = vand.u32 4294901760, %v1963_v51 }
 0x1b5   :  { %3175 = vmatprep.subr.bf16.mxu1 %v5477_v24  ;;  %3297 = vmatpush1.bf16.msra.mxu0 %v4559_v17  ;;  %v2001_v24 = vand.u32 4294901760, %v1959_v33  ;;  %v2007_v16 = vand.u32 4294901760, %v1964_v30  ;;  %v4586_v17 = vpack.c.bf16 %v2003_v26, %v1999_v52  ;;  %v4588_v25 = vsub.f32 %v1962_v59, %v2003_v26 }
 0x1b6   :  { %3299 = vmatprep.subr.bf16.mxu0 %v4563_v4  ;;  %5488 = vst [vmem:[#allocation43_spill] sm:$0xff] %v4578_v61  ;;  %5490 = vst [vmem:[#allocation45_spill] sm:$0xff] %v4582_v40  ;;  %v1969_v4 = vld [vmem:[#allocation8 + $0x90] sm:$0xff]  ;;  %v4597_v55 = vsub.f32 %v1961_v9, %v2005_v50  ;;  %v5499_v52 = vpack.c.bf16 %v5475_v14, %v4145_v43  ;;  %v4608_v9 = vsub.f32 %v1966_v10, %v2011_v28 }
 0x1b7   :  { %5492 = vst [vmem:[#allocation47_spill] sm:$0xff] %v4586_v17  ;;  %5493 = vst [vmem:[#allocation48_spill] sm:$0xff] %v4588_v25  ;;  %v4590_v53 = vpack.c.bf16 %v2005_v50, %v2001_v24  ;;  %v4592_v18 = vsub.f32 %v1959_v33, %v2001_v24  ;;  %v4599_v44 = vsub.f32 %v1964_v30, %v2007_v16  ;;  %v2015_v33 = vand.u32 4294901760, %v1968_v7  ;;  %v1973_v25 = vld [vmem:[#allocation8 + $0xb0] sm:$0xff] }
 0x1b8   :  { %3177 = vmatpush1.bf16.msra.mxu1 %v5485_v21  ;;  %v1965_v21 = vld [vmem:[#allocation8 + $0x70] sm:$0xff]  ;;  %5497 = vst [vmem:[#allocation50_spill] sm:$0xff] %v4597_v55  ;;  %v2017_v24 = vand.u32 4294901760, %v1967_v60  ;;  %5501 = vst [vmem:[#allocation53_spill] sm:$0xff] %v4608_v9  ;;  %v4610_v50 = vsub.f32 %v1963_v51, %v2009_v32  ;;  %v2021_v30 = vand.u32 4294901760, %v1969_v4  ;;  %v5509_v51 = vpack.c.bf16 %v4323_v48, %v4321_v12 }
 0x1b9   :  { %3179 = vmatprep.subr.bf16.mxu1 %v5487_v41  ;;  %v1970_v41 = vld [vmem:[#allocation8 + $0x98] sm:$0xff]  ;;  %5494 = vst [vmem:[#allocation49_spill] sm:$0xff] %v4590_v53  ;;  %5495 = vst [vmem:[#allocation15_spill] sm:$0xff] %v4592_v18  ;;  %3301 = vmatpush1.bf16.msra.mxu0 %v4578_v61  ;;  %v2013_v59 = vand.u32 4294901760, %v1965_v21  ;;  %v4606_v18 = vpack.c.bf16 %v2011_v28, %v2007_v16  ;;  %v1971_v61 = vld [vmem:[#allocation8 + $0xa0] sm:$0xff] }
 0x1ba   :  { %5498 = vst [vmem:[#allocation51_spill] sm:$0xff] %v4599_v44  ;;  %v2019_v26 = vand.u32 4294901760, %v1970_v41  ;;  %3303 = vmatprep.subr.bf16.mxu0 %v4586_v17  ;;  %5502 = vst [vmem:[#allocation54_spill] sm:$0xff] %v4610_v50  ;;  %v1974_v44 = vld [vmem:[#allocation8 + $0xb8] sm:$0xff]  ;;  %v4621_v16 = vsub.f32 %v1967_v60, %v2017_v24  ;;  %v4623_v10 = vsub.f32 %v1969_v4, %v2021_v30 }
 0x1bb   :  { %5500 = vst [vmem:[#allocation52_spill] sm:$0xff] %v4606_v18  ;;  %v4612_v55 = vsub.f32 %v1965_v21, %v2013_v59  ;;  %v2027_v28 = vand.u32 4294901760, %v1974_v44  ;;  %v5547_v50 = vld [vmem:[#allocation42_spill] sm:$0xff] }
 0x1bc   :  { %3181 = vmatpush1.bf16.msra.mxu1 %v5496_v46  ;;  %v1972_v46 = vld [vmem:[#allocation8 + $0xa8] sm:$0xff]  ;;  %v4619_v17 = vsub.f32 %v1970_v41, %v2019_v26  ;;  %5507 = vst [vmem:[#allocation58_spill] sm:$0xff] %v4621_v16  ;;  %5508 = vst [vmem:[#allocation59_spill] sm:$0xff] %v4623_v10  ;;  %v2029_v41 = vand.u32 4294901760, %v1973_v25  ;;  %v5514_v10 = vpack.c.bf16 %v4327_v39, %v4325_v2  ;;  %v5548_v9 = vand.u32 4294901760, %v5547_v50 }
 0x1bd   :  { %3183 = vmatprep.subr.bf16.mxu1 %v5499_v52  ;;  %5503 = vst [vmem:[#allocation55_spill] sm:$0xff] %v4612_v55  ;;  %v4614_v52 = vsub.f32 %v1968_v7, %v2015_v33  ;;  %3305 = vmatpush1.bf16.msra.mxu0 %v4590_v53  ;;  %v4629_v7 = vpack.c.bf16 %v2013_v59, %v2009_v32  ;;  %v2023_v21 = vand.u32 4294901760, %v1972_v46  ;;  %v5540_v53 = vld [vmem:[#allocation32_spill] sm:$0xff]  ;;  %v5554_v50 = vand.u32 4294901760, %v4521_v1 }
 0x1be   :  { %5506 = vst [vmem:[#allocation57_spill] sm:$0xff] %v4619_v17  ;;  %3307 = vmatprep.subr.bf16.mxu0 %v4606_v18  ;;  %v4636_v4 = vsub.f32 %v1974_v44, %v2027_v28  ;;  %v4643_v32 = vsub.f32 %v1973_v25, %v2029_v41  ;;  %v5517_v59 = vpack.c.bf16 %v4331_v35, %v4329_v47  ;;  %v5545_v17 = vld [vmem:[#allocation41_spill] sm:$0xff] }
 0x1bf   :  { %5504 = vst [vmem:[#allocation56_spill] sm:$0xff] %v4614_v52  ;;  %5510 = vst [vmem:[#allocation60_spill] sm:$0xff] %v4629_v7  ;;  %v4632_v52 = vpack.c.bf16 %v2019_v26, %v2015_v33  ;;  %v4634_v60 = vsub.f32 %v1972_v46, %v2023_v21  ;;  %v4649_v33 = vpack.c.bf16 %v2021_v30, %v2017_v24  ;;  %v5524_v30 = vld [vmem:[#allocation18_spill] sm:$0xff]  ;;  %v5525_v46 = vld [vmem:[#allocation20_spill] sm:$0xff]  ;;  %v5546_v55 = vand.u32 4294901760, %v5545_v17 }
 0x1c0   :  { %3185 = vmatpush1.bf16.msra.mxu1 %v5505_v38  ;;  %v2025_v38 = vand.u32 4294901760, %v1971_v61  ;;  %5513 = vst [vmem:[#allocation63_spill] sm:$0xff] %v4636_v4  ;;  %5516 = vst [vmem:[#allocation65_spill] sm:$0xff] %v4643_v32  ;;  %v4652_v44 = vpack.c.bf16 %v2027_v28, %v2023_v21  ;;  %v5520_v26 = vpack.c.bf16 %v4335_v0, %v4333_v63  ;;  %v5527_v21 = vld [vmem:[#allocation21_spill] sm:$0xff]  ;;  %v5528_v28 = vld [vmem:[#allocation22_spill] sm:$0xff] }
 0x1c1   :  { %3187 = vmatprep.subr.bf16.mxu1 %v5509_v51  ;;  %5511 = vst [vmem:[#allocation61_spill] sm:$0xff] %v4632_v52  ;;  %5512 = vst [vmem:[#allocation62_spill] sm:$0xff] %v4634_v60  ;;  %3309 = vmatpush1.bf16.msra.mxu0 %v4629_v7  ;;  %v5521_v25 = vpack.c.bf16 %v4339_v23, %v4337_v5  ;;  %v5523_v24 = vpack.c.bf16 %v4343_v31, %v4341_v45  ;;  %v5539_v7 = vand.u32 4294901760, %v4021_v20  ;;  %v5541_v32 = vld [vmem:[#allocation39_spill] sm:$0xff]  ;;  %v5543_v4 = vld [vmem:[#allocation40_spill] sm:$0xff] }
 0x1c2   :  { %v4641_v51 = vsub.f32 %v1971_v61, %v2025_v38  ;;  %5518 = vst [vmem:[#allocation66_spill] sm:$0xff] %v4649_v33  ;;  %3311 = vmatprep.subr.bf16.mxu0 %v4632_v52  ;;  %5519 = vst [vmem:[#allocation67_spill] sm:$0xff] %v4652_v44  ;;  %v4661_v61 = vpack.c.bf16 %v2029_v41, %v2025_v38  ;;  %v5529_v38 = vld [vmem:[#allocation17_spill] sm:$0xff]  ;;  %v5530_v41 = vld [vmem:[#allocation24_spill] sm:$0xff]  ;;  %v5538_v52 = vand.u32 4294901760, %v4014_v11  ;;  %v5544_v60 = vand.u32 4294901760, %v5543_v4 }
 0x1c3   :  { %v3234_v40 = vpack.c.bf16 %v5548_v9, %v5546_v55  ;;  %v5550_v11 = vand.u32 4294901760, %v4059_v56  ;;  %v5551_v20 = vand.u32 4294901760, %v4068_v54  ;;  %v5557_v56 = vand.u32 4294901760, %v5472_v42 }
 0x1c4   :  { %3189 = vmatpush1.bf16.msra.mxu1 %v5514_v10  ;;  %5515 = vst [vmem:[#allocation64_spill] sm:$0xff] %v4641_v51  ;;  %5522 = vst [vmem:[#allocation68_spill] sm:$0xff] %v4661_v61  ;;  %v5526_v10 = vld [vmem:[#allocation16_spill] sm:$0xff]  ;;  %v3230_v18 = vpack.c.bf16 %v5539_v7, %v5538_v52  ;;  %v5542_v51 = vand.u32 4294901760, %v5541_v32  ;;  %v5552_v7 = vand.u32 4294901760, %v5468_v49  ;;  %v5558_v54 = vand.u32 4294901760, %v5473_v34 }
 0x1c5   :  { %3191 = vmatprep.subr.bf16.mxu1 %v5517_v59  ;;  %3313 = vmatpush1.bf16.msra.mxu0 %v4649_v33  ;;  %v5531_v59 = vld [vmem:[#allocation26_spill] sm:$0xff]  ;;  %v5537_v33 = vld [vmem:[#allocation29_spill] sm:$0xff]  ;;  %v3236_v52 = vpack.c.bf16 %v5551_v20, %v5550_v11  ;;  %v5564_v42 = vand.u32 4294901760, %v4166_v62  ;;  %v5565_v34 = vand.u32 4294901760, %v4321_v12  ;;  %v5571_v62 = vand.u32 4294901760, %v4333_v63 }
 0x1c6   :  { %3315 = vmatprep.subr.bf16.mxu0 %v4652_v44  ;;  %v5536_v44 = vld [vmem:[#allocation28_spill] sm:$0xff]  ;;  %v3232_v16 = vpack.c.bf16 %v5544_v60, %v5542_v51  ;;  %v3242_v49 = vpack.c.bf16 %v5558_v54, %v5557_v56  ;;  %v5572_v12 = vand.u32 4294901760, %v4335_v0  ;;  %v1975_v0 = vld [vmem:[#allocation8 + $0xc0] sm:$0xff] }
 0x1c8   :  { %3193 = vmatpush1.bf16.msra.mxu1 %v5520_v26  ;;  %v5532_v26 = vld [vmem:[#allocation19_spill] sm:$0xff]  ;;  %v3256_v11 = vpack.c.bf16 %v5572_v12, %v5571_v62 }
 0x1c9   :  { %3195 = vmatprep.subr.bf16.mxu1 %v5521_v25  ;;  %3317 = vmatpush1.bf16.msra.mxu0 %v4661_v61  ;;  %v5533_v25 = vld [vmem:[#allocation23_spill] sm:$0xff] }
 0x1ca   :  { %v5535_v61 = vld [vmem:[#allocation27_spill] sm:$0xff] }
 0x1cc   :  { %3197 = vmatpush1.bf16.msra.mxu1 %v5523_v24  ;;  %v5534_v24 = vld [vmem:[#allocation25_spill] sm:$0xff] }
 0x1cd   :  { %3199 = vmatprep.subr.bf16.mxu1 %v4208_v13 }
 0x1cf   :  { %1534 = vmatmul.mubr.f32.vlgmr.msra.gmra.mrb[4].mxu1 %v4512_v19  ;;  %v5555_v19 = vand.u32 4294901760, %v5470_v27  ;;  %v5561_v27 = vand.u32 4294901760, %v4145_v43  ;;  %v5568_v43 = vand.u32 4294901760, %v4327_v39  ;;  %v5575_v39 = vand.u32 4294901760, %v4341_v45 }
 0x1d0   :  { %3201 = vmatpush1.bf16.msra.mxu1 %v5524_v30  ;;  %1539 = vmatprep.mubr.f32.mxu1 %v5395_v57  ;;  %v2033_v45 = vand.u32 4294901760, %v1975_v0 }
 0x1d1   :  { %3203 = vmatprep.subr.bf16.mxu1 %v5525_v46 }
 0x1d3   :  { %1542 = vmatmul.mubr.f32.gmra.mrb[6].mxu1 %v4521_v1 }
 0x1d4   :  { %3205 = vmatpush1.bf16.msra.mxu1 %v5526_v10  ;;  %1644 = vmatprep.mubr.f32.mxu1 %v5395_v57 }
 0x1d5   :  { %3207 = vmatprep.subr.bf16.mxu1 %v5527_v21 }
 0x1d8   :  { %3209 = vmatpush1.bf16.msra.mxu1 %v5528_v28 }
 0x1d9   :  { %3211 = vmatprep.subr.bf16.mxu1 %v5529_v38 }
 0x1dc   :  { %3213 = vmatpush1.bf16.msra.mxu1 %v5530_v41 }
 0x1dd   :  { %3215 = vmatprep.subr.bf16.mxu1 %v5531_v59 }
 0x1e0   :  { %3217 = vmatpush1.bf16.msra.mxu1 %v5532_v26 }
 0x1e1   :  { %3219 = vmatprep.subr.bf16.mxu1 %v5533_v25 }
 0x1e4   :  { %3221 = vmatpush1.bf16.msra.mxu1 %v5534_v24 }
 0x1e5   :  { %3223 = vmatprep.subr.bf16.mxu1 %v5535_v61 }
 0x1e8   :  { %3225 = vmatpush1.bf16.msra.mxu1 %v5536_v44 }
 0x1e9   :  { %3227 = vmatprep.subr.bf16.mxu1 %v5537_v33 }
 0x1ec   :  { %3229 = vmatpush1.bf16.msra.mxu1 %v5540_v53 }
 0x1ed   :  { %3231 = vmatprep.subr.bf16.mxu1 %v3230_v18  ;;  %v5553_v18 = vand.u32 4294901760, %v5469_v3  ;;  %v5559_v3 = vand.u32 4294901760, %v5474_v37  ;;  %v5566_v37 = vand.u32 4294901760, %v4323_v48  ;;  %v5573_v48 = vand.u32 4294901760, %v4337_v5  ;;  %v1977_v5 = vld [vmem:[#allocation8 + $0xd0] sm:$0xff] }
 0x1ef   :  { %1648 = vmatmul.mubr.f32.vlgmr.msra.gmra.mrb[4].mxu1 %v5549_v8  ;;  %v3238_v17 = vpack.c.bf16 %v5553_v18, %v5552_v7  ;;  %v5556_v8 = vand.u32 4294901760, %v5471_v15  ;;  %v5562_v15 = vand.u32 4294901760, %v5475_v14  ;;  %v3250_v4 = vpack.c.bf16 %v5566_v37, %v5565_v34 }
 0x1f0   :  { %3233 = vmatpush1.bf16.msra.mxu1 %v3232_v16  ;;  %1653 = vmatprep.mubr.f32.mxu1 %v5395_v57  ;;  %v5563_v16 = vand.u32 4294901760, %v4161_v22  ;;  %v5569_v14 = vand.u32 4294901760, %v4329_v47  ;;  %v5570_v22 = vand.u32 4294901760, %v4331_v35  ;;  %v5576_v47 = vand.u32 4294901760, %v4343_v31 }
 0x1f1   :  { %3235 = vmatprep.subr.bf16.mxu1 %v3234_v40  ;;  %v3240_v55 = vpack.c.bf16 %v5556_v8, %v5555_v19  ;;  %v5560_v40 = vand.u32 4294901760, %v4136_v6  ;;  %v3246_v9 = vpack.c.bf16 %v5562_v15, %v5561_v27  ;;  %v5567_v6 = vand.u32 4294901760, %v4325_v2 }
 0x1f2   :  { %v3248_v60 = vpack.c.bf16 %v5564_v42, %v5563_v16  ;;  %v3254_v32 = vpack.c.bf16 %v5570_v22, %v5569_v14  ;;  %v5574_v2 = vand.u32 4294901760, %v4339_v23  ;;  %v1978_v23 = vld [vmem:[#allocation8 + $0xd8] sm:$0xff]  ;;  %v2037_v31 = vand.u32 4294901760, %v1977_v5  ;;  %v5585_v42 = vld [vmem:[#allocation45_spill] sm:$0xff] }
 0x1f3   :  { %1657 = vmatmul.mubr.f32.gmra.mrb[6].mxu1 %v5554_v50  ;;  %v3244_v1 = vpack.c.bf16 %v5560_v40, %v5559_v3  ;;  %v3252_v51 = vpack.c.bf16 %v5568_v43, %v5567_v6  ;;  %v2035_v63 = vand.u32 4294901760, %v1978_v23  ;;  %v5582_v3 = vld [vmem:[#allocation38_spill] sm:$0xff] }
 0x1f4   :  { %3237 = vmatpush1.bf16.msra.mxu1 %v3236_v52  ;;  %1823 = vmatprep.mubr.f32.mxu1 %v5395_v57  ;;  %v3258_v20 = vpack.c.bf16 %v5574_v2, %v5573_v48  ;;  %v3260_v52 = vpack.c.bf16 %v5576_v47, %v5575_v39  ;;  %v5337_v40 = vand.u32 4294901760, %v5582_v3  ;;  %v4819_v6 = vsub.f32 %v1977_v5, %v2037_v31  ;;  %v5592_v2 = vld [vmem:[#allocation46_spill] sm:$0xff]  ;;  %v5593_v39 = vld [vmem:[#allocation48_spill] sm:$0xff] }
 0x1f5   :  { %3239 = vmatprep.subr.bf16.mxu1 %v3238_v17  ;;  %v4815_v37 = vsub.f32 %v1978_v23, %v2035_v63  ;;  %v5328_v47 = vand.u32 4294901760, %v5593_v39 }
 0x1f6   :  { %5588 = vst [vmem:[#allocation22_spill] sm:$0xff] %v4819_v6  ;;  %v2129_v62 = vsub.f32 %v5582_v3, %v5337_v40  ;;  %v5607_v40 = vld [vmem:[#allocation65_spill] sm:$0xff] }
 0x1f7   :  { %5587 = vst [vmem:[#allocation21_spill] sm:$0xff] %v4815_v37 }
 0x1f8   :  { %3241 = vmatpush1.bf16.msra.mxu1 %v3240_v55  ;;  %v2130_v23 = vand.u32 4294901760, %v2129_v62 }
 0x1f9   :  { %3243 = vmatprep.subr.bf16.mxu1 %v3242_v49 }
 0x1fc   :  { %3245 = vmatpush1.bf16.msra.mxu1 %v3244_v1  ;;  %v5583_v1 = vld [vmem:[#allocation37_spill] sm:$0xff] }
 0x1fd   :  { %3247 = vmatprep.subr.bf16.mxu1 %v3246_v9  ;;  %v5336_v27 = vand.u32 4294901760, %v5583_v1  ;;  %v5584_v9 = vld [vmem:[#allocation44_spill] sm:$0xff] }
 0x1fe   :  { %v5334_v16 = vand.u32 4294901760, %v5584_v9 }
 0x1ff   :  { %v2141_v12 = vsub.f32 %v5583_v1, %v5336_v27 }
 0x200   :  { %3249 = vmatpush1.bf16.msra.mxu1 %v3248_v60  ;;  %v5331_v60 = vand.u32 4294901760, %v5585_v42 }
 0x201   :  { %3251 = vmatprep.subr.bf16.mxu1 %v3250_v4  ;;  %v4817_v4 = vsub.f32 %v1975_v0, %v2033_v45  ;;  %v5595_v0 = vld [vmem:[#allocation50_spill] sm:$0xff] }
 0x202   :  { %v2147_v48 = vsub.f32 %v5585_v42, %v5331_v60  ;;  %v5326_v5 = vand.u32 4294901760, %v5595_v0 }
 0x204   :  { %3253 = vmatpush1.bf16.msra.mxu1 %v3252_v51 }
 0x205   :  { %3255 = vmatprep.subr.bf16.mxu1 %v3254_v32 }
 0x208   :  { %3257 = vmatpush1.bf16.msra.mxu1 %v3256_v11  ;;  %v2135_v11 = vsub.f32 %v5584_v9, %v5334_v16  ;;  %v5606_v16 = vld [vmem:[#allocation64_spill] sm:$0xff] }
 0x209   :  { %3259 = vmatprep.subr.bf16.mxu1 %v3258_v20  ;;  %v5330_v20 = vand.u32 4294901760, %v5592_v2 }
 0x20c   :  { %3261 = vmatpush1.bf16.msra.mxu1 %v3260_v52  ;;  %v5594_v52 = vld [vmem:[#allocation15_spill] sm:$0xff] }
 0x20d   :  { %3263 = vmatprep.subr.bf16.mxu1 %v4208_v13  ;;  %v1976_v13 = vld [vmem:[#allocation8 + $0xc8] sm:$0xff] }
 0x20e   :  { %v2031_v35 = vand.u32 4294901760, %v1976_v13 }
 0x20f   :  { %1825 = vmatmul.mubr.f32.vlgmr.msra.gmra.mrb[4].mxu1 %v4509_v29 }
 0x210   :  { %3265 = vmatpush1.bf16.msra.mxu1 %v5524_v30  ;;  %1830 = vmatprep.mubr.f32.mxu1 %v5395_v57  ;;  %v4813_v34 = vsub.f32 %v1976_v13, %v2031_v35  ;;  %v5327_v13 = vand.u32 4294901760, %v5594_v52 }
 0x211   :  { %3267 = vmatprep.subr.bf16.mxu1 %v5525_v46  ;;  %v1979_v46 = vld [vmem:[#allocation8 + $0xe0] sm:$0xff] }
 0x212   :  { %5586 = vst [vmem:[#allocation16_spill] sm:$0xff] %v4813_v34 }
 0x213   :  { %1832 = vmatmul.mubr.f32.gmra.mrb[6].mxu1 %v4515_v58 }
 0x214   :  { %3269 = vmatpush1.bf16.msra.mxu1 %v5526_v10  ;;  %1934 = vmatprep.mubr.f32.mxu1 %v5395_v57  ;;  %v5349_v10 = vand.u32 4294901760, %v4553_v36 }
 0x215   :  { %3271 = vmatprep.subr.bf16.mxu1 %v5527_v21  ;;  %v5577_v21 = vld [vmem:[#allocation34_spill] sm:$0xff] }
 0x216   :  { %v2105_v18 = vsub.f32 %v4553_v36, %v5349_v10 }
 0x218   :  { %3273 = vmatpush1.bf16.msra.mxu1 %v5528_v28  ;;  %v5345_v28 = vand.u32 4294901760, %v5577_v21  ;;  %v2106_v55 = vand.u32 4294901760, %v2105_v18 }
 0x219   :  { %3275 = vmatprep.subr.bf16.mxu1 %v5529_v38  ;;  %v2041_v38 = vand.u32 4294901760, %v1979_v46 }
 0x21a   :  { %v2117_v17 = vsub.f32 %v5577_v21, %v5345_v28 }
 0x21b   :  { %v4825_v14 = vsub.f32 %v1979_v46, %v2041_v38  ;;  %v5596_v46 = vld [vmem:[#allocation51_spill] sm:$0xff] }
 0x21c   :  { %3277 = vmatpush1.bf16.msra.mxu1 %v5530_v41  ;;  %v2118_v56 = vand.u32 4294901760, %v2117_v17 }
 0x21d   :  { %3279 = vmatprep.subr.bf16.mxu1 %v5531_v59  ;;  %v5578_v59 = vld [vmem:[#allocation31_spill] sm:$0xff]  ;;  %5590 = vst [vmem:[#allocation24_spill] sm:$0xff] %v4825_v14 }
 0x21e   :  { %v3326_v15 = vpack.c.bf16 %v2118_v56, %v2106_v55 }
 0x220   :  { %3281 = vmatpush1.bf16.msra.mxu1 %v5532_v26  ;;  %v5344_v26 = vand.u32 4294901760, %v5578_v59 }
 0x221   :  { %3283 = vmatprep.subr.bf16.mxu1 %v5533_v25  ;;  %v5579_v25 = vld [vmem:[#allocation35_spill] sm:$0xff] }
 0x222   :  { %v2111_v19 = vsub.f32 %v5578_v59, %v5344_v26 }
 0x224   :  { %3285 = vmatpush1.bf16.msra.mxu1 %v5534_v24  ;;  %v5338_v24 = vand.u32 4294901760, %v5579_v25  ;;  %v2112_v54 = vand.u32 4294901760, %v2111_v19 }
 0x225   :  { %3287 = vmatprep.subr.bf16.mxu1 %v5535_v61  ;;  %v4781_v61 = vpack.c.bf16 %v2035_v63, %v2031_v35  ;;  %v2142_v35 = vand.u32 4294901760, %v2141_v12  ;;  %v2136_v63 = vand.u32 4294901760, %v2135_v11  ;;  %v5599_v12 = vld [vmem:[#allocation55_spill] sm:$0xff] }
 0x226   :  { %v2123_v8 = vsub.f32 %v5579_v25, %v5338_v24  ;;  %v5324_v11 = vand.u32 4294901760, %v5599_v12  ;;  %v5340_v24 = vand.u32 4294901760, %v5607_v40 }
 0x227   :  { %3319 = vmatprep.subr.bf16.mxu0 %v4781_v61 }
 0x228   :  { %3289 = vmatpush1.bf16.msra.mxu1 %v5536_v44  ;;  %v4783_v44 = vpack.c.bf16 %v2037_v31, %v2033_v45  ;;  %v2124_v49 = vand.u32 4294901760, %v2123_v8  ;;  %v2148_v45 = vand.u32 4294901760, %v2147_v48  ;;  %v2153_v31 = vsub.f32 %v5592_v2, %v5330_v20 }
 0x229   :  { %3291 = vmatprep.subr.bf16.mxu1 %v5537_v33  ;;  %v1980_v33 = vld [vmem:[#allocation8 + $0xe8] sm:$0xff] }
 0x22a   :  { %3321 = vmatpush1.bf16.msra.mxu0 %v4783_v44  ;;  %v4829_v32 = vpack.c.bf16 %v2124_v49, %v2112_v54  ;;  %v4863_v18 = vpack.c.bf16 %v2148_v45, %v2136_v63  ;;  %v2154_v17 = vand.u32 4294901760, %v2153_v31  ;;  %v5598_v49 = vld [vmem:[#allocation54_spill] sm:$0xff]  ;;  %v2195_v45 = vsub.f32 %v5599_v12, %v5324_v11  ;;  %v5600_v31 = vld [vmem:[#allocation56_spill] sm:$0xff] }
 0x22c   :  { %3293 = vmatpush1.bf16.msra.mxu1 %v5540_v53  ;;  %v1982_v53 = vld [vmem:[#allocation8 + $0xf8] sm:$0xff] }
 0x22d   :  { %v2043_v30 = vand.u32 4294901760, %v1982_v53 }
 0x22f   :  { %1936 = vmatmul.mubr.f32.vlgmr.msra.gmra.mrb[4].mxu1 %v4509_v29  ;;  %v2039_v29 = vand.u32 4294901760, %v1980_v33  ;;  %v4823_v51 = vsub.f32 %v1982_v53, %v2043_v30  ;;  %v2159_v53 = vsub.f32 %v5594_v52, %v5327_v13 }
 0x230   :  { %1941 = vmatprep.mubr.f32.mxu1 %v5395_v57 }
 0x231   :  { %v4791_v7 = vpack.c.bf16 %v2043_v30, %v2039_v29  ;;  %v4821_v43 = vsub.f32 %v1980_v33, %v2039_v29  ;;  %5589 = vst [vmem:[#allocation17_spill] sm:$0xff] %v4823_v51  ;;  %v2165_v33 = vsub.f32 %v5593_v39, %v5328_v47  ;;  %v4856_v29 = vpack.c.bf16 %v2142_v35, %v2130_v23 }
 0x232   :  { %v2171_v30 = vsub.f32 %v5595_v0, %v5326_v5  ;;  %v2160_v8 = vand.u32 4294901760, %v2159_v53  ;;  %v5601_v53 = vld [vmem:[#allocation57_spill] sm:$0xff]  ;;  %v5605_v5 = vld [vmem:[#allocation63_spill] sm:$0xff] }
 0x233   :  { %1943 = vmatmul.mubr.f32.gmra.mrb[6].mxu1 %v4515_v58  ;;  %v1981_v58 = vld [vmem:[#allocation8 + $0xf0] sm:$0xff]  ;;  %5580 = vst [vmem:[#allocation18_spill] sm:$0xff] %v4791_v7  ;;  %3323 = vmatprep.subr.bf16.mxu0 %v4791_v7  ;;  %v2166_v19 = vand.u32 4294901760, %v2165_v33  ;;  %v5329_v33 = vand.u32 4294901760, %v5600_v31 }
 0x234   :  { %v2045_v41 = vand.u32 4294901760, %v1981_v58  ;;  %v2172_v55 = vand.u32 4294901760, %v2171_v30  ;;  %v5332_v30 = vand.u32 4294901760, %v5601_v53 }
 0x235   :  { %v4872_v62 = vpack.c.bf16 %v2166_v19, %v2154_v17  ;;  %v5602_v17 = vld [vmem:[#allocation58_spill] sm:$0xff] }
 0x236   :  { %v4799_v50 = vpack.c.bf16 %v2045_v41, %v2041_v38  ;;  %v4827_v22 = vsub.f32 %v1981_v58, %v2045_v41  ;;  %v5325_v58 = vand.u32 4294901760, %v5596_v46  ;;  %v5597_v38 = vld [vmem:[#allocation53_spill] sm:$0xff]  ;;  %v4875_v48 = vpack.c.bf16 %v2172_v55, %v2160_v8  ;;  %v5603_v55 = vld [vmem:[#allocation59_spill] sm:$0xff] }
 0x237   :  { %v5322_v41 = vand.u32 4294901760, %v5597_v38  ;;  %v5333_v19 = vand.u32 4294901760, %v5602_v17  ;;  %v2213_v11 = vsub.f32 %v5601_v53, %v5332_v30 }
 0x238   :  { %5581 = vst [vmem:[#allocation20_spill] sm:$0xff] %v4799_v50  ;;  %3325 = vmatpush1.bf16.msra.mxu0 %v4799_v50  ;;  %5591 = vst [vmem:[#allocation26_spill] sm:$0xff] %v4827_v22  ;;  %v2177_v56 = vsub.f32 %v5596_v46, %v5325_v58  ;;  %v5356_v50 = vand.u32 4294901760, %v4827_v22 }
 0x239   :  { %3327 = vmatprep.subr.bf16.mxu0 %v3326_v15  ;;  %v2189_v54 = vsub.f32 %v5597_v38, %v5322_v41  ;;  %v5323_v15 = vand.u32 4294901760, %v5598_v49  ;;  %v2207_v58 = vsub.f32 %v5602_v17, %v5333_v19 }
 0x23a   :  { %v2178_v23 = vand.u32 4294901760, %v2177_v56  ;;  %v5335_v56 = vand.u32 4294901760, %v5603_v55 }
 0x23b   :  { %v2190_v35 = vand.u32 4294901760, %v2189_v54  ;;  %v2183_v63 = vsub.f32 %v5598_v49, %v5323_v15  ;;  %v2196_v54 = vand.u32 4294901760, %v2195_v45  ;;  %v2201_v15 = vsub.f32 %v5600_v31, %v5329_v33 }
 0x23c   :  { %v5339_v45 = vand.u32 4294901760, %v5605_v5  ;;  %v2214_v33 = vand.u32 4294901760, %v2213_v11  ;;  %v2208_v20 = vand.u32 4294901760, %v2207_v58 }
 0x23d   :  { %v4886_v41 = vpack.c.bf16 %v2190_v35, %v2178_v23  ;;  %v2184_v8 = vand.u32 4294901760, %v2183_v63  ;;  %v2219_v23 = vsub.f32 %v5603_v55, %v5335_v56  ;;  %v5604_v35 = vld [vmem:[#allocation62_spill] sm:$0xff]  ;;  %v2202_v47 = vand.u32 4294901760, %v2201_v15 }
 0x23e   :  { %v5342_v63 = vand.u32 4294901760, %v5604_v35  ;;  %v2237_v19 = vsub.f32 %v5605_v5, %v5339_v45  ;;  %v5341_v56 = vand.u32 4294901760, %v5606_v16  ;;  %v5346_v45 = vand.u32 4294901760, %v4815_v37 }
 0x23f   :  { %v4903_v13 = vpack.c.bf16 %v2196_v54, %v2184_v8  ;;  %v2220_v60 = vand.u32 4294901760, %v2219_v23  ;;  %v4912_v27 = vpack.c.bf16 %v2214_v33, %v2202_v47  ;;  %v2243_v54 = vsub.f32 %v5607_v40, %v5340_v24 }
 0x240   :  { %v2225_v30 = vsub.f32 %v5604_v35, %v5342_v63  ;;  %v2238_v11 = vand.u32 4294901760, %v2237_v19  ;;  %v2231_v58 = vsub.f32 %v5606_v16, %v5341_v56  ;;  %v5343_v23 = vand.u32 4294901760, %v4813_v34 }
 0x241   :  { %v4915_v8 = vpack.c.bf16 %v2220_v60, %v2208_v20  ;;  %v5347_v47 = vand.u32 4294901760, %v4817_v4  ;;  %v5348_v20 = vand.u32 4294901760, %v4819_v6  ;;  %v2261_v24 = vsub.f32 %v4815_v37, %v5346_v45 }
 0x242   :  { %v2226_v15 = vand.u32 4294901760, %v2225_v30  ;;  %v2232_v60 = vand.u32 4294901760, %v2231_v58  ;;  %v2244_v30 = vand.u32 4294901760, %v2243_v54  ;;  %v2249_v19 = vsub.f32 %v4813_v34, %v5343_v23 }
 0x243   :  { %v2255_v56 = vsub.f32 %v4817_v4, %v5347_v47  ;;  %v5355_v58 = vand.u32 4294901760, %v4823_v51  ;;  %v2262_v23 = vand.u32 4294901760, %v2261_v24 }
 0x244   :  { %v4926_v33 = vpack.c.bf16 %v2238_v11, %v2226_v15  ;;  %v2267_v15 = vsub.f32 %v4819_v6, %v5348_v20  ;;  %v5354_v11 = vand.u32 4294901760, %v4821_v43  ;;  %v4943_v54 = vpack.c.bf16 %v2244_v30, %v2232_v60 }
 0x245   :  { %v2250_v63 = vand.u32 4294901760, %v2249_v19  ;;  %v2256_v26 = vand.u32 4294901760, %v2255_v56  ;;  %v2285_v47 = vsub.f32 %v4823_v51, %v5355_v58  ;;  %v5357_v20 = vand.u32 4294901760, %v4825_v14 }
 0x246   :  { %v2268_v28 = vand.u32 4294901760, %v2267_v15  ;;  %v2273_v45 = vsub.f32 %v4821_v43, %v5354_v11  ;;  %v2291_v56 = vsub.f32 %v4827_v22, %v5356_v50  ;;  %v3382_v50 = vpack.c.bf16 %v4815_v37, %v4813_v34 }
 0x247   :  { %v3350_v10 = vpack.c.bf16 %v2262_v23, %v2250_v63  ;;  %v2286_v30 = vand.u32 4294901760, %v2285_v47  ;;  %v2279_v24 = vsub.f32 %v4825_v14, %v5357_v20  ;;  %v3358_v63 = vpack.c.bf16 %v5577_v21, %v4553_v36 }
 0x248   :  { %v3352_v7 = vpack.c.bf16 %v2268_v28, %v2256_v26  ;;  %v2274_v60 = vand.u32 4294901760, %v2273_v45  ;;  %v2292_v11 = vand.u32 4294901760, %v2291_v56  ;;  %v3360_v28 = vpack.c.bf16 %v5579_v25, %v5578_v59 }
 0x249   :  { %v2280_v15 = vand.u32 4294901760, %v2279_v24  ;;  %v3362_v26 = vpack.c.bf16 %v5583_v1, %v5582_v3  ;;  %v3364_v45 = vpack.c.bf16 %v5585_v42, %v5584_v9  ;;  %v3366_v23 = vpack.c.bf16 %v5593_v39, %v5592_v2 }
 0x24a   :  { %v3354_v19 = vpack.c.bf16 %v2286_v30, %v2274_v60  ;;  %v3368_v47 = vpack.c.bf16 %v5595_v0, %v5594_v52  ;;  %v3372_v60 = vpack.c.bf16 %v5599_v12, %v5598_v49  ;;  %v3374_v30 = vpack.c.bf16 %v5601_v53, %v5600_v31 }
 0x24b   :  { %v3356_v58 = vpack.c.bf16 %v2292_v11, %v2280_v15  ;;  %v3370_v11 = vpack.c.bf16 %v5597_v38, %v5596_v46  ;;  %v3376_v24 = vpack.c.bf16 %v5603_v55, %v5602_v17  ;;  %v3378_v56 = vpack.c.bf16 %v5605_v5, %v5604_v35 }
 0x24c   :  { %v3380_v15 = vpack.c.bf16 %v5607_v40, %v5606_v16  ;;  %v3384_v20 = vpack.c.bf16 %v4819_v6, %v4817_v4  ;;  %v3386_v12 = vpack.c.bf16 %v4823_v51, %v4821_v43  ;;  %v3388_v53 = vpack.c.bf16 %v4827_v22, %v4825_v14 }
 0x302   :  { %v1937_v31 = vpop.f32.mrb[4].mxu1 }
 0x303   :  { %v4991_v55 = vand.u32 4294901760, %v1937_v31  ;;  %v1939_v17 = vpop.f32.mrb[5].mxu1 }
 0x304   :  { %1949 = vst [vmem:[#allocation10 + $0x8] sm:$0xff] %v1939_v17 }
 0x305   :  { %v4994_v5 = vsub.f32 %v1937_v31, %v4991_v55 }
 0x306   :  { %v1944_v40 = vpop.f32.mrb[6].mxu1 }
 0x307   :  { %v2082_v37 = vand.u32 4294901760, %v4994_v5  ;;  %v4997_v34 = vand.u32 4294901760, %v1944_v40  ;;  %v1946_v6 = vpop.f32.mrb[7].mxu1 }
 0x308   :  { %1950 = vst [vmem:[#allocation10 + $0x28] sm:$0xff] %v1946_v6 }
 0x309   :  { %v2083_v51 = vsub.f32 %v4994_v5, %v2082_v37  ;;  %v5003_v22 = vsub.f32 %v1944_v40, %v4997_v34  ;;  %v5610_v40 = vld [vmem:[#allocation36_spill] sm:$0xff] }
 0x30b   :  { %v2084_v14 = vand.u32 4294901760, %v2083_v51  ;;  %v2093_v17 = vand.u32 4294901760, %v5003_v22  ;;  %v5613_v51 = vld [vmem:[#allocation49_spill] sm:$0xff] }
 0x30d   :  { %2085 = vmatmul.mubr.f32.vlgmr.msra.gmra.mrb[4].mxu0 %v2084_v14  ;;  %v2094_v31 = vsub.f32 %v5003_v22, %v2093_v17  ;;  %v5614_v14 = vld [vmem:[#allocation52_spill] sm:$0xff] }
 0x30e   :  { %3329 = vmatpush1.bf16.msra.mxu0 %v4829_v32  ;;  %2090 = vmatprep.mubr.f32.mxu0 %v5395_v57  ;;  %v5615_v32 = vld [vmem:[#allocation60_spill] sm:$0xff] }
 0x30f   :  { %3331 = vmatprep.subr.bf16.mxu0 %v4856_v29  ;;  %v2095_v6 = vand.u32 4294901760, %v2094_v31  ;;  %v5617_v29 = vld [vmem:[#allocation66_spill] sm:$0xff]  ;;  %v5650_v31 = vand.u32 4294901760, %v5606_v16 }
 0x311   :  { %2096 = vmatmul.mubr.f32.gmra.mrb[6].mxu0 %v2095_v6  ;;  %v5651_v6 = vld [vmem:[#allocation65_spill] sm:$0xff] }
 0x312   :  { %3333 = vmatpush1.bf16.msra.mxu0 %v4863_v18  ;;  %2326 = vmatprep.mubr.f32.mxu0 %v5395_v57  ;;  %v5619_v18 = vld [vmem:[#allocation68_spill] sm:$0xff] }
 0x313   :  { %3335 = vmatprep.subr.bf16.mxu0 %v4872_v62  ;;  %v5620_v62 = vld [vmem:[#allocation18_spill] sm:$0xff] }
 0x316   :  { %3337 = vmatpush1.bf16.msra.mxu0 %v4875_v48  ;;  %v5622_v48 = vand.u32 4294901760, %v5577_v21  ;;  %v5629_v21 = vand.u32 4294901760, %v5585_v42  ;;  %v5635_v42 = vand.u32 4294901760, %v5597_v38  ;;  %v5647_v38 = vand.u32 4294901760, %v5604_v35 }
 0x317   :  { %3339 = vmatprep.subr.bf16.mxu0 %v4886_v41  ;;  %v5618_v41 = vld [vmem:[#allocation67_spill] sm:$0xff] }
 0x31a   :  { %3341 = vmatpush1.bf16.msra.mxu0 %v4903_v13  ;;  %v5616_v13 = vld [vmem:[#allocation61_spill] sm:$0xff] }
 0x31b   :  { %3343 = vmatprep.subr.bf16.mxu0 %v4912_v27  ;;  %v5611_v27 = vld [vmem:[#allocation43_spill] sm:$0xff] }
 0x31e   :  { %3345 = vmatpush1.bf16.msra.mxu0 %v4915_v8  ;;  %v5623_v8 = vld [vmem:[#allocation20_spill] sm:$0xff] }
 0x31f   :  { %3347 = vmatprep.subr.bf16.mxu0 %v4926_v33  ;;  %v5624_v33 = vand.u32 4294901760, %v5578_v59 }
 0x322   :  { %3349 = vmatpush1.bf16.msra.mxu0 %v4943_v54  ;;  %v5626_v54 = vand.u32 4294901760, %v5582_v3 }
 0x323   :  { %3351 = vmatprep.subr.bf16.mxu0 %v3350_v10  ;;  %v5608_v10 = vld [vmem:[#allocation30_spill] sm:$0xff] }
 0x326   :  { %3353 = vmatpush1.bf16.msra.mxu0 %v3352_v7  ;;  %v5609_v7 = vld [vmem:[#allocation33_spill] sm:$0xff] }
 0x327   :  { %3355 = vmatprep.subr.bf16.mxu0 %v3354_v19  ;;  %v5627_v19 = vand.u32 4294901760, %v5583_v1  ;;  %v5632_v1 = vand.u32 4294901760, %v5594_v52 }
 0x32a   :  { %3357 = vmatpush1.bf16.msra.mxu0 %v3356_v58 }
 0x32b   :  { %3359 = vmatprep.subr.bf16.mxu0 %v3358_v63  ;;  %v3426_v63 = vpack.c.bf16 %v5627_v19, %v5626_v54  ;;  %v5657_v19 = vand.u32 4294901760, %v4817_v4 }
 0x32d   :  { %2328 = vmatmul.mubr.f32.vlgmr.msra.gmra.mrb[4].mxu0 %v4991_v55 }
 0x32e   :  { %3361 = vmatpush1.bf16.msra.mxu0 %v3360_v28  ;;  %2333 = vmatprep.mubr.f32.mxu0 %v5395_v57  ;;  %v5631_v28 = vand.u32 4294901760, %v5593_v39  ;;  %v5636_v39 = vand.u32 4294901760, %v5598_v49 }
 0x32f   :  { %3363 = vmatprep.subr.bf16.mxu0 %v3362_v26  ;;  %v5637_v26 = vld [vmem:[#allocation55_spill] sm:$0xff] }
 0x331   :  { %2335 = vmatmul.mubr.f32.gmra.mrb[6].mxu0 %v4997_v34 }
 0x332   :  { %3365 = vmatpush1.bf16.msra.mxu0 %v3364_v45  ;;  %2469 = vmatprep.mubr.f32.mxu0 %v5395_v57 }
 0x333   :  { %3367 = vmatprep.subr.bf16.mxu0 %v3366_v23  ;;  %v5639_v23 = vld [vmem:[#allocation56_spill] sm:$0xff] }
 0x334   :  { %v5640_v52 = vand.u32 4294901760, %v5639_v23 }
 0x336   :  { %3369 = vmatpush1.bf16.msra.mxu0 %v3368_v47  ;;  %v5641_v47 = vld [vmem:[#allocation57_spill] sm:$0xff] }
 0x337   :  { %3371 = vmatprep.subr.bf16.mxu0 %v3370_v11 }
 0x33a   :  { %3373 = vmatpush1.bf16.msra.mxu0 %v3372_v60  ;;  %v5643_v60 = vld [vmem:[#allocation58_spill] sm:$0xff] }
 0x33b   :  { %3375 = vmatprep.subr.bf16.mxu0 %v3374_v30  ;;  %v5644_v30 = vand.u32 4294901760, %v5643_v60 }
 0x33e   :  { %3377 = vmatpush1.bf16.msra.mxu0 %v3376_v24  ;;  %v5645_v24 = vld [vmem:[#allocation59_spill] sm:$0xff] }
 0x33f   :  { %3379 = vmatprep.subr.bf16.mxu0 %v3378_v56 }
 0x342   :  { %3381 = vmatpush1.bf16.msra.mxu0 %v3380_v15  ;;  %v5648_v15 = vld [vmem:[#allocation63_spill] sm:$0xff] }
 0x343   :  { %3383 = vmatprep.subr.bf16.mxu0 %v3382_v50  ;;  %v5612_v50 = vld [vmem:[#allocation47_spill] sm:$0xff]  ;;  %v5649_v49 = vand.u32 4294901760, %v5648_v15 }
 0x346   :  { %3385 = vmatpush1.bf16.msra.mxu0 %v3384_v20  ;;  %v5625_v20 = vand.u32 4294901760, %v5579_v25  ;;  %v5630_v25 = vand.u32 4294901760, %v5592_v2 }
 0x347   :  { %3387 = vmatprep.subr.bf16.mxu0 %v3386_v12  ;;  %v5621_v12 = vand.u32 4294901760, %v4553_v36  ;;  %v5628_v36 = vand.u32 4294901760, %v5584_v9  ;;  %v5634_v9 = vand.u32 4294901760, %v5596_v46  ;;  %v5646_v46 = vand.u32 4294901760, %v5645_v24 }
 0x348   :  { %v3424_v58 = vpack.c.bf16 %v5625_v20, %v5624_v33  ;;  %v3430_v3 = vpack.c.bf16 %v5631_v28, %v5630_v25  ;;  %v5655_v20 = vld [vmem:[#allocation21_spill] sm:$0xff]  ;;  %v5663_v28 = vld [vmem:[#allocation24_spill] sm:$0xff] }
 0x349   :  { %v3428_v59 = vpack.c.bf16 %v5629_v21, %v5628_v36  ;;  %v3434_v2 = vpack.c.bf16 %v5635_v42, %v5634_v9  ;;  %v3440_v56 = vpack.c.bf16 %v5646_v46, %v5644_v30  ;;  %v5660_v21 = vand.u32 4294901760, %v4821_v43 }
 0x34a   :  { %3389 = vmatpush1.bf16.msra.mxu0 %v3388_v53  ;;  %v3422_v53 = vpack.c.bf16 %v5622_v48, %v5621_v12  ;;  %v5652_v12 = vand.u32 4294901760, %v5651_v6 }
 0x34b   :  { %3391 = vmatprep.subr.bf16.mxu0 %v5608_v10 }
 0x34c   :  { %v3444_v48 = vpack.c.bf16 %v5652_v12, %v5650_v31 }
 0x34d   :  { %2472 = vmatmul.mubr.f32.vlgmr.msra.gmra.mrb[4].mxu0 %v4994_v5 }
 0x34e   :  { %3393 = vmatpush1.bf16.msra.mxu0 %v5609_v7  ;;  %2477 = vmatprep.mubr.f32.mxu0 %v5395_v57 }
 0x34f   :  { %3395 = vmatprep.subr.bf16.mxu0 %v5610_v40 }
 0x351   :  { %2480 = vmatmul.mubr.f32.gmra.mrb[6].mxu0 %v5003_v22  ;;  %v5638_v22 = vand.u32 4294901760, %v5637_v26 }
 0x352   :  { %3397 = vmatpush1.bf16.msra.mxu0 %v5611_v27  ;;  %2582 = vmatprep.mubr.f32.mxu0 %v5395_v57 }
 0x353   :  { %3399 = vmatprep.subr.bf16.mxu0 %v5612_v50  ;;  %v3436_v45 = vpack.c.bf16 %v5638_v22, %v5636_v39 }
 0x356   :  { %3401 = vmatpush1.bf16.msra.mxu0 %v5613_v51 }
 0x357   :  { %3403 = vmatprep.subr.bf16.mxu0 %v5614_v14 }
 0x35a   :  { %3405 = vmatpush1.bf16.msra.mxu0 %v5615_v32 }
 0x35b   :  { %3407 = vmatprep.subr.bf16.mxu0 %v5616_v13 }
 0x35e   :  { %3409 = vmatpush1.bf16.msra.mxu0 %v5617_v29 }
 0x35f   :  { %3411 = vmatprep.subr.bf16.mxu0 %v5618_v41 }
 0x362   :  { %3413 = vmatpush1.bf16.msra.mxu0 %v5619_v18 }
 0x363   :  { %3415 = vmatprep.subr.bf16.mxu0 %v4781_v61 }
 0x366   :  { %3417 = vmatpush1.bf16.msra.mxu0 %v4783_v44 }
 0x367   :  { %3419 = vmatprep.subr.bf16.mxu0 %v5620_v62 }
 0x36a   :  { %3421 = vmatpush1.bf16.msra.mxu0 %v5623_v8 }
 0x36b   :  { %3423 = vmatprep.subr.bf16.mxu0 %v3422_v53  ;;  %v5653_v53 = vld [vmem:[#allocation16_spill] sm:$0xff] }
 0x36c   :  { %v5654_v33 = vand.u32 4294901760, %v5653_v53 }
 0x36d   :  { %2586 = vmatmul.mubr.f32.vlgmr.msra.gmra.mrb[4].mxu0 %v2082_v37  ;;  %v5633_v37 = vand.u32 4294901760, %v5595_v0  ;;  %v5642_v0 = vand.u32 4294901760, %v5641_v47 }
 0x36e   :  { %3425 = vmatpush1.bf16.msra.mxu0 %v3424_v58  ;;  %2591 = vmatprep.mubr.f32.mxu0 %v5395_v57  ;;  %v5656_v58 = vand.u32 4294901760, %v5655_v20 }
 0x36f   :  { %3427 = vmatprep.subr.bf16.mxu0 %v3426_v63  ;;  %v3432_v5 = vpack.c.bf16 %v5633_v37, %v5632_v1  ;;  %v3438_v11 = vpack.c.bf16 %v5642_v0, %v5640_v52  ;;  %v5658_v63 = vld [vmem:[#allocation22_spill] sm:$0xff] }
 0x370   :  { %v3446_v54 = vpack.c.bf16 %v5656_v58, %v5654_v33  ;;  %v5659_v35 = vand.u32 4294901760, %v5658_v63  ;;  %v5665_v1 = vld [vmem:[#allocation26_spill] sm:$0xff] }
 0x371   :  { %2595 = vmatmul.mubr.f32.gmra.mrb[6].mxu0 %v2093_v17  ;;  %v3442_v17 = vpack.c.bf16 %v5649_v49, %v5647_v38  ;;  %v5666_v37 = vand.u32 4294901760, %v5665_v1 }
 0x372   :  { %3429 = vmatpush1.bf16.msra.mxu0 %v3428_v59  ;;  %2761 = vmatprep.mubr.f32.mxu0 %v5395_v57  ;;  %v3448_v36 = vpack.c.bf16 %v5659_v35, %v5657_v19  ;;  %v5661_v59 = vld [vmem:[#allocation17_spill] sm:$0xff] }
 0x373   :  { %3431 = vmatprep.subr.bf16.mxu0 %v3430_v3  ;;  %v5662_v16 = vand.u32 4294901760, %v5661_v59  ;;  %v5664_v3 = vand.u32 4294901760, %v5663_v28 }
 0x375   :  { %v3450_v25 = vpack.c.bf16 %v5662_v16, %v5660_v21 }
 0x376   :  { %3433 = vmatpush1.bf16.msra.mxu0 %v3432_v5  ;;  %v3452_v5 = vpack.c.bf16 %v5666_v37, %v5664_v3 }
 0x377   :  { %3435 = vmatprep.subr.bf16.mxu0 %v3434_v2 }
 0x37a   :  { %3437 = vmatpush1.bf16.msra.mxu0 %v3436_v45 }
 0x37b   :  { %3439 = vmatprep.subr.bf16.mxu0 %v3438_v11 }
 0x37e   :  { %3441 = vmatpush1.bf16.msra.mxu0 %v3440_v56 }
 0x37f   :  { %3443 = vmatprep.subr.bf16.mxu0 %v3442_v17 }
 0x382   :  { %3445 = vmatpush1.bf16.msra.mxu0 %v3444_v48 }
 0x383   :  { %3447 = vmatprep.subr.bf16.mxu0 %v3446_v54 }
 0x386   :  { %3449 = vmatpush1.bf16.msra.mxu0 %v3448_v36 }
 0x387   :  { %3451 = vmatprep.subr.bf16.mxu0 %v3450_v25 }
 0x38a   :  { %3453 = vmatpush1.bf16.msra.mxu0 %v3452_v5 }
 0x38b   :  { %3455 = vmatprep.subr.bf16.mxu0 %v5608_v10 }
 0x38d   :  { %2763 = vmatmul.mubr.f32.vlgmr.msra.gmra.mrb[4].mxu0 %v4991_v55 }
 0x38e   :  { %3457 = vmatpush1.bf16.msra.mxu0 %v5609_v7  ;;  %2768 = vmatprep.mubr.f32.mxu0 %v5395_v57 }
 0x38f   :  { %3459 = vmatprep.subr.bf16.mxu0 %v5610_v40 }
 0x391   :  { %2770 = vmatmul.mubr.f32.gmra.mrb[6].mxu0 %v4997_v34 }
 0x392   :  { %3461 = vmatpush1.bf16.msra.mxu0 %v5611_v27  ;;  %2872 = vmatprep.mubr.f32.mxu0 %v5395_v57 }
 0x393   :  { %3463 = vmatprep.subr.bf16.mxu0 %v5612_v50 }
 0x396   :  { %3465 = vmatpush1.bf16.msra.mxu0 %v5613_v51 }
 0x397   :  { %3467 = vmatprep.subr.bf16.mxu0 %v5614_v14 }
 0x39a   :  { %3469 = vmatpush1.bf16.msra.mxu0 %v5615_v32 }
 0x39b   :  { %3471 = vmatprep.subr.bf16.mxu0 %v5616_v13 }
 0x39e   :  { %3473 = vmatpush1.bf16.msra.mxu0 %v5617_v29 }
 0x39f   :  { %3475 = vmatprep.subr.bf16.mxu0 %v5618_v41 }
 0x3a2   :  { %3477 = vmatpush1.bf16.msra.mxu0 %v5619_v18 }
 0x3a3   :  { %3479 = vmatprep.subr.bf16.mxu0 %v4781_v61 }
 0x3a6   :  { %3481 = vmatpush1.bf16.msra.mxu0 %v4783_v44 }
 0x3a7   :  { %3483 = vmatprep.subr.bf16.mxu0 %v5620_v62 }
 0x3aa   :  { %3485 = vmatpush1.bf16.msra.mxu0 %v5623_v8 }
 0x3ad   :  { %2874 = vmatmul.mubr.f32.vlgmr.msra.gmra.mrb[4].mxu0 %v4991_v55 }
 0x3ae   :  { %2879 = vmatprep.mubr.f32.mxu0 %v5395_v57 }
 0x3b1   :  { %2881 = vmatmul.mubr.f32.gmra.mrb[6].mxu0 %v4997_v34 }
 0x480   :  { %v2875_v4 = vpop.f32.mrb[4].mxu0 }
 0x481   :  { %2889 = vst [vmem:[#allocation10 + $0x18] sm:$0xff] %v2875_v4  ;;  %v2877_v43 = vpop.f32.mrb[5].mxu0 }
 0x482   :  { %2887 = vst [vmem:[#allocation10 + $0x10] sm:$0xff] %v2877_v43 }
 0x484   :  { %v2882_v61 = vpop.f32.mrb[6].mxu0 }
 0x485   :  { %2890 = vst [vmem:[#allocation10 + $0x38] sm:$0xff] %v2882_v61  ;;  %v2884_v44 = vpop.f32.mrb[7].mxu0 }
 0x486   :  { %2888 = vst [vmem:[#allocation10 + $0x30] sm:$0xff] %v2884_v44 }
 0x487   :  { %3657 = shalt.err (!%p3654_p8)
}
 0x488   :  { %s3658_s15 = scalar_lea.hbm %s5155_s4, 1024 }
 0x489   :  { %p3659_p9 = scmp.ne.s32.totalorder %s5155_s4, %s3658_s15  ;;  %p3662_p10 = scmp.lt.u32.totalorder %s3658_s15, %s5155_s4 }
 0x48b   :  { %p3664_p11 = pnand %p3662_p10, %p3659_p9 }
 0x48d   :  { %3667 = shalt.err (!%p3664_p11)
}
 0x48e   :  { %s3686_s20 = smov 512   ;;  %s3687_s21 = smov 32  }
 0x48f   :  { %2902 = dma.vmem_to_hbm [thread:$0]  %s2897_s25, 1024, %s5155_s4, [#allocation4], %s3686_s20, %s3686_s20, %s3687_s21  }
 0x490   :  { %3674 = dma.done.wait [#allocation4], 1024  }
 0x491   :  { %3675 = vsyncadd [#allocation4], 4294966272 }
 0x492   :  { %2906 = vsyncpa [#allocation3], 1 }
 0x493   :  { %2907 = vsyncpa [#allocation6], 1 }
 0x494   :  { %2908 = vsyncpa [#allocation9], 1 }
 0x495   :  { %2909 = vsyncpa [#allocation4], 1 }

</bundles_post_ra>
